<compile_context>
chip_gen: v7x
topology: tpu7x:2x2x1
jax: 0.10.0
libtpu: 0.0.40
codegen_flags: <defaults>
</compile_context>

<pallas_src>
from functools import partial

import jax
import jax.numpy as jnp
from jax.experimental import pallas as pl
from jax.experimental.pallas import tpu as pltpu

LANES = 128


def _round_up(n, m):
    return ((n + m - 1) // m) * m


# --------------------------------------------------------------------------
# Fused kernel: input projection + sequential recurrence + batched
# h2o/log-softmax, all in one invocation.
# --------------------------------------------------------------------------
def rnn_fused_kernel(x_ref, h0_ref, wx_ref, wh_ref, wo_ref, bi_ref, bo_ref,
                     out_ref, hid_ref):
    """Shapes (feature axes padded to 128 lanes):
      x_ref  : (T*B, I)     h0_ref : (B, HP)
      wx_ref : (I, HP)      wh_ref : (HP, HP)     wo_ref : (HP, OP)
      bi_ref : (1, HP)      bo_ref : (1, OP)
      out_ref: (T*B, OP)    hid_ref: (T*B, HP)
    """
    B = h0_ref.shape[0]
    T = hid_ref.shape[0] // B

    # --- Hoisted input projection: one MXU matmul over all T*B rows. -------
    xp = (jnp.dot(x_ref[...], wx_ref[...], preferred_element_type=jnp.float32)
          + bi_ref[...])

    # --- Sequential recurrence: only the (B,HP)x(HP,HP) dot per step sits on
    # the serial path.  Wh is loaded once and stays resident across the loop.
    wh = wh_ref[...]
    h = h0_ref[...].astype(jnp.float32)
    for t in range(T):                    # T static -> tiny fully-unrolled loop
        h = xp[t * B:(t + 1) * B, :] + jnp.dot(
            h, wh, preferred_element_type=jnp.float32)
        hid_ref[pl.ds(t * B, B), :] = h   # full-128-lane (unmasked) store

    # --- Deferred h2o + LogSoftmax, batched over all T*B rows. --------------
    hid_all = hid_ref[...]
    logits = (jnp.dot(hid_all, wo_ref[...], preferred_element_type=jnp.float32)
              + bo_ref[...])              # padded columns carry bias -1e30
    m = jnp.max(logits, axis=-1, keepdims=True)
    z = logits - m
    lse = jnp.log(jnp.sum(jnp.exp(z), axis=-1, keepdims=True))
    out_ref[...] = (z - lse).astype(out_ref.dtype)


# --------------------------------------------------------------------------
# Parameter prep (done ONCE): split + transpose i2h weight, transpose h2o
# weight, reshape biases, zero-pad feature axes to 128 lanes.
# --------------------------------------------------------------------------
def prepare_params(w_i2h, b_i2h, w_h2o, b_h2o, input_size):
    I = input_size
    H = w_i2h.shape[0]
    O = w_h2o.shape[0]
    HP = _round_up(H, LANES)
    OP = _round_up(O, LANES)
    f32 = jnp.float32
    wx = jnp.zeros((I, HP), f32).at[:, :H].set(
        jnp.transpose(w_i2h[:, :I]).astype(f32))
    wh = jnp.zeros((HP, HP), f32).at[:H, :H].set(
        jnp.transpose(w_i2h[:, I:]).astype(f32))
    wo = jnp.zeros((HP, OP), f32).at[:H, :O].set(
        jnp.transpose(w_h2o).astype(f32))
    bi = jnp.zeros((1, HP), f32).at[:, :H].set(b_i2h.astype(f32))
    # Huge negative bias on the padded logit columns -> exp() underflows to 0,
    # so the log-softmax over the padded width equals the unpadded one.
    bo = jnp.full((1, OP), -1e30, f32).at[:, :O].set(b_h2o.astype(f32))
    return wx, wh, wo, bi, bo


@partial(jax.jit, static_argnames=("hidden_size", "output_size"))
def rnn_sequence_forward(xs, h0, wx, wh, wo, bi, bo, hidden_size, output_size):
    """Run the RNN cell over a whole sequence in one fused kernel.

    xs: (T, B, I), h0: (B, H).  Returns (outputs (T, B, O), hiddens (T, B, H)),
    i.e. the per-step (output, hidden) pairs of the PyTorch forward.
    """
    T, B, I = xs.shape
    HP = wh.shape[0]
    OP = wo.shape[1]
    H, O = hidden_size, output_size

    x2d = xs.reshape(T * B, I).astype(jnp.float32)
    h0p = jnp.zeros((B, HP), jnp.float32).at[:, :H].set(h0.astype(jnp.float32))

    vmem = pl.BlockSpec(memory_space=pltpu.MemorySpace.VMEM)
    out_p, hid_p = pl.pallas_call(
        rnn_fused_kernel,
        out_shape=(jax.ShapeDtypeStruct((T * B, OP), jnp.float32),
                   jax.ShapeDtypeStruct((T * B, HP), jnp.float32)),
        in_specs=[vmem] * 7,
        out_specs=(vmem, vmem),
    )(x2d, h0p, wx, wh, wo, bi, bo)

    outs = out_p[:, :O].reshape(T, B, O)
    hids = hid_p[:, :H].reshape(T, B, H)
    return outs, hids


def rnn_forward(x, h, w_i2h, b_i2h, w_h2o, b_h2o):
    """Single-step API matching the PyTorch module's forward(input, hidden)."""
    H = w_i2h.shape[0]
    O = w_h2o.shape[0]
    wx, wh, wo, bi, bo = prepare_params(w_i2h, b_i2h, w_h2o, b_h2o, x.shape[1])
    outs, hids = rnn_sequence_forward(x[None], h, wx, wh, wo, bi, bo, H, O)
    return outs[0], hids[0]


if __name__ == "__main__":
    # Make the pure-JAX reference use full-precision f32 matmuls so the
    # comparison against the kernel's MXU f32 accumulation is tight.
    jax.config.update("jax_default_matmul_precision", "highest")

    # Small shapes consistent with the module; batch=8 fills all 8 sublanes.
    T, B, I, H, O = 16, 8, 16, 32, 8

    key = jax.random.PRNGKey(0)
    k = jax.random.split(key, 6)

    # Deterministic synthetic parameters (PyTorch nn.Linear layout).
    w_i2h = jax.random.normal(k[0], (H, I + H), dtype=jnp.float32) * 0.1
    b_i2h = jax.random.normal(k[1], (H,), dtype=jnp.float32) * 0.1
    w_h2o = jax.random.normal(k[2], (O, H), dtype=jnp.float32) * 0.1
    b_h2o = jax.random.normal(k[3], (O,), dtype=jnp.float32) * 0.1

    xs = jax.random.normal(k[4], (T, B, I), dtype=jnp.float32)
    h0 = jax.random.normal(k[5], (B, H), dtype=jnp.float32)

    wx, wh, wo, bi, bo = prepare_params(w_i2h, b_i2h, w_h2o, b_h2o, I)
    outs, hids = rnn_sequence_forward(xs, h0, wx, wh, wo, bi, bo, H, O)
    jax.block_until_ready((outs, hids))

    # Pure-JAX reference: the PyTorch forward applied step by step.
    h = h0
    ref_outs, ref_hids = [], []
    for t in range(T):
        h = jnp.concatenate([xs[t], h], axis=1) @ w_i2h.T + b_i2h
        logits = h @ w_h2o.T + b_h2o
        ref_outs.append(jax.nn.log_softmax(logits, axis=1))
        ref_hids.append(h)
    ref_outs = jnp.stack(ref_outs)
    ref_hids = jnp.stack(ref_hids)

    assert jnp.allclose(hids, ref_hids, atol=1e-4, rtol=1e-4), "hidden mismatch"
    assert jnp.allclose(outs, ref_outs, atol=1e-4, rtol=1e-4), "output mismatch"

    # Single-step API (exactly the module's forward signature) also works.
    out1, hid1 = rnn_forward(xs[0], h0, w_i2h, b_i2h, w_h2o, b_h2o)
    jax.block_until_ready((out1, hid1))
    assert jnp.allclose(hid1, ref_hids[0], atol=1e-4, rtol=1e-4), "step hidden mismatch"
    assert jnp.allclose(out1, ref_outs[0], atol=1e-4, rtol=1e-4), "step output mismatch"

    print("KERNEL_OK")
</pallas_src>

<mosaic_0001>
module attributes {stable_mosaic.version = 11 : i64} {
  func.func @rnn_fused_kernel(%arg0: memref<128x16xf32, #tpu.memory_space<vmem>>, %arg1: memref<8x128xf32, #tpu.memory_space<vmem>>, %arg2: memref<16x128xf32, #tpu.memory_space<vmem>>, %arg3: memref<128x128xf32, #tpu.memory_space<vmem>>, %arg4: memref<128x128xf32, #tpu.memory_space<vmem>>, %arg5: memref<1x128xf32, #tpu.memory_space<vmem>>, %arg6: memref<1x128xf32, #tpu.memory_space<vmem>>, %arg7: memref<128x128xf32, #tpu.memory_space<vmem>>, %arg8: memref<128x128xf32, #tpu.memory_space<vmem>>) attributes {dimension_semantics = [], scalar_prefetch = 0 : i64, scratch_operands = 0 : i64, tpu.core_type = #tpu.core_type<tc>} {
    %c0 = arith.constant 0 : index
    %c0_0 = arith.constant 0 : index
    %0 = vector.load %arg0[%c0, %c0_0] : memref<128x16xf32, #tpu.memory_space<vmem>>, vector<128x16xf32>
    %c0_1 = arith.constant 0 : index
    %c0_2 = arith.constant 0 : index
    %1 = vector.load %arg2[%c0_1, %c0_2] : memref<16x128xf32, #tpu.memory_space<vmem>>, vector<16x128xf32>
    %cst = arith.constant dense<0.000000e+00> : vector<128x128xf32>
    %2 = tpu.matmul %0, %1, %cst {dimension_numbers = #tpu.dot_dimension_numbers<[1], [0], [0], [1], [0, 0, 1, 1], [], []>, precision = #tpu.contract_precision<fp32>} : vector<128x16xf32>, vector<16x128xf32>, vector<128x128xf32> -> vector<128x128xf32>
    %c0_3 = arith.constant 0 : index
    %c0_4 = arith.constant 0 : index
    %3 = vector.load %arg5[%c0_3, %c0_4] : memref<1x128xf32, #tpu.memory_space<vmem>>, vector<1x128xf32>
    %4 = vector.broadcast %3 : vector<1x128xf32> to vector<128x128xf32>
    %5 = arith.addf %2, %4 : vector<128x128xf32>
    %c0_5 = arith.constant 0 : index
    %c0_6 = arith.constant 0 : index
    %6 = vector.load %arg3[%c0_5, %c0_6] : memref<128x128xf32, #tpu.memory_space<vmem>>, vector<128x128xf32>
    %c0_7 = arith.constant 0 : index
    %c0_8 = arith.constant 0 : index
    %7 = vector.load %arg1[%c0_7, %c0_8] : memref<8x128xf32, #tpu.memory_space<vmem>>, vector<8x128xf32>
    %8 = vector.extract_strided_slice %5 {offsets = [0, 0], sizes = [8, 128], strides = [1, 1]} : vector<128x128xf32> to vector<8x128xf32>
    %cst_9 = arith.constant dense<0.000000e+00> : vector<8x128xf32>
    %9 = tpu.matmul %7, %6, %cst_9 {dimension_numbers = #tpu.dot_dimension_numbers<[1], [0], [0], [1], [0, 0, 1, 1], [], []>, precision = #tpu.contract_precision<fp32>} : vector<8x128xf32>, vector<128x128xf32>, vector<8x128xf32> -> vector<8x128xf32>
    %10 = arith.addf %8, %9 : vector<8x128xf32>
    %c0_10 = arith.constant 0 : index
    %c0_11 = arith.constant 0 : index
    %11 = vector.load %arg8[%c0_10, %c0_11] : memref<128x128xf32, #tpu.memory_space<vmem>>, vector<8x128xf32>
    tpu.vector_store %arg8[%c0_10, %c0_11], %10 {strides = array<i32>} : memref<128x128xf32, #tpu.memory_space<vmem>>, vector<8x128xf32>,
    %12 = vector.extract_strided_slice %5 {offsets = [8, 0], sizes = [8, 128], strides = [1, 1]} : vector<128x128xf32> to vector<8x128xf32>
    %cst_12 = arith.constant dense<0.000000e+00> : vector<8x128xf32>
    %13 = tpu.matmul %10, %6, %cst_12 {dimension_numbers = #tpu.dot_dimension_numbers<[1], [0], [0], [1], [0, 0, 1, 1], [], []>, precision = #tpu.contract_precision<fp32>} : vector<8x128xf32>, vector<128x128xf32>, vector<8x128xf32> -> vector<8x128xf32>
    %14 = arith.addf %12, %13 : vector<8x128xf32>
    %c8 = arith.constant 8 : index
    %c0_13 = arith.constant 0 : index
    %15 = vector.load %arg8[%c8, %c0_13] : memref<128x128xf32, #tpu.memory_space<vmem>>, vector<8x128xf32>
    tpu.vector_store %arg8[%c8, %c0_13], %14 {strides = array<i32>} : memref<128x128xf32, #tpu.memory_space<vmem>>, vector<8x128xf32>,
    %16 = vector.extract_strided_slice %5 {offsets = [16, 0], sizes = [8, 128], strides = [1, 1]} : vector<128x128xf32> to vector<8x128xf32>
    %cst_14 = arith.constant dense<0.000000e+00> : vector<8x128xf32>
    %17 = tpu.matmul %14, %6, %cst_14 {dimension_numbers = #tpu.dot_dimension_numbers<[1], [0], [0], [1], [0, 0, 1, 1], [], []>, precision = #tpu.contract_precision<fp32>} : vector<8x128xf32>, vector<128x128xf32>, vector<8x128xf32> -> vector<8x128xf32>
    %18 = arith.addf %16, %17 : vector<8x128xf32>
    %c16 = arith.constant 16 : index
    %c0_15 = arith.constant 0 : index
    %19 = vector.load %arg8[%c16, %c0_15] : memref<128x128xf32, #tpu.memory_space<vmem>>, vector<8x128xf32>
    tpu.vector_store %arg8[%c16, %c0_15], %18 {strides = array<i32>} : memref<128x128xf32, #tpu.memory_space<vmem>>, vector<8x128xf32>,
    %20 = vector.extract_strided_slice %5 {offsets = [24, 0], sizes = [8, 128], strides = [1, 1]} : vector<128x128xf32> to vector<8x128xf32>
    %cst_16 = arith.constant dense<0.000000e+00> : vector<8x128xf32>
    %21 = tpu.matmul %18, %6, %cst_16 {dimension_numbers = #tpu.dot_dimension_numbers<[1], [0], [0], [1], [0, 0, 1, 1], [], []>, precision = #tpu.contract_precision<fp32>} : vector<8x128xf32>, vector<128x128xf32>, vector<8x128xf32> -> vector<8x128xf32>
    %22 = arith.addf %20, %21 : vector<8x128xf32>
    %c24 = arith.constant 24 : index
    %c0_17 = arith.constant 0 : index
    %23 = vector.load %arg8[%c24, %c0_17] : memref<128x128xf32, #tpu.memory_space<vmem>>, vector<8x128xf32>
    tpu.vector_store %arg8[%c24, %c0_17], %22 {strides = array<i32>} : memref<128x128xf32, #tpu.memory_space<vmem>>, vector<8x128xf32>,
    %24 = vector.extract_strided_slice %5 {offsets = [32, 0], sizes = [8, 128], strides = [1, 1]} : vector<128x128xf32> to vector<8x128xf32>
    %cst_18 = arith.constant dense<0.000000e+00> : vector<8x128xf32>
    %25 = tpu.matmul %22, %6, %cst_18 {dimension_numbers = #tpu.dot_dimension_numbers<[1], [0], [0], [1], [0, 0, 1, 1], [], []>, precision = #tpu.contract_precision<fp32>} : vector<8x128xf32>, vector<128x128xf32>, vector<8x128xf32> -> vector<8x128xf32>
    %26 = arith.addf %24, %25 : vector<8x128xf32>
    %c32 = arith.constant 32 : index
    %c0_19 = arith.constant 0 : index
    %27 = vector.load %arg8[%c32, %c0_19] : memref<128x128xf32, #tpu.memory_space<vmem>>, vector<8x128xf32>
    tpu.vector_store %arg8[%c32, %c0_19], %26 {strides = array<i32>} : memref<128x128xf32, #tpu.memory_space<vmem>>, vector<8x128xf32>,
    %28 = vector.extract_strided_slice %5 {offsets = [40, 0], sizes = [8, 128], strides = [1, 1]} : vector<128x128xf32> to vector<8x128xf32>
    %cst_20 = arith.constant dense<0.000000e+00> : vector<8x128xf32>
    %29 = tpu.matmul %26, %6, %cst_20 {dimension_numbers = #tpu.dot_dimension_numbers<[1], [0], [0], [1], [0, 0, 1, 1], [], []>, precision = #tpu.contract_precision<fp32>} : vector<8x128xf32>, vector<128x128xf32>, vector<8x128xf32> -> vector<8x128xf32>
    %30 = arith.addf %28, %29 : vector<8x128xf32>
    %c40 = arith.constant 40 : index
    %c0_21 = arith.constant 0 : index
    %31 = vector.load %arg8[%c40, %c0_21] : memref<128x128xf32, #tpu.memory_space<vmem>>, vector<8x128xf32>
    tpu.vector_store %arg8[%c40, %c0_21], %30 {strides = array<i32>} : memref<128x128xf32, #tpu.memory_space<vmem>>, vector<8x128xf32>,
    %32 = vector.extract_strided_slice %5 {offsets = [48, 0], sizes = [8, 128], strides = [1, 1]} : vector<128x128xf32> to vector<8x128xf32>
    %cst_22 = arith.constant dense<0.000000e+00> : vector<8x128xf32>
    %33 = tpu.matmul %30, %6, %cst_22 {dimension_numbers = #tpu.dot_dimension_numbers<[1], [0], [0], [1], [0, 0, 1, 1], [], []>, precision = #tpu.contract_precision<fp32>} : vector<8x128xf32>, vector<128x128xf32>, vector<8x128xf32> -> vector<8x128xf32>
    %34 = arith.addf %32, %33 : vector<8x128xf32>
    %c48 = arith.constant 48 : index
    %c0_23 = arith.constant 0 : index
    %35 = vector.load %arg8[%c48, %c0_23] : memref<128x128xf32, #tpu.memory_space<vmem>>, vector<8x128xf32>
    tpu.vector_store %arg8[%c48, %c0_23], %34 {strides = array<i32>} : memref<128x128xf32, #tpu.memory_space<vmem>>, vector<8x128xf32>,
    %36 = vector.extract_strided_slice %5 {offsets = [56, 0], sizes = [8, 128], strides = [1, 1]} : vector<128x128xf32> to vector<8x128xf32>
    %cst_24 = arith.constant dense<0.000000e+00> : vector<8x128xf32>
    %37 = tpu.matmul %34, %6, %cst_24 {dimension_numbers = #tpu.dot_dimension_numbers<[1], [0], [0], [1], [0, 0, 1, 1], [], []>, precision = #tpu.contract_precision<fp32>} : vector<8x128xf32>, vector<128x128xf32>, vector<8x128xf32> -> vector<8x128xf32>
    %38 = arith.addf %36, %37 : vector<8x128xf32>
    %c56 = arith.constant 56 : index
    %c0_25 = arith.constant 0 : index
    %39 = vector.load %arg8[%c56, %c0_25] : memref<128x128xf32, #tpu.memory_space<vmem>>, vector<8x128xf32>
    tpu.vector_store %arg8[%c56, %c0_25], %38 {strides = array<i32>} : memref<128x128xf32, #tpu.memory_space<vmem>>, vector<8x128xf32>,
    %40 = vector.extract_strided_slice %5 {offsets = [64, 0], sizes = [8, 128], strides = [1, 1]} : vector<128x128xf32> to vector<8x128xf32>
    %cst_26 = arith.constant dense<0.000000e+00> : vector<8x128xf32>
    %41 = tpu.matmul %38, %6, %cst_26 {dimension_numbers = #tpu.dot_dimension_numbers<[1], [0], [0], [1], [0, 0, 1, 1], [], []>, precision = #tpu.contract_precision<fp32>} : vector<8x128xf32>, vector<128x128xf32>, vector<8x128xf32> -> vector<8x128xf32>
    %42 = arith.addf %40, %41 : vector<8x128xf32>
    %c64 = arith.constant 64 : index
    %c0_27 = arith.constant 0 : index
    %43 = vector.load %arg8[%c64, %c0_27] : memref<128x128xf32, #tpu.memory_space<vmem>>, vector<8x128xf32>
    tpu.vector_store %arg8[%c64, %c0_27], %42 {strides = array<i32>} : memref<128x128xf32, #tpu.memory_space<vmem>>, vector<8x128xf32>,
    %44 = vector.extract_strided_slice %5 {offsets = [72, 0], sizes = [8, 128], strides = [1, 1]} : vector<128x128xf32> to vector<8x128xf32>
    %cst_28 = arith.constant dense<0.000000e+00> : vector<8x128xf32>
    %45 = tpu.matmul %42, %6, %cst_28 {dimension_numbers = #tpu.dot_dimension_numbers<[1], [0], [0], [1], [0, 0, 1, 1], [], []>, precision = #tpu.contract_precision<fp32>} : vector<8x128xf32>, vector<128x128xf32>, vector<8x128xf32> -> vector<8x128xf32>
    %46 = arith.addf %44, %45 : vector<8x128xf32>
    %c72 = arith.constant 72 : index
    %c0_29 = arith.constant 0 : index
    %47 = vector.load %arg8[%c72, %c0_29] : memref<128x128xf32, #tpu.memory_space<vmem>>, vector<8x128xf32>
    tpu.vector_store %arg8[%c72, %c0_29], %46 {strides = array<i32>} : memref<128x128xf32, #tpu.memory_space<vmem>>, vector<8x128xf32>,
    %48 = vector.extract_strided_slice %5 {offsets = [80, 0], sizes = [8, 128], strides = [1, 1]} : vector<128x128xf32> to vector<8x128xf32>
    %cst_30 = arith.constant dense<0.000000e+00> : vector<8x128xf32>
    %49 = tpu.matmul %46, %6, %cst_30 {dimension_numbers = #tpu.dot_dimension_numbers<[1], [0], [0], [1], [0, 0, 1, 1], [], []>, precision = #tpu.contract_precision<fp32>} : vector<8x128xf32>, vector<128x128xf32>, vector<8x128xf32> -> vector<8x128xf32>
    %50 = arith.addf %48, %49 : vector<8x128xf32>
    %c80 = arith.constant 80 : index
    %c0_31 = arith.constant 0 : index
    %51 = vector.load %arg8[%c80, %c0_31] : memref<128x128xf32, #tpu.memory_space<vmem>>, vector<8x128xf32>
    tpu.vector_store %arg8[%c80, %c0_31], %50 {strides = array<i32>} : memref<128x128xf32, #tpu.memory_space<vmem>>, vector<8x128xf32>,
    %52 = vector.extract_strided_slice %5 {offsets = [88, 0], sizes = [8, 128], strides = [1, 1]} : vector<128x128xf32> to vector<8x128xf32>
    %cst_32 = arith.constant dense<0.000000e+00> : vector<8x128xf32>
    %53 = tpu.matmul %50, %6, %cst_32 {dimension_numbers = #tpu.dot_dimension_numbers<[1], [0], [0], [1], [0, 0, 1, 1], [], []>, precision = #tpu.contract_precision<fp32>} : vector<8x128xf32>, vector<128x128xf32>, vector<8x128xf32> -> vector<8x128xf32>
    %54 = arith.addf %52, %53 : vector<8x128xf32>
    %c88 = arith.constant 88 : index
    %c0_33 = arith.constant 0 : index
    %55 = vector.load %arg8[%c88, %c0_33] : memref<128x128xf32, #tpu.memory_space<vmem>>, vector<8x128xf32>
    tpu.vector_store %arg8[%c88, %c0_33], %54 {strides = array<i32>} : memref<128x128xf32, #tpu.memory_space<vmem>>, vector<8x128xf32>,
    %56 = vector.extract_strided_slice %5 {offsets = [96, 0], sizes = [8, 128], strides = [1, 1]} : vector<128x128xf32> to vector<8x128xf32>
    %cst_34 = arith.constant dense<0.000000e+00> : vector<8x128xf32>
    %57 = tpu.matmul %54, %6, %cst_34 {dimension_numbers = #tpu.dot_dimension_numbers<[1], [0], [0], [1], [0, 0, 1, 1], [], []>, precision = #tpu.contract_precision<fp32>} : vector<8x128xf32>, vector<128x128xf32>, vector<8x128xf32> -> vector<8x128xf32>
    %58 = arith.addf %56, %57 : vector<8x128xf32>
    %c96 = arith.constant 96 : index
    %c0_35 = arith.constant 0 : index
    %59 = vector.load %arg8[%c96, %c0_35] : memref<128x128xf32, #tpu.memory_space<vmem>>, vector<8x128xf32>
    tpu.vector_store %arg8[%c96, %c0_35], %58 {strides = array<i32>} : memref<128x128xf32, #tpu.memory_space<vmem>>, vector<8x128xf32>,
    %60 = vector.extract_strided_slice %5 {offsets = [104, 0], sizes = [8, 128], strides = [1, 1]} : vector<128x128xf32> to vector<8x128xf32>
    %cst_36 = arith.constant dense<0.000000e+00> : vector<8x128xf32>
    %61 = tpu.matmul %58, %6, %cst_36 {dimension_numbers = #tpu.dot_dimension_numbers<[1], [0], [0], [1], [0, 0, 1, 1], [], []>, precision = #tpu.contract_precision<fp32>} : vector<8x128xf32>, vector<128x128xf32>, vector<8x128xf32> -> vector<8x128xf32>
    %62 = arith.addf %60, %61 : vector<8x128xf32>
    %c104 = arith.constant 104 : index
    %c0_37 = arith.constant 0 : index
    %63 = vector.load %arg8[%c104, %c0_37] : memref<128x128xf32, #tpu.memory_space<vmem>>, vector<8x128xf32>
    tpu.vector_store %arg8[%c104, %c0_37], %62 {strides = array<i32>} : memref<128x128xf32, #tpu.memory_space<vmem>>, vector<8x128xf32>,
    %64 = vector.extract_strided_slice %5 {offsets = [112, 0], sizes = [8, 128], strides = [1, 1]} : vector<128x128xf32> to vector<8x128xf32>
    %cst_38 = arith.constant dense<0.000000e+00> : vector<8x128xf32>
    %65 = tpu.matmul %62, %6, %cst_38 {dimension_numbers = #tpu.dot_dimension_numbers<[1], [0], [0], [1], [0, 0, 1, 1], [], []>, precision = #tpu.contract_precision<fp32>} : vector<8x128xf32>, vector<128x128xf32>, vector<8x128xf32> -> vector<8x128xf32>
    %66 = arith.addf %64, %65 : vector<8x128xf32>
    %c112 = arith.constant 112 : index
    %c0_39 = arith.constant 0 : index
    %67 = vector.load %arg8[%c112, %c0_39] : memref<128x128xf32, #tpu.memory_space<vmem>>, vector<8x128xf32>
    tpu.vector_store %arg8[%c112, %c0_39], %66 {strides = array<i32>} : memref<128x128xf32, #tpu.memory_space<vmem>>, vector<8x128xf32>,
    %68 = vector.extract_strided_slice %5 {offsets = [120, 0], sizes = [8, 128], strides = [1, 1]} : vector<128x128xf32> to vector<8x128xf32>
    %cst_40 = arith.constant dense<0.000000e+00> : vector<8x128xf32>
    %69 = tpu.matmul %66, %6, %cst_40 {dimension_numbers = #tpu.dot_dimension_numbers<[1], [0], [0], [1], [0, 0, 1, 1], [], []>, precision = #tpu.contract_precision<fp32>} : vector<8x128xf32>, vector<128x128xf32>, vector<8x128xf32> -> vector<8x128xf32>
    %70 = arith.addf %68, %69 : vector<8x128xf32>
    %c120 = arith.constant 120 : index
    %c0_41 = arith.constant 0 : index
    %71 = vector.load %arg8[%c120, %c0_41] : memref<128x128xf32, #tpu.memory_space<vmem>>, vector<8x128xf32>
    tpu.vector_store %arg8[%c120, %c0_41], %70 {strides = array<i32>} : memref<128x128xf32, #tpu.memory_space<vmem>>, vector<8x128xf32>,
    %c0_42 = arith.constant 0 : index
    %c0_43 = arith.constant 0 : index
    %72 = vector.load %arg8[%c0_42, %c0_43] : memref<128x128xf32, #tpu.memory_space<vmem>>, vector<128x128xf32>
    %c0_44 = arith.constant 0 : index
    %c0_45 = arith.constant 0 : index
    %73 = vector.load %arg4[%c0_44, %c0_45] : memref<128x128xf32, #tpu.memory_space<vmem>>, vector<128x128xf32>
    %cst_46 = arith.constant dense<0.000000e+00> : vector<128x128xf32>
    %74 = tpu.matmul %72, %73, %cst_46 {dimension_numbers = #tpu.dot_dimension_numbers<[1], [0], [0], [1], [0, 0, 1, 1], [], []>, precision = #tpu.contract_precision<fp32>} : vector<128x128xf32>, vector<128x128xf32>, vector<128x128xf32> -> vector<128x128xf32>
    %c0_47 = arith.constant 0 : index
    %c0_48 = arith.constant 0 : index
    %75 = vector.load %arg6[%c0_47, %c0_48] : memref<1x128xf32, #tpu.memory_space<vmem>>, vector<1x128xf32>
    %76 = vector.broadcast %75 : vector<1x128xf32> to vector<128x128xf32>
    %77 = arith.addf %74, %76 : vector<128x128xf32>
    %cst_49 = arith.constant dense<0xFF800000> : vector<128xf32>
    %78 = vector.multi_reduction <maximumf>, %77, %cst_49 [1] : vector<128x128xf32> to vector<128xf32>
    %79 = vector.shape_cast %78 : vector<128xf32> to vector<128x1xf32>
    %80 = vector.broadcast %79 : vector<128x1xf32> to vector<128x128xf32>
    %81 = arith.subf %77, %80 : vector<128x128xf32>
    %82 = math.exp %81 : vector<128x128xf32>
    %cst_50 = arith.constant dense<0.000000e+00> : vector<128xf32>
    %83 = vector.multi_reduction <add>, %82, %cst_50 [1] : vector<128x128xf32> to vector<128xf32>
    %84 = vector.shape_cast %83 : vector<128xf32> to vector<128x1xf32>
    %85 = math.log %84 : vector<128x1xf32>
    %86 = vector.broadcast %85 : vector<128x1xf32> to vector<128x128xf32>
    %87 = arith.subf %81, %86 : vector<128x128xf32>
    %c0_51 = arith.constant 0 : index
    %c0_52 = arith.constant 0 : index
    %88 = vector.load %arg7[%c0_51, %c0_52] : memref<128x128xf32, #tpu.memory_space<vmem>>, vector<128x128xf32>
    tpu.vector_store %arg7[%c0_51, %c0_52], %87 {strides = array<i32>} : memref<128x128xf32, #tpu.memory_space<vmem>>, vector<128x128xf32>,
    return
  }
}

</mosaic_0001>

<bundles_post_ra>
// kernel: rnn_sequence_forward.1
= control target key start
LH: loop header
LB: loop body
LE: loop exit
PB: predicated region body
PF: predicated region fallthrough
CT: control target
= control target key end

     0   :  { %14 = vsyncpa [#allocation3], 0  ;;  %s25143_s0 = inlined_call_operand.hbm [shape: f32[128,16], index: 0, kind: input, shape index: {}]   ;;  %s25144_s1 = inlined_call_operand.vmem [shape: f32[8,128], index: 1, kind: input, shape index: {}]   ;;  %s25145_s2 = inlined_call_operand.vmem [shape: f32[16,128], index: 2, kind: input, shape index: {}]   ;;  %s25146_s3 = inlined_call_operand.hbm [shape: f32[128,128], index: 3, kind: input, shape index: {}]   ;;  %s25147_s4 = inlined_call_operand.hbm [shape: f32[128,128], index: 4, kind: input, shape index: {}]   ;;  %s25148_s5 = inlined_call_operand.vmem [shape: f32[1,128], index: 5, kind: input, shape index: {}]   ;;  %s25149_s6 = inlined_call_operand.vmem [shape: f32[1,128], index: 6, kind: input, shape index: {}]   ;;  %s25150_s7 = inlined_call_operand.vmem [shape: f32[128,128], index: 7, kind: output, shape index: {0}]   ;;  %s25151_s8 = inlined_call_operand.vmem [shape: f32[128,128], index: 8, kind: output, shape index: {1}]  }
   0x1   :  { %15 = vsyncpa [#allocation5], 0  ;;  %s21874_s27 = smov [#allocation4]   ;;  %s21875_s29 = smov [#allocation2]  }
   0x2   :  { %s37_s28 = sshll.u32 %s21874_s27, 4  ;;  %s21_s30 = sshll.u32 %s21875_s29, 4  ;;  %s38_s28 = int_to_ptr.vmem [resolvable:$true] %s37_s28  ;;  %s21927_s30 = int_to_ptr.vmem [resolvable:$true] %s21_s30 }
   0x3   :  { %s21804_s11 = scalar_lea.hbm %s25146_s3, 2048 }
   0x4   :  { %p21805_p0 = scmp.ne.s32.totalorder %s25146_s3, %s21804_s11  ;;  %p21808_p1 = scmp.lt.u32.totalorder %s21804_s11, %s25146_s3 }
   0x6   :  { %p21810_p2 = pnand %p21808_p1, %p21805_p0 }
   0x8   :  { %21813 = shalt.err (!%p21810_p2)
}
   0x9   :  { %s21814_s16 = scalar_lea.vmem %s38_s28, 2048  ;;  %p21819_p4 = scmp.lt.s32.totalorder %s38_s28, %s38_s28 }
   0xa   :  { %p21815_p3 = scmp.ne.s32.totalorder %s38_s28, %s21814_s16  ;;  %p21820_p5 = scmp.lt.s32.totalorder %s21814_s16, %s21814_s16 }
   0xc   :  { %p21821_p6 = por %p21820_p5, %p21819_p4 }
   0xe   :  { %p21822_p7 = pnand %p21821_p6, %p21815_p3 }
  0x10   :  { %21825 = shalt.err (!%p21822_p7)
}
  0x11   :  { %s21876_s17 = smov 128   ;;  %s21877_s18 = smov 8  }
  0x12   :  { %43 = dma.hbm_to_vmem [thread:$0]  %s25146_s3, 2048, %s38_s28, [#allocation5], %s21876_s17, %s21876_s17, %s21877_s18  }
  0x13   :  { %s21826_s23 = scalar_lea.hbm %s25143_s0, 2048 }
  0x14   :  { %p21827_p8 = scmp.ne.s32.totalorder %s25143_s0, %s21826_s23  ;;  %p21830_p9 = scmp.lt.u32.totalorder %s21826_s23, %s25143_s0 }
  0x16   :  { %p21832_p10 = pnand %p21830_p9, %p21827_p8 }
  0x18   :  { %21835 = shalt.err (!%p21832_p10)
}
  0x19   :  { %s21836_s29 = scalar_lea.vmem %s21927_s30, 2048  ;;  %p21841_p12 = scmp.lt.s32.totalorder %s21927_s30, %s21927_s30 }
  0x1a   :  { %p21837_p11 = scmp.ne.s32.totalorder %s21927_s30, %s21836_s29  ;;  %p21842_p13 = scmp.lt.s32.totalorder %s21836_s29, %s21836_s29 }
  0x1c   :  { %p21843_p0 = por %p21842_p13, %p21841_p12 }
  0x1e   :  { %p21844_p1 = pnand %p21843_p0, %p21837_p11 }
  0x20   :  { %21847 = shalt.err (!%p21844_p1)
}
  0x21   :  { %27 = dma.hbm_to_vmem [thread:$0]  %s25143_s0, 2048, %s21927_s30, [#allocation3], %s21876_s17, %s21876_s17, %s21877_s18  }
  0x22   :  { %s21878_s9 = smov [#allocation6]   ;;  %s21848_s13 = scalar_lea.hbm %s25147_s4, 2048 }
  0x23   :  { %s49_s10 = sshll.u32 %s21878_s9, 4  ;;  %p21849_p2 = scmp.ne.s32.totalorder %s25147_s4, %s21848_s13  ;;  %s50_s10 = int_to_ptr.vmem [resolvable:$true] %s49_s10 }
  0x24   :  { %p21852_p3 = scmp.lt.u32.totalorder %s21848_s13, %s25147_s4 }
  0x26   :  { %p21854_p4 = pnand %p21852_p3, %p21849_p2 }
  0x28   :  { %21857 = shalt.err (!%p21854_p4)
}
  0x29   :  { %s21858_s20 = scalar_lea.vmem %s50_s10, 2048  ;;  %p21863_p6 = scmp.lt.s32.totalorder %s50_s10, %s50_s10 }
  0x2a   :  { %p21859_p5 = scmp.ne.s32.totalorder %s50_s10, %s21858_s20  ;;  %p21864_p7 = scmp.lt.s32.totalorder %s21858_s20, %s21858_s20 }
  0x2c   :  { %p21865_p8 = por %p21864_p7, %p21863_p6 }
  0x2e   :  { %p21866_p9 = pnand %p21865_p8, %p21859_p5 }
  0x30   :  { %21869 = shalt.err (!%p21866_p9)
}
  0x31   :  { %55 = dma.hbm_to_vmem [thread:$0]  %s25147_s4, 2048, %s50_s10, [#allocation5], %s21876_s17, %s21876_s17, %s21877_s18  }
  0x32   :  { %21870 = dma.done.wait [#allocation3], 2048  }
  0x33   :  { %21871 = vsyncadd [#allocation3], 4294965248 }
  0x34   :  { %21872 = dma.done.wait [#allocation5], 4096  }
  0x35   :  { %21873 = vsyncadd [#allocation5], 4294963200  ;;  %vm94_vm0 = vcmask 130048   ;;  %v85_v0 = vld [vmem:[%s25145_s2] sm:$0xff]  ;;  %v86_v1 = vld [vmem:[%s25145_s2 + $0x8] sm:$0xff]  ;;  %v25179_v31 = vmov 0.0|0.0  }
  0x36   :  { %v69_v2 = vld [vmem:[#allocation2] sm:$0xff]  ;;  %v144_v3 = vand.u32 4294901760, %v85_v0  ;;  %v147_v4 = vand.u32 4294901760, %v86_v1  ;;  %v70_v6 = vld [vmem:[#allocation2 + $0x8] sm:$0xff]  ;;  %v71_v13 = vld [vmem:[#allocation2 + $0x10] sm:$0xff]  ;;  %vm21880_vm1 = vmmov 0  }
  0x37   :  { %v96_v5 = vsel %vm94_vm0, %v69_v2, 0  ;;  %v1247_v7 = vld [vmem:[#allocation4] sm:$0xff]  ;;  %v1248_v8 = vld [vmem:[#allocation4 + $0x8] sm:$0xff]  ;;  %v99_v10 = vsel %vm94_vm0, %v70_v6, 0  ;;  %v72_v22 = vld [vmem:[#allocation2 + $0x18] sm:$0xff]  ;;  %v102_v26 = vsel %vm94_vm0, %v71_v13, 0 }
  0x38   :  { %v21986_v9 = vand.u32 4294901760, %v96_v5  ;;  %v1265_v11 = vand.u32 4294901760, %v1247_v7  ;;  %v1268_v12 = vand.u32 4294901760, %v1248_v8  ;;  %v21989_v14 = vpack.c.bf16 %v147_v4, %v144_v3  ;;  %v1249_v44 = vld [vmem:[#allocation4 + $0x10] sm:$0xff]  ;;  %v1250_v45 = vld [vmem:[#allocation4 + $0x18] sm:$0xff]  ;;  %v73_v46 = vld [vmem:[#allocation2 + $0x20] sm:$0xff] }
  0x39   :  { %v21991_v15 = vand.u32 4294901760, %v99_v10  ;;  %v21993_v16 = vsub.f32 %v85_v0, %v144_v3  ;;  %v21995_v17 = vsub.f32 %v86_v1, %v147_v4  ;;  %v22018_v30 = vand.u32 4294901760, %v102_v26  ;;  %v74_v51 = vld [vmem:[#allocation2 + $0x28] sm:$0xff]  ;;  %v1251_v52 = vld [vmem:[#allocation4 + $0x20] sm:$0xff]  ;;  %v75_v2 = vld [vmem:[#allocation2 + $0x30] sm:$0xff] }
  0x3a   :  { %v21998_v18 = vsub.f32 %v96_v5, %v21986_v9  ;;  %v22000_v19 = vpack.c.bf16 %v1268_v12, %v1265_v11  ;;  %v22002_v20 = vsub.f32 %v1247_v7, %v1265_v11  ;;  %v22004_v21 = vsub.f32 %v1248_v8, %v1268_v12  ;;  %15029 = vmatprep.mubr.f32.mxu0 %v21986_v9  ;;  %v1252_v61 = vld [vmem:[#allocation4 + $0x28] sm:$0xff] }
  0x3b   :  { %18862 = vmatprep.subr.bf16.mxu1 %v21989_v14  ;;  %v22009_v23 = vsub.f32 %v99_v10, %v21991_v15  ;;  %v25172_v24 = vand.u32 4294901760, %v21993_v16  ;;  %v25171_v25 = vand.u32 4294901760, %v21995_v17  ;;  %v105_v35 = vsel %vm94_vm0, %v72_v22, 0 }
  0x3c   :  { %18864 = vmatpush3.bf16.msra.mxu1 %v21989_v14  ;;  %v25159_v27 = vand.u32 4294901760, %v21998_v18  ;;  %v25168_v28 = vand.u32 4294901760, %v22002_v20  ;;  %v25167_v29 = vand.u32 4294901760, %v22004_v21  ;;  %v22039_v39 = vsub.f32 %v102_v26, %v22018_v30 }
  0x3d   :  { %18909 = vmatprep.subr.bf16.mxu1 %v25179_v31  ;;  %v25158_v32 = vand.u32 4294901760, %v22009_v23  ;;  %v374_v33 = vsub.f32 %v21993_v16, %v25172_v24  ;;  %v381_v34 = vsub.f32 %v21995_v17, %v25171_v25  ;;  %v22044_v43 = vand.u32 4294901760, %v105_v35 }
  0x3e   :  { %v213_v36 = vsub.f32 %v21998_v18, %v25159_v27  ;;  %v1359_v37 = vsub.f32 %v22002_v20, %v25168_v28  ;;  %v1366_v38 = vsub.f32 %v22004_v21, %v25167_v29  ;;  %v25157_v50 = vand.u32 4294901760, %v22039_v39 }
  0x3f   :  { %v223_v40 = vsub.f32 %v22009_v23, %v25158_v32  ;;  %v375_v41 = vand.u32 4294901760, %v374_v33  ;;  %v382_v42 = vand.u32 4294901760, %v381_v34  ;;  %25339 = vst [vmem:[#allocation9_spill] sm:$0xff] %v22044_v43  ;;  %v22048_v55 = vsub.f32 %v105_v35, %v22044_v43  ;;  %v76_v33 = vld [vmem:[#allocation2 + $0x38] sm:$0xff]  ;;  %v1257_v32 = vld [vmem:[#allocation4 + $0x50] sm:$0xff] }
  0x40   :  { %v214_v47 = vand.u32 4294901760, %v213_v36  ;;  %v1360_v48 = vand.u32 4294901760, %v1359_v37  ;;  %v1367_v49 = vand.u32 4294901760, %v1366_v38  ;;  %v18869_v56 = vpack.c.bf16 %v21995_v17, %v21993_v16 }
  0x41   :  { %v224_v53 = vand.u32 4294901760, %v223_v40  ;;  %v18865_v54 = vpack.c.bf16 %v382_v42, %v375_v41  ;;  %v233_v58 = vsub.f32 %v22039_v39, %v25157_v50  ;;  %v1271_v59 = vand.u32 4294901760, %v1249_v44  ;;  %v80_v50 = vld [vmem:[#allocation2 + $0x58] sm:$0xff] }
  0x42   :  { %15001 = vmatprep.mubr.f32.mxu1 %v214_v47  ;;  %v22052_v57 = vpack.c.bf16 %v1367_v49, %v1360_v48  ;;  %v1274_v60 = vand.u32 4294901760, %v1250_v45  ;;  %v25155_v62 = vand.u32 4294901760, %v22048_v55  ;;  %v108_v63 = vsel %vm94_vm0, %v73_v46, 0  ;;  %v1253_v48 = vld [vmem:[#allocation4 + $0x30] sm:$0xff] }
  0x43   :  { %15002 = vmatmul.mubr.f32.vlgmr.msra.gmra.mrb[0].mxu1 %v224_v53  ;;  %18866 = vmatprep.subr.bf16.mxu0 %v18865_v54  ;;  %v111_v0 = vsel %vm94_vm0, %v74_v51, 0  ;;  %v1277_v1 = vand.u32 4294901760, %v1251_v52  ;;  %v234_v3 = vand.u32 4294901760, %v233_v58  ;;  %v22063_v5 = vsub.f32 %v1249_v44, %v1271_v59 }
  0x44   :  { %25340 = vst [vmem:[#allocation10_spill] sm:$0xff] %v22052_v57  ;;  %18911 = vmatpush3.bf16.msra.mxu1 %v22052_v57  ;;  %18868 = vmatpush3.bf16.msra.mxu0 %v18865_v54  ;;  %v22061_v4 = vpack.c.bf16 %v1274_v60, %v1271_v59  ;;  %v22065_v6 = vsub.f32 %v1250_v45, %v1274_v60  ;;  %v22071_v8 = vand.u32 4294901760, %v108_v63  ;;  %v22073_v10 = vand.u32 4294901760, %v111_v0  ;;  %v1254_v60 = vld [vmem:[#allocation4 + $0x38] sm:$0xff] }
  0x45   :  { %18912 = vmatprep.subr.bf16.mxu1 %v25179_v31  ;;  %v243_v7 = vsub.f32 %v22048_v55, %v25155_v62  ;;  %18870 = vmatprep.subr.bf16.mxu0 %v18869_v56  ;;  %v1280_v11 = vand.u32 4294901760, %v1252_v61  ;;  %v25166_v12 = vand.u32 4294901760, %v22063_v5  ;;  %v22077_v22 = vsub.f32 %v1251_v52, %v1277_v1 }
  0x46   :  { %25341 = vst [vmem:[#allocation11_spill] sm:$0xff] %v22071_v8  ;;  %25342 = vst [vmem:[#allocation12_spill] sm:$0xff] %v22073_v10  ;;  %15004 = vmatprep.mubr.f32.mxu1 %v234_v3  ;;  %v25164_v13 = vand.u32 4294901760, %v22065_v6  ;;  %v114_v26 = vsel %vm94_vm0, %v75_v2, 0  ;;  %v22082_v35 = vsub.f32 %v108_v63, %v22071_v8  ;;  %v22085_v36 = vsub.f32 %v111_v0, %v22073_v10  ;;  %v78_v3 = vld [vmem:[#allocation2 + $0x48] sm:$0xff] }
  0x47   :  { %v244_v34 = vand.u32 4294901760, %v243_v7  ;;  %15030 = vmatmul.mubr.f32.vlgmr.msra.gmra.mrb[0].mxu0 %v21991_v15  ;;  %v22087_v37 = vpack.c.bf16 %v1280_v11, %v1277_v1  ;;  %v1373_v38 = vsub.f32 %v22063_v5, %v25166_v12  ;;  %v25163_v41 = vand.u32 4294901760, %v22077_v22 }
  0x48   :  { %v1380_v40 = vsub.f32 %v22065_v6, %v25164_v13  ;;  %18872 = vmatpush3.bf16.msra.mxu0 %v18869_v56  ;;  %15032 = vmatprep.mubr.f32.mxu0 %v22018_v30  ;;  %v22097_v42 = vsub.f32 %v1252_v61, %v1280_v11  ;;  %v25154_v44 = vand.u32 4294901760, %v22082_v35  ;;  %v25152_v45 = vand.u32 4294901760, %v22085_v36  ;;  %v77_v61 = vld [vmem:[#allocation2 + $0x40] sm:$0xff] }
  0x49   :  { %15005 = vmatmul.mubr.f32.gmra.mrb[2].mxu1 %v244_v34  ;;  %v22101_v46 = vand.u32 4294901760, %v114_v26  ;;  %v117_v47 = vsel %vm94_vm0, %v76_v33, 0  ;;  %18874 = vmatprep.subr.bf16.mxu0 %v21989_v14  ;;  %v1374_v49 = vand.u32 4294901760, %v1373_v38  ;;  %v1387_v52 = vsub.f32 %v22077_v22, %v25163_v41 }
  0x4a   :  { %v1381_v51 = vand.u32 4294901760, %v1380_v40  ;;  %v25161_v53 = vand.u32 4294901760, %v22097_v42  ;;  %v253_v54 = vsub.f32 %v22082_v35, %v25154_v44  ;;  %v263_v56 = vsub.f32 %v22085_v36, %v25152_v45 }
  0x4b   :  { %25343 = vst [vmem:[#allocation13_spill] sm:$0xff] %v22101_v46  ;;  %15033 = vmatmul.mubr.f32.gmra.mrb[2].mxu0 %v22044_v43  ;;  %v22117_v58 = vsub.f32 %v114_v26, %v22101_v46  ;;  %v22119_v59 = vand.u32 4294901760, %v117_v47  ;;  %v1388_v0 = vand.u32 4294901760, %v1387_v52  ;;  %v1283_v2 = vand.u32 4294901760, %v1253_v48 }
  0x4c   :  { %v22121_v63 = vpack.c.bf16 %v1381_v51, %v1374_v49  ;;  %v1394_v1 = vsub.f32 %v22097_v42, %v25161_v53  ;;  %15035 = vmatprep.mubr.f32.mxu0 %v22071_v8  ;;  %v254_v7 = vand.u32 4294901760, %v253_v54  ;;  %v264_v11 = vand.u32 4294901760, %v263_v56  ;;  %v1255_v56 = vld [vmem:[#allocation4 + $0x40] sm:$0xff] }
  0x4d   :  { %25344 = vst [vmem:[#allocation14_spill] sm:$0xff] %v22119_v59  ;;  %v25153_v26 = vand.u32 4294901760, %v22117_v58  ;;  %v22129_v33 = vsub.f32 %v117_v47, %v22119_v59  ;;  %v1286_v38 = vand.u32 4294901760, %v1254_v60  ;;  %v22132_v40 = vsub.f32 %v1253_v48, %v1283_v2 }
  0x4e   :  { %25345 = vst [vmem:[#allocation15_spill] sm:$0xff] %v22121_v63  ;;  %18914 = vmatpush3.bf16.msra.mxu1 %v22121_v63  ;;  %v1395_v34 = vand.u32 4294901760, %v1394_v1  ;;  %v120_v49 = vsel %vm94_vm0, %v77_v61, 0  ;;  %15007 = vmatprep.mubr.f32.mxu1 %v254_v7  ;;  %v123_v47 = vsel %vm94_vm0, %v78_v3, 0  ;;  %v1256_v1 = vld [vmem:[#allocation4 + $0x48] sm:$0xff]  ;;  %v25368_v43 = vand.u32 4294901760, %v22065_v6 }
  0x4f   :  { %18915 = vmatprep.subr.bf16.mxu1 %v25179_v31  ;;  %v273_v51 = vsub.f32 %v22117_v58, %v25153_v26  ;;  %v25156_v52 = vand.u32 4294901760, %v22129_v33  ;;  %v22140_v54 = vand.u32 4294901760, %v120_v49  ;;  %15008 = vmatmul.mubr.f32.gmra.mrb[4].mxu1 %v264_v11  ;;  %v22146_v61 = vpack.c.bf16 %v1286_v38, %v1283_v2  ;;  %v79_v26 = vld [vmem:[#allocation2 + $0x50] sm:$0xff] }
  0x50   :  { %v22143_v48 = vpack.c.bf16 %v1395_v34, %v1388_v0  ;;  %15036 = vmatmul.mubr.f32.gmra.mrb[4].mxu0 %v22073_v10  ;;  %v25160_v7 = vand.u32 4294901760, %v22132_v40  ;;  %v22149_v45 = vsub.f32 %v1254_v60, %v1286_v38  ;;  %v22158_v0 = vand.u32 4294901760, %v123_v47 }
  0x51   :  { %25346 = vst [vmem:[#allocation16_spill] sm:$0xff] %v22140_v54  ;;  %v274_v44 = vand.u32 4294901760, %v273_v51  ;;  %v283_v62 = vsub.f32 %v22129_v33, %v25156_v52  ;;  %v22155_v3 = vsub.f32 %v120_v49, %v22140_v54  ;;  %15038 = vmatprep.mubr.f32.mxu0 %v22101_v46  ;;  %v1289_v11 = vand.u32 4294901760, %v1255_v56 }
  0x52   :  { %25347 = vst [vmem:[#allocation17_spill] sm:$0xff] %v22143_v48  ;;  %25348 = vst [vmem:[#allocation18_spill] sm:$0xff] %v22158_v0  ;;  %18917 = vmatpush3.bf16.msra.mxu1 %v22143_v48  ;;  %v1401_v60 = vsub.f32 %v22132_v40, %v25160_v7  ;;  %v25162_v2 = vand.u32 4294901760, %v22149_v45  ;;  %v1292_v34 = vand.u32 4294901760, %v1256_v1  ;;  %v22168_v51 = vsub.f32 %v123_v47, %v22158_v0 }
  0x53   :  { %15010 = vmatprep.mubr.f32.mxu1 %v274_v44  ;;  %18918 = vmatprep.subr.bf16.mxu1 %v25179_v31  ;;  %v284_v38 = vand.u32 4294901760, %v283_v62  ;;  %v25165_v49 = vand.u32 4294901760, %v22155_v3  ;;  %v126_v52 = vsel %vm94_vm0, %v79_v26, 0  ;;  %v22177_v53 = vsub.f32 %v1255_v56, %v1289_v11 }
  0x54   :  { %v1402_v27 = vand.u32 4294901760, %v1401_v60  ;;  %v1408_v7 = vsub.f32 %v22149_v45, %v25162_v2  ;;  %15039 = vmatmul.mubr.f32.gmra.mrb[6].mxu0 %v22119_v59  ;;  %v22175_v44 = vpack.c.bf16 %v1292_v34, %v1289_v11  ;;  %v25169_v26 = vand.u32 4294901760, %v22168_v51  ;;  %v1258_v2 = vld [vmem:[#allocation4 + $0x58] sm:$0xff] }
  0x55   :  { %15011 = vmatmul.mubr.f32.gmra.mrb[6].mxu1 %v284_v38  ;;  %v293_v62 = vsub.f32 %v22155_v3, %v25165_v49  ;;  %v22183_v47 = vsub.f32 %v1256_v1, %v1292_v34  ;;  %v22185_v60 = vand.u32 4294901760, %v126_v52  ;;  %15041 = vmatprep.mubr.f32.mxu0 %v22140_v54  ;;  %v25170_v13 = vand.u32 4294901760, %v22177_v53 }
  0x56   :  { %v1409_v41 = vand.u32 4294901760, %v1408_v7  ;;  %v129_v56 = vsel %vm94_vm0, %v80_v50, 0  ;;  %v1295_v11 = vand.u32 4294901760, %v1257_v32  ;;  %v303_v49 = vsub.f32 %v22168_v51, %v25169_v26 }
  0x57   :  { %25349 = vst [vmem:[#allocation19_spill] sm:$0xff] %v22185_v60  ;;  %v294_v38 = vand.u32 4294901760, %v293_v62  ;;  %v25173_v12 = vand.u32 4294901760, %v22183_v47  ;;  %v22195_v1 = vsub.f32 %v126_v52, %v22185_v60  ;;  %v1415_v7 = vsub.f32 %v22177_v53, %v25170_v13  ;;  %v81_v62 = vld [vmem:[#allocation2 + $0x60] sm:$0xff] }
  0x58   :  { %v22197_v34 = vpack.c.bf16 %v1409_v41, %v1402_v27  ;;  %v22202_v29 = vand.u32 4294901760, %v129_v56  ;;  %15042 = vmatmul.mubr.f32.gmra.mrb[8].mxu0 %v22158_v0  ;;  %v1298_v50 = vand.u32 4294901760, %v1258_v2  ;;  %v304_v28 = vand.u32 4294901760, %v303_v49  ;;  %v82_v41 = vld [vmem:[#allocation2 + $0x68] sm:$0xff] }
  0x59   :  { %15013 = vmatprep.mubr.f32.mxu1 %v294_v38  ;;  %v1422_v26 = vsub.f32 %v22183_v47, %v25173_v12  ;;  %v25178_v52 = vand.u32 4294901760, %v22195_v1  ;;  %v22209_v27 = vsub.f32 %v1257_v32, %v1295_v11  ;;  %15044 = vmatprep.mubr.f32.mxu0 %v22185_v60  ;;  %v1416_v13 = vand.u32 4294901760, %v1415_v7  ;;  %v1259_v7 = vld [vmem:[#allocation4 + $0x60] sm:$0xff] }
  0x5a   :  { %25350 = vst [vmem:[#allocation20_spill] sm:$0xff] %v22197_v34  ;;  %25351 = vst [vmem:[#allocation21_spill] sm:$0xff] %v22202_v29  ;;  %18920 = vmatpush3.bf16.msra.mxu1 %v22197_v34  ;;  %v22214_v25 = vsub.f32 %v129_v56, %v22202_v29  ;;  %v22216_v24 = vpack.c.bf16 %v1298_v50, %v1295_v11  ;;  %v22218_v49 = vsub.f32 %v1258_v2, %v1298_v50  ;;  %v25356_v60 = vmov 0.0|0.0  }
  0x5b   :  { %18921 = vmatprep.subr.bf16.mxu1 %v25179_v31  ;;  %15014 = vmatmul.mubr.f32.gmra.mrb[8].mxu1 %v304_v28  ;;  %v1423_v38 = vand.u32 4294901760, %v1422_v26  ;;  %v313_v32 = vsub.f32 %v22195_v1, %v25178_v52  ;;  %v25185_v12 = vand.u32 4294901760, %v22209_v27  ;;  %v132_v34 = vsel %vm94_vm0, %v81_v62, 0  ;;  %v1260_v28 = vld [vmem:[#allocation4 + $0x68] sm:$0xff]  ;;  %v83_v26 = vld [vmem:[#allocation2 + $0x70] sm:$0xff] }
  0x5c   :  { %v25186_v56 = vand.u32 4294901760, %v22214_v25  ;;  %v22228_v48 = vand.u32 4294901760, %v132_v34  ;;  %v135_v2 = vsel %vm94_vm0, %v82_v41, 0  ;;  %15045 = vmatmul.mubr.f32.gmra.mrb[10].mxu0 %v22202_v29  ;;  %v25355_v63 = vand.u32 4294901760, %v22218_v49  ;;  %v84_v29 = vld [vmem:[#allocation2 + $0x78] sm:$0xff] }
  0x5d   :  { %v22232_v50 = vpack.c.bf16 %v1423_v38, %v1416_v13  ;;  %v314_v52 = vand.u32 4294901760, %v313_v32  ;;  %v1429_v62 = vsub.f32 %v22209_v27, %v25185_v12  ;;  %v22237_v31 = vand.u32 4294901760, %v135_v2 }
  0x5e   :  { %25352 = vst [vmem:[#allocation22_spill] sm:$0xff] %v22228_v48  ;;  %v323_v11 = vsub.f32 %v22214_v25, %v25186_v56  ;;  %v1436_v41 = vsub.f32 %v22218_v49, %v25355_v63  ;;  %v22246_v57 = vsub.f32 %v132_v34, %v22228_v48  ;;  %v1301_v13 = vand.u32 4294901760, %v1259_v7  ;;  %15047 = vmatprep.mubr.f32.mxu0 %v22228_v48  ;;  %v1262_v48 = vld [vmem:[#allocation4 + $0x78] sm:$0xff] }
  0x5f   :  { %25353 = vst [vmem:[#allocation23_spill] sm:$0xff] %v22232_v50  ;;  %25354 = vst [vmem:[#allocation24_spill] sm:$0xff] %v22237_v31  ;;  %18923 = vmatpush3.bf16.msra.mxu1 %v22232_v50  ;;  %15016 = vmatprep.mubr.f32.mxu1 %v314_v52  ;;  %v1430_v38 = vand.u32 4294901760, %v1429_v62  ;;  %v22251_v32 = vsub.f32 %v135_v2, %v22237_v31  ;;  %v1304_v12 = vand.u32 4294901760, %v1260_v28  ;;  %v138_v56 = vsel %vm94_vm0, %v83_v26, 0  ;;  %v1261_v26 = vld [vmem:[#allocation4 + $0x70] sm:$0xff] }
  0x60   :  { %18924 = vmatprep.subr.bf16.mxu1 %v25356_v60  ;;  %v324_v63 = vand.u32 4294901760, %v323_v11  ;;  %v1437_v0 = vand.u32 4294901760, %v1436_v41  ;;  %v25201_v34 = vand.u32 4294901760, %v22246_v57  ;;  %v22256_v54 = vsub.f32 %v1259_v7, %v1301_v13  ;;  %15048 = vmatmul.mubr.f32.gmra.mrb[12].mxu0 %v22237_v31 }
  0x61   :  { %v25204_v52 = vand.u32 4294901760, %v22251_v32  ;;  %v22260_v62 = vpack.c.bf16 %v1304_v12, %v1301_v13  ;;  %v22262_v2 = vsub.f32 %v1260_v28, %v1304_v12  ;;  %v22264_v50 = vand.u32 4294901760, %v138_v56 }
  0x62   :  { %15017 = vmatmul.mubr.f32.gmra.mrb[10].mxu1 %v324_v63  ;;  %v22266_v59 = vpack.c.bf16 %v1437_v0, %v1430_v38  ;;  %v333_v7 = vsub.f32 %v22246_v57, %v25201_v34  ;;  %v1442_v11 = vand.u32 4294901760, %v22256_v54  ;;  %v141_v41 = vsel %vm94_vm0, %v84_v29, 0 }
  0x63   :  { %25357 = vst [vmem:[#allocation25_spill] sm:$0xff] %v22264_v50  ;;  %v343_v12 = vsub.f32 %v22251_v32, %v25204_v52  ;;  %v1449_v28 = vand.u32 4294901760, %v22262_v2  ;;  %v22278_v13 = vsub.f32 %v138_v56, %v22264_v50  ;;  %v22280_v63 = vand.u32 4294901760, %v141_v41  ;;  %15050 = vmatprep.mubr.f32.mxu0 %v22264_v50 }
  0x64   :  { %25358 = vst [vmem:[#allocation26_spill] sm:$0xff] %v22266_v59  ;;  %18926 = vmatpush3.bf16.msra.mxu1 %v22266_v59  ;;  %v334_v0 = vand.u32 4294901760, %v333_v7  ;;  %v1443_v38 = vsub.f32 %v22256_v54, %v1442_v11  ;;  %v1307_v34 = vand.u32 4294901760, %v1261_v26  ;;  %v1310_v29 = vand.u32 4294901760, %v1262_v48 }
  0x65   :  { %25359 = vst [vmem:[#allocation27_spill] sm:$0xff] %v22280_v63  ;;  %18927 = vmatprep.subr.bf16.mxu1 %v25356_v60  ;;  %v344_v31 = vand.u32 4294901760, %v343_v12  ;;  %v1450_v52 = vsub.f32 %v22262_v2, %v1449_v28  ;;  %v25218_v46 = vand.u32 4294901760, %v22278_v13  ;;  %v22289_v56 = vsub.f32 %v141_v41, %v22280_v63  ;;  %15051 = vmatmul.mubr.f32.gmra.mrb[14].mxu0 %v22280_v63 }
  0x66   :  { %15019 = vmatprep.mubr.f32.mxu1 %v334_v0  ;;  %v1444_v50 = vand.u32 4294901760, %v1443_v38  ;;  %v22292_v59 = vpack.c.bf16 %v1310_v29, %v1307_v34  ;;  %v22294_v7 = vsub.f32 %v1261_v26, %v1307_v34  ;;  %v22296_v10 = vsub.f32 %v1262_v48, %v1310_v29  ;;  %15057 = vmatprep.mubr.f32.mxu0 %v21998_v18 }
  0x67   :  { %15020 = vmatmul.mubr.f32.gmra.mrb[12].mxu1 %v344_v31  ;;  %v1451_v12 = vand.u32 4294901760, %v1450_v52  ;;  %v353_v8 = vsub.f32 %v22278_v13, %v25218_v46  ;;  %v25217_v41 = vand.u32 4294901760, %v22289_v56 }
  0x68   :  { %25360 = vst [vmem:[#allocation28_spill] sm:$0xff] %v22292_v59  ;;  %v1456_v63 = vand.u32 4294901760, %v22294_v7  ;;  %v1463_v0 = vand.u32 4294901760, %v22296_v10  ;;  %v25367_v59 = vand.u32 4294901760, %v22063_v5 }
  0x69   :  { %v22305_v38 = vpack.c.bf16 %v1451_v12, %v1444_v50  ;;  %v354_v34 = vand.u32 4294901760, %v353_v8  ;;  %v363_v48 = vsub.f32 %v22289_v56, %v25217_v41  ;;  %15058 = vmatmul.mubr.f32.vlgmr.msra.gmra.mrb[0].mxu0 %v22009_v23  ;;  %v22319_v8 = vld [vmem:[%s25144_s1] sm:$0xff]  ;;  %v25362_v12 = vand.u32 4294901760, %v21993_v16 }
  0x6a   :  { %v1457_v31 = vsub.f32 %v22294_v7, %v1456_v63  ;;  %v1464_v52 = vsub.f32 %v22296_v10, %v1463_v0  ;;  %18876 = vmatpush3.bf16.msra.mxu0 %v21989_v14  ;;  %15060 = vmatprep.mubr.f32.mxu0 %v22039_v39  ;;  %v25363_v41 = vand.u32 4294901760, %v21995_v17  ;;  %v22344_v16 = vand.u32 4294901760, %v22319_v8 }
  0x6b   :  { %25361 = vst [vmem:[#allocation29_spill] sm:$0xff] %v22305_v38  ;;  %18929 = vmatpush3.bf16.msra.mxu1 %v22305_v38  ;;  %15022 = vmatprep.mubr.f32.mxu1 %v354_v34  ;;  %v364_v50 = vand.u32 4294901760, %v363_v48  ;;  %v25364_v34 = vand.u32 4294901760, %v22002_v20  ;;  %v25365_v48 = vand.u32 4294901760, %v22004_v21  ;;  %v25370_v17 = vand.u32 4294901760, %v22077_v22 }
  0x6c   :  { %18930 = vmatprep.subr.bf16.mxu1 %v25356_v60  ;;  %v1458_v26 = vand.u32 4294901760, %v1457_v31  ;;  %v1465_v29 = vand.u32 4294901760, %v1464_v52  ;;  %v18877_v46 = vpack.c.bf16 %v25363_v41, %v25362_v12  ;;  %v22337_v31 = vpack.c.bf16 %v25368_v43, %v25367_v59 }
  0x6d   :  { %15023 = vmatmul.mubr.f32.gmra.mrb[14].mxu1 %v364_v50  ;;  %15061 = vmatmul.mubr.f32.gmra.mrb[2].mxu0 %v22048_v55  ;;  %v22331_v38 = vpack.c.bf16 %v25365_v48, %v25364_v34  ;;  %v25224_v50 = vmov 0.0   ;;  %v25371_v41 = vand.u32 4294901760, %v22097_v42  ;;  %v25372_v43 = vand.u32 4294901760, %v22132_v40 }
  0x6e   :  { %25369 = vst [vmem:[#allocation31_spill] sm:$0xff] %v22337_v31  ;;  %v22339_v52 = vpack.c.bf16 %v1465_v29, %v1458_v26  ;;  %15232 = vmatprep.mubr.msk.f32.mxu1 %vm21880_vm1, %v25224_v50  ;;  %15063 = vmatprep.mubr.f32.mxu0 %v22082_v35  ;;  %v25373_v59 = vand.u32 4294901760, %v22149_v45  ;;  %v25374_v29 = vand.u32 4294901760, %v22177_v53  ;;  %v25375_v34 = vand.u32 4294901760, %v22183_v47 }
  0x6f   :  { %25366 = vst [vmem:[#allocation30_spill] sm:$0xff] %v22331_v38  ;;  %v22351_v12 = vpack.c.bf16 %v25371_v41, %v25370_v17  ;;  %18878 = vmatprep.subr.bf16.mxu0 %v18877_v46  ;;  %v25376_v50 = vand.u32 4294901760, %v22209_v27  ;;  %v25377_v31 = vand.u32 4294901760, %v22218_v49  ;;  %v22371_v17 = vpack.c.bf16 %v1449_v28, %v1442_v11 }
  0x70   :  { %v22357_v26 = vpack.c.bf16 %v25373_v59, %v25372_v43  ;;  %v22363_v48 = vpack.c.bf16 %v25375_v34, %v25374_v29  ;;  %v22373_v41 = vpack.c.bf16 %v1463_v0, %v1456_v63  ;;  %18932 = vmatpush3.bf16.msra.mxu1 %v22339_v52  ;;  %v22378_v43 = vpack.c.bf16 %v22004_v21, %v22002_v20  ;;  %v25407_v0 = vld [vmem:[#allocation21_spill] sm:$0xff]  ;;  %v25411_v59 = vld [vmem:[#allocation27_spill] sm:$0xff] }
  0x71   :  { %v22369_v38 = vpack.c.bf16 %v25377_v31, %v25376_v50  ;;  %18933 = vmatprep.subr.bf16.mxu1 %v25356_v60  ;;  %15064 = vmatmul.mubr.f32.gmra.mrb[4].mxu0 %v22085_v36  ;;  %v22387_v11 = vpack.c.bf16 %v22065_v6, %v22063_v5  ;;  %v25379_v28 = vmov 0.0   ;;  %v22397_v20 = vpack.c.bf16 %v22097_v42, %v22077_v22  ;;  %v25409_v31 = vld [vmem:[#allocation24_spill] sm:$0xff]  ;;  %v25410_v50 = vld [vmem:[#allocation25_spill] sm:$0xff] }
  0x72   :  { %25378 = vst [vmem:[#allocation32_spill] sm:$0xff] %v22373_v41  ;;  %15066 = vmatprep.mubr.f32.mxu0 %v22117_v58  ;;  %v22405_v21 = vpack.c.bf16 %v22149_v45, %v22132_v40  ;;  %v22413_v5 = vpack.c.bf16 %v22183_v47, %v22177_v53  ;;  %v22421_v6 = vpack.c.bf16 %v22218_v49, %v22209_v27  ;;  %v25380_v22 = vand.u32 4294901760, %v21998_v18  ;;  %v25397_v47 = vld [vmem:[#allocation11_spill] sm:$0xff]  ;;  %v25398_v27 = vld [vmem:[#allocation28_spill] sm:$0xff] }
  0x73   :  { %15233 = vmatmul.mubr.f32.vlgmr.msra.gmra.mrb[16].mxu1 %v22344_v16  ;;  %v22430_v42 = vpack.c.bf16 %v22262_v2, %v22256_v54  ;;  %v25381_v45 = vand.u32 4294901760, %v22009_v23  ;;  %v25382_v53 = vand.u32 4294901760, %v22039_v39  ;;  %v22441_v18 = vpack.c.bf16 %v22296_v10, %v22294_v7  ;;  %v25399_v49 = vld [vmem:[#allocation12_spill] sm:$0xff]  ;;  %v25402_v2 = vld [vmem:[#allocation14_spill] sm:$0xff]  ;;  %v25406_v7 = vld [vmem:[#allocation19_spill] sm:$0xff] }
  0x74   :  { %18935 = vmatpush3.bf16.msra.mxu1 %v22378_v43  ;;  %15267 = vmatprep.mubr.msk.f32.mxu1 %vm21880_vm1, %v25379_v28  ;;  %v25383_v40 = vand.u32 4294901760, %v22048_v55  ;;  %v25384_v23 = vand.u32 4294901760, %v22082_v35  ;;  %v22450_v39 = vsub.f32 %v22319_v8, %v22344_v16  ;;  %v25386_v10 = vand.u32 4294901760, %v22117_v58  ;;  %v25408_v8 = vld [vmem:[#allocation22_spill] sm:$0xff] }
  0x75   :  { %18936 = vmatprep.subr.bf16.mxu1 %v25356_v60  ;;  %15067 = vmatmul.mubr.f32.gmra.mrb[6].mxu0 %v22129_v33  ;;  %v25387_v55 = vand.u32 4294901760, %v22129_v33  ;;  %v25388_v35 = vand.u32 4294901760, %v22155_v3  ;;  %v25390_v58 = vand.u32 4294901760, %v22195_v1  ;;  %v25391_v33 = vand.u32 4294901760, %v22214_v25  ;;  %v25404_v63 = vld [vmem:[#allocation31_spill] sm:$0xff] }
  0x76   :  { %15069 = vmatprep.mubr.f32.mxu0 %v22155_v3  ;;  %v25392_v54 = vand.u32 4294901760, %v22246_v57  ;;  %v25393_v3 = vand.u32 4294901760, %v22251_v32 }
  0x78   :  { %18938 = vmatpush3.bf16.msra.mxu1 %v22387_v11 }
  0x79   :  { %18939 = vmatprep.subr.bf16.mxu1 %v25356_v60  ;;  %15070 = vmatmul.mubr.f32.gmra.mrb[8].mxu0 %v22168_v51 }
  0x7a   :  { %15072 = vmatprep.mubr.f32.mxu0 %v22195_v1  ;;  %v1347_v1 = vand.u32 4294901760, %v22450_v39 }
  0x7c   :  { %18941 = vmatpush3.bf16.msra.mxu1 %v22397_v20 }
  0x7d   :  { %18942 = vmatprep.subr.bf16.mxu1 %v25356_v60  ;;  %15073 = vmatmul.mubr.f32.gmra.mrb[10].mxu0 %v22214_v25  ;;  %v25395_v25 = vand.u32 4294901760, %v22289_v56 }
  0x7e   :  { %15075 = vmatprep.mubr.f32.mxu0 %v22246_v57  ;;  %v25396_v57 = vld [vmem:[#allocation9_spill] sm:$0xff] }
  0x80   :  { %18944 = vmatpush3.bf16.msra.mxu1 %v22405_v21 }
  0x81   :  { %18945 = vmatprep.subr.bf16.mxu1 %v25356_v60  ;;  %15076 = vmatmul.mubr.f32.gmra.mrb[12].mxu0 %v22251_v32  ;;  %v25401_v32 = vld [vmem:[#allocation30_spill] sm:$0xff] }
  0x82   :  { %15078 = vmatprep.mubr.f32.mxu0 %v22278_v13 }
  0x84   :  { %18947 = vmatpush3.bf16.msra.mxu1 %v22413_v5 }
  0x85   :  { %18948 = vmatprep.subr.bf16.mxu1 %v25356_v60  ;;  %15079 = vmatmul.mubr.f32.gmra.mrb[14].mxu0 %v22289_v56  ;;  %v25405_v56 = vld [vmem:[#allocation18_spill] sm:$0xff] }
  0x86   :  { %15085 = vmatprep.mubr.f32.mxu0 %v25380_v22 }
  0x88   :  { %18950 = vmatpush3.bf16.msra.mxu1 %v22421_v6 }
  0x89   :  { %18951 = vmatprep.subr.bf16.mxu1 %v25356_v60  ;;  %15086 = vmatmul.mubr.f32.vlgmr.msra.gmra.mrb[0].mxu0 %v25381_v45 }
  0x8a   :  { %18880 = vmatpush3.bf16.msra.mxu0 %v18877_v46  ;;  %15088 = vmatprep.mubr.f32.mxu0 %v25382_v53  ;;  %v25385_v46 = vand.u32 4294901760, %v22085_v36  ;;  %v25389_v36 = vand.u32 4294901760, %v22168_v51  ;;  %v25394_v51 = vand.u32 4294901760, %v22278_v13  ;;  %v25403_v13 = vld [vmem:[#allocation16_spill] sm:$0xff] }
  0x8b   :  { %18882 = vmatprep.subr.bf16.mxu0 %v21989_v14 }
  0x8c   :  { %18953 = vmatpush3.bf16.msra.mxu1 %v22430_v42 }
  0x8d   :  { %18954 = vmatprep.subr.bf16.mxu1 %v25356_v60  ;;  %15089 = vmatmul.mubr.f32.gmra.mrb[2].mxu0 %v25383_v40 }
  0x8e   :  { %15091 = vmatprep.mubr.f32.mxu0 %v25384_v23 }
  0x90   :  { %18956 = vmatpush3.bf16.msra.mxu1 %v22441_v18 }
  0x91   :  { %18957 = vmatprep.subr.bf16.mxu1 %v25356_v60  ;;  %15092 = vmatmul.mubr.f32.gmra.mrb[4].mxu0 %v25385_v46 }
  0x92   :  { %15094 = vmatprep.mubr.f32.mxu0 %v25386_v10 }
  0x93   :  { %15268 = vmatmul.mubr.f32.vlgmr.msra.gmra.mrb[16].mxu1 %v22450_v39 }
  0x94   :  { %18959 = vmatpush3.bf16.msra.mxu1 %v22000_v19  ;;  %15302 = vmatprep.mubr.msk.f32.mxu1 %vm21880_vm1, %v25379_v28 }
  0x95   :  { %18960 = vmatprep.subr.bf16.mxu1 %v25356_v60  ;;  %15095 = vmatmul.mubr.f32.gmra.mrb[6].mxu0 %v25387_v55 }
  0x96   :  { %15097 = vmatprep.mubr.f32.mxu0 %v25388_v35 }
  0x98   :  { %18962 = vmatpush3.bf16.msra.mxu1 %v22061_v4 }
  0x99   :  { %18963 = vmatprep.subr.bf16.mxu1 %v25356_v60  ;;  %15098 = vmatmul.mubr.f32.gmra.mrb[8].mxu0 %v25389_v36 }
  0x9a   :  { %15100 = vmatprep.mubr.f32.mxu0 %v25390_v58 }
  0x9c   :  { %18965 = vmatpush3.bf16.msra.mxu1 %v22087_v37 }
  0x9d   :  { %18966 = vmatprep.subr.bf16.mxu1 %v25356_v60  ;;  %15101 = vmatmul.mubr.f32.gmra.mrb[10].mxu0 %v25391_v33 }
  0x9e   :  { %15103 = vmatprep.mubr.f32.mxu0 %v25392_v54 }
  0xa0   :  { %18968 = vmatpush3.bf16.msra.mxu1 %v22146_v61 }
  0xa1   :  { %18969 = vmatprep.subr.bf16.mxu1 %v25356_v60  ;;  %15104 = vmatmul.mubr.f32.gmra.mrb[12].mxu0 %v25393_v3 }
  0xa2   :  { %15106 = vmatprep.mubr.f32.mxu0 %v25394_v51 }
  0xa4   :  { %18971 = vmatpush3.bf16.msra.mxu1 %v22175_v44 }
  0xa5   :  { %18972 = vmatprep.subr.bf16.mxu1 %v25356_v60  ;;  %15107 = vmatmul.mubr.f32.gmra.mrb[14].mxu0 %v25395_v25 }
  0xa6   :  { %15113 = vmatprep.mubr.f32.mxu0 %v21986_v9 }
  0xa8   :  { %18974 = vmatpush3.bf16.msra.mxu1 %v22216_v24 }
  0xa9   :  { %18975 = vmatprep.subr.bf16.mxu1 %v25356_v60  ;;  %15114 = vmatmul.mubr.f32.vlgmr.msra.gmra.mrb[0].mxu0 %v21991_v15 }
  0xaa   :  { %18884 = vmatpush3.bf16.msra.mxu0 %v21989_v14  ;;  %15116 = vmatprep.mubr.f32.mxu0 %v22018_v30  ;;  %v25400_v14 = vld [vmem:[#allocation13_spill] sm:$0xff] }
  0xab   :  { %18885 = vmatprep.subr.bf16.mxu0 %v25356_v60 }
  0xac   :  { %18977 = vmatpush3.bf16.msra.mxu1 %v22260_v62 }
  0xad   :  { %18978 = vmatprep.subr.bf16.mxu1 %v25356_v60  ;;  %15117 = vmatmul.mubr.f32.gmra.mrb[2].mxu0 %v25396_v57 }
  0xae   :  { %15119 = vmatprep.mubr.f32.mxu0 %v25397_v47 }
  0xb0   :  { %18980 = vmatpush3.bf16.msra.mxu1 %v25398_v27 }
  0xb1   :  { %18981 = vmatprep.subr.bf16.mxu1 %v25356_v60  ;;  %15120 = vmatmul.mubr.f32.gmra.mrb[4].mxu0 %v25399_v49 }
  0xb2   :  { %15122 = vmatprep.mubr.f32.mxu0 %v25400_v14 }
  0xb3   :  { %15303 = vmatmul.mubr.f32.vlgmr.msra.gmra.mrb[16].mxu1 %v1347_v1 }
  0xb4   :  { %18983 = vmatpush3.bf16.msra.mxu1 %v25401_v32  ;;  %15337 = vmatprep.mubr.msk.f32.mxu1 %vm21880_vm1, %v25379_v28 }
  0xb5   :  { %18984 = vmatprep.subr.bf16.mxu1 %v25356_v60  ;;  %15123 = vmatmul.mubr.f32.gmra.mrb[6].mxu0 %v25402_v2 }
  0xb6   :  { %15125 = vmatprep.mubr.f32.mxu0 %v25403_v13 }
  0xb8   :  { %18986 = vmatpush3.bf16.msra.mxu1 %v25404_v63 }
  0xb9   :  { %18987 = vmatprep.subr.bf16.mxu1 %v25356_v60  ;;  %15126 = vmatmul.mubr.f32.gmra.mrb[8].mxu0 %v25405_v56 }
  0xba   :  { %15128 = vmatprep.mubr.f32.mxu0 %v25406_v7 }
  0xbc   :  { %18989 = vmatpush3.bf16.msra.mxu1 %v22351_v12 }
  0xbd   :  { %18990 = vmatprep.subr.bf16.mxu1 %v25356_v60  ;;  %15129 = vmatmul.mubr.f32.gmra.mrb[10].mxu0 %v25407_v0 }
  0xbe   :  { %15131 = vmatprep.mubr.f32.mxu0 %v25408_v8 }
  0xc0   :  { %18992 = vmatpush3.bf16.msra.mxu1 %v22357_v26 }
  0xc1   :  { %18993 = vmatprep.subr.bf16.mxu1 %v25356_v60  ;;  %15132 = vmatmul.mubr.f32.gmra.mrb[12].mxu0 %v25409_v31 }
  0xc2   :  { %15134 = vmatprep.mubr.f32.mxu0 %v25410_v50 }
  0xc4   :  { %18995 = vmatpush3.bf16.msra.mxu1 %v22363_v48 }
  0xc5   :  { %18996 = vmatprep.subr.bf16.mxu1 %v25356_v60  ;;  %15135 = vmatmul.mubr.f32.gmra.mrb[14].mxu0 %v25411_v59 }
  0xc6   :  { %15141 = vmatprep.mubr.f32.mxu0 %v21986_v9  ;;  %v1348_v9 = vsub.f32 %v22450_v39, %v1347_v1 }
  0xc8   :  { %18998 = vmatpush3.bf16.msra.mxu1 %v22369_v38 }
  0xc9   :  { %18999 = vmatprep.subr.bf16.mxu1 %v25356_v60  ;;  %15142 = vmatmul.mubr.f32.vlgmr.msra.gmra.mrb[0].mxu0 %v21991_v15  ;;  %v1349_v15 = vand.u32 4294901760, %v1348_v9 }
  0xca   :  { %18887 = vmatpush3.bf16.msra.mxu0 %v22000_v19  ;;  %15144 = vmatprep.mubr.f32.mxu0 %v22018_v30  ;;  %v13063_v30 = vld [vmem:[%s25148_s5] ss:$0 sm:$0xff] }
  0xcb   :  { %18888 = vmatprep.subr.bf16.mxu0 %v25356_v60 }
  0xcc   :  { %19001 = vmatpush3.bf16.msra.mxu1 %v22371_v17 }
  0xcd   :  { %19002 = vmatprep.subr.bf16.mxu1 %v25356_v60  ;;  %15145 = vmatmul.mubr.f32.gmra.mrb[2].mxu0 %v25396_v57 }
  0xce   :  { %18890 = vmatpush3.bf16.msra.mxu0 %v22061_v4  ;;  %15147 = vmatprep.mubr.f32.mxu0 %v25397_v47 }
  0xcf   :  { %18891 = vmatprep.subr.bf16.mxu0 %v25356_v60 }
  0xd0   :  { %19004 = vmatpush3.bf16.msra.mxu1 %v22373_v41 }
  0xd1   :  { %19005 = vmatprep.subr.bf16.mxu1 %v25356_v60  ;;  %15148 = vmatmul.mubr.f32.gmra.mrb[4].mxu0 %v25399_v49 }
  0xd2   :  { %18893 = vmatpush3.bf16.msra.mxu0 %v22087_v37  ;;  %15150 = vmatprep.mubr.f32.mxu0 %v25400_v14 }
  0xd3   :  { %15338 = vmatmul.mubr.f32.vlgmr.msra.gmra.mrb[16].mxu1 %v22344_v16  ;;  %18894 = vmatprep.subr.bf16.mxu0 %v25356_v60 }
  0xd4   :  { %19007 = vmatpush3.bf16.msra.mxu1 %v22000_v19  ;;  %15372 = vmatprep.mubr.msk.f32.mxu1 %vm21880_vm1, %v25379_v28 }
  0xd5   :  { %19008 = vmatprep.subr.bf16.mxu1 %v25356_v60  ;;  %15151 = vmatmul.mubr.f32.gmra.mrb[6].mxu0 %v25402_v2 }
  0xd6   :  { %18896 = vmatpush3.bf16.msra.mxu0 %v22146_v61  ;;  %15153 = vmatprep.mubr.f32.mxu0 %v25403_v13 }
  0xd7   :  { %18897 = vmatprep.subr.bf16.mxu0 %v25356_v60 }
  0xd8   :  { %19010 = vmatpush3.bf16.msra.mxu1 %v22061_v4 }
  0xd9   :  { %19011 = vmatprep.subr.bf16.mxu1 %v25356_v60  ;;  %15154 = vmatmul.mubr.f32.gmra.mrb[8].mxu0 %v25405_v56 }
  0xda   :  { %18899 = vmatpush3.bf16.msra.mxu0 %v22175_v44  ;;  %15156 = vmatprep.mubr.f32.mxu0 %v25406_v7 }
  0xdb   :  { %18900 = vmatprep.subr.bf16.mxu0 %v25356_v60 }
  0xdc   :  { %19013 = vmatpush3.bf16.msra.mxu1 %v22087_v37 }
  0xdd   :  { %19014 = vmatprep.subr.bf16.mxu1 %v25356_v60  ;;  %15157 = vmatmul.mubr.f32.gmra.mrb[10].mxu0 %v25407_v0 }
  0xde   :  { %18902 = vmatpush3.bf16.msra.mxu0 %v22216_v24  ;;  %15159 = vmatprep.mubr.f32.mxu0 %v25408_v8 }
  0xdf   :  { %18903 = vmatprep.subr.bf16.mxu0 %v25356_v60 }
  0xe0   :  { %19016 = vmatpush3.bf16.msra.mxu1 %v22146_v61 }
  0xe1   :  { %19017 = vmatprep.subr.bf16.mxu1 %v25356_v60  ;;  %15160 = vmatmul.mubr.f32.gmra.mrb[12].mxu0 %v25409_v31 }
  0xe2   :  { %18905 = vmatpush3.bf16.msra.mxu0 %v22260_v62  ;;  %15162 = vmatprep.mubr.f32.mxu0 %v25410_v50 }
  0xe3   :  { %18906 = vmatprep.subr.bf16.mxu0 %v25356_v60 }
  0xe4   :  { %19019 = vmatpush3.bf16.msra.mxu1 %v22175_v44 }
  0xe5   :  { %19020 = vmatprep.subr.bf16.mxu1 %v25356_v60  ;;  %15163 = vmatmul.mubr.f32.gmra.mrb[14].mxu0 %v25411_v59 }
  0xe6   :  { %18908 = vmatpush3.bf16.msra.mxu0 %v25398_v27  ;;  %15197 = vmatprep.mubr.msk.f32.mxu0 %vm21880_vm1, %v25379_v28 }
  0xe7   :  { %19029 = vmatprep.subr.bf16.mxu0 %v25356_v60 }
  0xe8   :  { %19022 = vmatpush3.bf16.msra.mxu1 %v22216_v24 }
  0xe9   :  { %19023 = vmatprep.subr.bf16.mxu1 %v25356_v60  ;;  %15198 = vmatmul.mubr.f32.vlgmr.msra.gmra.mrb[16].mxu0 %v1349_v15 }
  0xea   :  { %19031 = vmatpush3.bf16.msra.mxu0 %v22000_v19  ;;  %15407 = vmatprep.mubr.msk.f32.mxu0 %vm21880_vm1, %v25379_v28 }
  0xeb   :  { %19032 = vmatprep.subr.bf16.mxu0 %v25356_v60 }
  0xec   :  { %19025 = vmatpush3.bf16.msra.mxu1 %v22260_v62 }
  0xed   :  { %19026 = vmatprep.subr.bf16.mxu1 %v25356_v60 }
  0xee   :  { %19034 = vmatpush3.bf16.msra.mxu0 %v22061_v4 }
  0xef   :  { %19035 = vmatprep.subr.bf16.mxu0 %v25356_v60 }
  0xf0   :  { %19028 = vmatpush3.bf16.msra.mxu1 %v25398_v27 }
  0xf1   :  { %19173 = vmatprep.subr.bf16.mxu1 %v25356_v60 }
  0xf2   :  { %19037 = vmatpush3.bf16.msra.mxu0 %v22087_v37 }
  0xf3   :  { %15373 = vmatmul.mubr.f32.vlgmr.msra.gmra.mrb[16].mxu1 %v22344_v16  ;;  %19038 = vmatprep.subr.bf16.mxu0 %v25356_v60 }
  0xf4   :  { %19175 = vmatpush3.bf16.msra.mxu1 %v22000_v19  ;;  %15617 = vmatprep.mubr.msk.f32.mxu1 %vm21880_vm1, %v25379_v28 }
  0xf5   :  { %19176 = vmatprep.subr.bf16.mxu1 %v25356_v60 }
  0xf6   :  { %19040 = vmatpush3.bf16.msra.mxu0 %v22146_v61 }
  0xf7   :  { %19041 = vmatprep.subr.bf16.mxu0 %v25356_v60 }
  0xf8   :  { %19178 = vmatpush3.bf16.msra.mxu1 %v22061_v4 }
  0xf9   :  { %19179 = vmatprep.subr.bf16.mxu1 %v25356_v60 }
  0xfa   :  { %19043 = vmatpush3.bf16.msra.mxu0 %v22175_v44 }
  0xfb   :  { %19044 = vmatprep.subr.bf16.mxu0 %v25356_v60 }
  0xfc   :  { %19181 = vmatpush3.bf16.msra.mxu1 %v22087_v37 }
  0xfd   :  { %19182 = vmatprep.subr.bf16.mxu1 %v25356_v60 }
  0xfe   :  { %19046 = vmatpush3.bf16.msra.mxu0 %v22216_v24 }
  0xff   :  { %19047 = vmatprep.subr.bf16.mxu0 %v25356_v60 }
 0x100   :  { %19184 = vmatpush3.bf16.msra.mxu1 %v22146_v61 }
 0x101   :  { %19185 = vmatprep.subr.bf16.mxu1 %v25356_v60 }
 0x102   :  { %19049 = vmatpush3.bf16.msra.mxu0 %v22260_v62 }
 0x103   :  { %19050 = vmatprep.subr.bf16.mxu0 %v25356_v60 }
 0x104   :  { %19187 = vmatpush3.bf16.msra.mxu1 %v22175_v44 }
 0x105   :  { %19188 = vmatprep.subr.bf16.mxu1 %v25356_v60 }
 0x106   :  { %19052 = vmatpush3.bf16.msra.mxu0 %v25398_v27 }
 0x107   :  { %19053 = vmatprep.subr.bf16.mxu0 %v25356_v60 }
 0x108   :  { %19190 = vmatpush3.bf16.msra.mxu1 %v22216_v24 }
 0x109   :  { %19191 = vmatprep.subr.bf16.mxu1 %v25356_v60 }
 0x10c   :  { %19193 = vmatpush3.bf16.msra.mxu1 %v22260_v62 }
 0x10d   :  { %19194 = vmatprep.subr.bf16.mxu1 %v25356_v60 }
 0x110   :  { %19196 = vmatpush3.bf16.msra.mxu1 %v25398_v27 }
 0x111   :  { %19197 = vmatprep.subr.bf16.mxu1 %v25356_v60 }
 0x116   :  { %v15003_v16 = vpop.f32.mrb[0].mxu1 }
 0x117   :  { %v227_v29 = vadd.f32 %v15003_v16, %v13063_v30  ;;  %v216_v34 = vpop.f32.mrb[1].mxu1 }
 0x118   :  { %v217_v31 = vadd.f32 %v13063_v30, %v216_v34 }
 0x11c   :  { %v15006_v22 = vpop.f32.mrb[2].mxu1 }
 0x11d   :  { %v247_v45 = vadd.f32 %v15006_v22, %v13063_v30  ;;  %v236_v53 = vpop.f32.mrb[3].mxu1 }
 0x11e   :  { %v237_v40 = vadd.f32 %v13063_v30, %v236_v53 }
 0x122   :  { %v15009_v23 = vpop.f32.mrb[4].mxu1 }
 0x123   :  { %v267_v39 = vadd.f32 %v15009_v23, %v13063_v30  ;;  %v256_v46 = vpop.f32.mrb[5].mxu1 }
 0x124   :  { %v257_v10 = vadd.f32 %v13063_v30, %v256_v46 }
 0x128   :  { %v15012_v55 = vpop.f32.mrb[6].mxu1 }
 0x129   :  { %v287_v35 = vadd.f32 %v15012_v55, %v13063_v30  ;;  %v276_v36 = vpop.f32.mrb[7].mxu1 }
 0x12a   :  { %v277_v58 = vadd.f32 %v13063_v30, %v276_v36 }
 0x12e   :  { %v15015_v33 = vpop.f32.mrb[8].mxu1 }
 0x12f   :  { %v307_v54 = vadd.f32 %v15015_v33, %v13063_v30  ;;  %v296_v3 = vpop.f32.mrb[9].mxu1 }
 0x130   :  { %v297_v51 = vadd.f32 %v13063_v30, %v296_v3 }
 0x135   :  { %v15018_v25 = vpop.f32.mrb[10].mxu1 }
 0x136   :  { %v327_v57 = vadd.f32 %v15018_v25, %v13063_v30  ;;  %v316_v47 = vpop.f32.mrb[11].mxu1 }
 0x137   :  { %v317_v1 = vadd.f32 %v13063_v30, %v316_v47 }
 0x13a   :  { %v15021_v49 = vpop.f32.mrb[12].mxu1 }
 0x13b   :  { %v347_v14 = vadd.f32 %v15021_v49, %v13063_v30  ;;  %v336_v2 = vpop.f32.mrb[13].mxu1 }
 0x13c   :  { %v337_v13 = vadd.f32 %v13063_v30, %v336_v2 }
 0x140   :  { %v15024_v56 = vpop.f32.mrb[14].mxu1 }
 0x141   :  { %v367_v7 = vadd.f32 %v15024_v56, %v13063_v30  ;;  %v356_v0 = vpop.f32.mrb[15].mxu1 }
 0x142   :  { %v357_v8 = vadd.f32 %v13063_v30, %v356_v0 }
 0x19c   :  { %v15143_v50 = vpop.f32.mrb[0].mxu0 }
 0x19d   :  { %v22630_v59 = vadd.f32 %v15143_v50, %v227_v29  ;;  %v1153_v9 = vpop.f32.mrb[1].mxu0 }
 0x19e   :  { %v21384_v15 = vadd.f32 %v1153_v9, %v217_v31 }
 0x1a0   :  { %v15146_v16 = vpop.f32.mrb[2].mxu0 }
 0x1a1   :  { %v22632_v22 = vadd.f32 %v15146_v16, %v247_v45  ;;  %v1165_v53 = vpop.f32.mrb[3].mxu0 }
 0x1a2   :  { %v22634_v23 = vadd.f32 %v1165_v53, %v237_v40 }
 0x1a4   :  { %v15149_v46 = vpop.f32.mrb[4].mxu0 }
 0x1a5   :  { %v22636_v55 = vadd.f32 %v15149_v46, %v267_v39  ;;  %v1177_v36 = vpop.f32.mrb[5].mxu0 }
 0x1a6   :  { %v22638_v33 = vadd.f32 %v1177_v36, %v257_v10 }
 0x1a8   :  { %v15152_v3 = vpop.f32.mrb[6].mxu0 }
 0x1a9   :  { %v22640_v25 = vadd.f32 %v15152_v3, %v287_v35  ;;  %v1189_v30 = vpop.f32.mrb[7].mxu0 }
 0x1aa   :  { %v22642_v29 = vadd.f32 %v1189_v30, %v277_v58  ;;  %v25415_v30 = vld [vmem:[#allocation17_spill] sm:$0xff] }
 0x1ac   :  { %v15155_v34 = vpop.f32.mrb[8].mxu0 }
 0x1ad   :  { %v22644_v47 = vadd.f32 %v15155_v34, %v307_v54  ;;  %v1201_v45 = vpop.f32.mrb[9].mxu0  ;;  %v25416_v34 = vld [vmem:[#allocation20_spill] sm:$0xff] }
 0x1ae   :  { %v22646_v49 = vadd.f32 %v1201_v45, %v297_v51  ;;  %v25417_v45 = vld [vmem:[#allocation23_spill] sm:$0xff] }
 0x1b0   :  { %v15158_v40 = vpop.f32.mrb[10].mxu0 }
 0x1b1   :  { %v22648_v2 = vadd.f32 %v15158_v40, %v327_v57  ;;  %v1213_v39 = vpop.f32.mrb[11].mxu0  ;;  %v25418_v40 = vld [vmem:[#allocation26_spill] sm:$0xff] }
 0x1b2   :  { %v22650_v56 = vadd.f32 %v1213_v39, %v317_v1  ;;  %v25419_v39 = vld [vmem:[#allocation29_spill] sm:$0xff] }
 0x1b4   :  { %v15161_v10 = vpop.f32.mrb[12].mxu0 }
 0x1b5   :  { %v22652_v0 = vadd.f32 %v15161_v10, %v347_v14  ;;  %v1225_v35 = vpop.f32.mrb[13].mxu0 }
 0x1b6   :  { %v22654_v31 = vadd.f32 %v1225_v35, %v337_v13 }
 0x1b8   :  { %v15164_v58 = vpop.f32.mrb[14].mxu0 }
 0x1b9   :  { %v22656_v50 = vadd.f32 %v15164_v58, %v367_v7  ;;  %v1237_v54 = vpop.f32.mrb[15].mxu0 }
 0x1ba   :  { %v22658_v9 = vadd.f32 %v1237_v54, %v357_v8  ;;  %v25413_v8 = vld [vmem:[#allocation10_spill] sm:$0xff] }
 0x1bb   :  { %25412 = vst [vmem:[#allocation9_spill] sm:$0xff] %v22656_v50  ;;  %v24437_v50 = vld [vmem:[#allocation6 + $0x70] sm:$0xff] }
 0x1bc   :  { %v1351_v51 = vpop.f32.mrb[16].mxu0  ;;  %25449 = vst [vmem:[#allocation40_spill] sm:$0xff] %v24437_v50 }
 0x1bd   :  { %v15199_v16 = vpop.f32.mrb[17].mxu0 }
 0x1c6   :  { %v1901_v53 = vpop.f32.mrb[16].mxu1 }
 0x1c7   :  { %v15374_v57 = vpop.f32.mrb[17].mxu1  ;;  %v21413_v46 = vadd.f32 %v1901_v53, %v1351_v51 }
 0x1c9   :  { %v1905_v36 = vadd.f32 %v21413_v46, %v21384_v15  ;;  %v25414_v15 = vld [vmem:[#allocation15_spill] sm:$0xff] }
 0x1cb   :  { %1906 = vst [vmem:[%s25151_s8] sm:$0xff] %v1905_v36  ;;  %v22663_v1 = vand.u32 4294901760, %v1905_v36 }
 0x1cd   :  { %v1989_v14 = vsub.f32 %v1905_v36, %v22663_v1 }
 0x1cf   :  { %v1990_v13 = vand.u32 4294901760, %v1989_v14 }
 0x1d1   :  { %v1991_v7 = vsub.f32 %v1989_v14, %v1990_v13 }
 0x1d3   :  { %v1992_v3 = vand.u32 4294901760, %v1991_v7 }
 0x1d5   :  { %15408 = vmatmul.mubr.f32.vlgmr.msra.gmra.mrb[18].mxu0 %v1992_v3 }
 0x1d6   :  { %19055 = vmatpush3.bf16.msra.mxu0 %v25413_v8  ;;  %15442 = vmatprep.mubr.msk.f32.mxu0 %vm21880_vm1, %v25379_v28 }
 0x1d7   :  { %19056 = vmatprep.subr.bf16.mxu0 %v25356_v60 }
 0x1da   :  { %19058 = vmatpush3.bf16.msra.mxu0 %v25414_v15 }
 0x1db   :  { %19059 = vmatprep.subr.bf16.mxu0 %v25356_v60 }
 0x1de   :  { %19061 = vmatpush3.bf16.msra.mxu0 %v25415_v30 }
 0x1df   :  { %19062 = vmatprep.subr.bf16.mxu0 %v25356_v60 }
 0x1e2   :  { %19064 = vmatpush3.bf16.msra.mxu0 %v25416_v34 }
 0x1e3   :  { %19065 = vmatprep.subr.bf16.mxu0 %v25356_v60 }
 0x1e6   :  { %19067 = vmatpush3.bf16.msra.mxu0 %v25417_v45 }
 0x1e7   :  { %19068 = vmatprep.subr.bf16.mxu0 %v25356_v60 }
 0x1ea   :  { %19070 = vmatpush3.bf16.msra.mxu0 %v25418_v40 }
 0x1eb   :  { %19071 = vmatprep.subr.bf16.mxu0 %v25356_v60 }
 0x1ee   :  { %19073 = vmatpush3.bf16.msra.mxu0 %v25419_v39 }
 0x1ef   :  { %19074 = vmatprep.subr.bf16.mxu0 %v25356_v60 }
 0x1f2   :  { %19076 = vmatpush3.bf16.msra.mxu0 %v22339_v52 }
 0x1f3   :  { %19077 = vmatprep.subr.bf16.mxu0 %v25356_v60 }
 0x1f5   :  { %15443 = vmatmul.mubr.f32.vlgmr.msra.gmra.mrb[18].mxu0 %v22663_v1 }
 0x1f6   :  { %19079 = vmatpush3.bf16.msra.mxu0 %v22378_v43  ;;  %15477 = vmatprep.mubr.msk.f32.mxu0 %vm21880_vm1, %v25379_v28 }
 0x1f7   :  { %19080 = vmatprep.subr.bf16.mxu0 %v25356_v60 }
 0x1fa   :  { %19082 = vmatpush3.bf16.msra.mxu0 %v22387_v11 }
 0x1fb   :  { %19083 = vmatprep.subr.bf16.mxu0 %v25356_v60 }
 0x1fe   :  { %19085 = vmatpush3.bf16.msra.mxu0 %v22397_v20 }
 0x1ff   :  { %19086 = vmatprep.subr.bf16.mxu0 %v25356_v60 }
 0x202   :  { %19088 = vmatpush3.bf16.msra.mxu0 %v22405_v21 }
 0x203   :  { %19089 = vmatprep.subr.bf16.mxu0 %v25356_v60 }
 0x206   :  { %19091 = vmatpush3.bf16.msra.mxu0 %v22413_v5 }
 0x207   :  { %19092 = vmatprep.subr.bf16.mxu0 %v25356_v60 }
 0x20a   :  { %19094 = vmatpush3.bf16.msra.mxu0 %v22421_v6 }
 0x20b   :  { %19095 = vmatprep.subr.bf16.mxu0 %v25356_v60 }
 0x20e   :  { %19097 = vmatpush3.bf16.msra.mxu0 %v22430_v42 }
 0x20f   :  { %19098 = vmatprep.subr.bf16.mxu0 %v25356_v60 }
 0x212   :  { %19100 = vmatpush3.bf16.msra.mxu0 %v22441_v18 }
 0x213   :  { %19101 = vmatprep.subr.bf16.mxu0 %v25356_v60 }
 0x215   :  { %15478 = vmatmul.mubr.f32.vlgmr.msra.gmra.mrb[18].mxu0 %v1989_v14 }
 0x216   :  { %19103 = vmatpush3.bf16.msra.mxu0 %v22000_v19  ;;  %15512 = vmatprep.mubr.msk.f32.mxu0 %vm21880_vm1, %v25379_v28 }
 0x217   :  { %19104 = vmatprep.subr.bf16.mxu0 %v25356_v60 }
 0x21a   :  { %19106 = vmatpush3.bf16.msra.mxu0 %v22061_v4 }
 0x21b   :  { %19107 = vmatprep.subr.bf16.mxu0 %v25356_v60 }
 0x21e   :  { %19109 = vmatpush3.bf16.msra.mxu0 %v22087_v37 }
 0x21f   :  { %19110 = vmatprep.subr.bf16.mxu0 %v25356_v60 }
 0x222   :  { %19112 = vmatpush3.bf16.msra.mxu0 %v22146_v61 }
 0x223   :  { %19113 = vmatprep.subr.bf16.mxu0 %v25356_v60 }
 0x226   :  { %19115 = vmatpush3.bf16.msra.mxu0 %v22175_v44 }
 0x227   :  { %19116 = vmatprep.subr.bf16.mxu0 %v25356_v60 }
 0x22a   :  { %19118 = vmatpush3.bf16.msra.mxu0 %v22216_v24 }
 0x22b   :  { %19119 = vmatprep.subr.bf16.mxu0 %v25356_v60 }
 0x22e   :  { %19121 = vmatpush3.bf16.msra.mxu0 %v22260_v62 }
 0x22f   :  { %19122 = vmatprep.subr.bf16.mxu0 %v25356_v60 }
 0x232   :  { %19124 = vmatpush3.bf16.msra.mxu0 %v25398_v27 }
 0x233   :  { %19125 = vmatprep.subr.bf16.mxu0 %v25356_v60 }
 0x235   :  { %15513 = vmatmul.mubr.f32.vlgmr.msra.gmra.mrb[18].mxu0 %v1990_v13 }
 0x236   :  { %19127 = vmatpush3.bf16.msra.mxu0 %v25401_v32  ;;  %15547 = vmatprep.mubr.msk.f32.mxu0 %vm21880_vm1, %v25379_v28 }
 0x237   :  { %19128 = vmatprep.subr.bf16.mxu0 %v25356_v60 }
 0x23a   :  { %19130 = vmatpush3.bf16.msra.mxu0 %v25404_v63 }
 0x23b   :  { %19131 = vmatprep.subr.bf16.mxu0 %v25356_v60 }
 0x23e   :  { %19133 = vmatpush3.bf16.msra.mxu0 %v22351_v12 }
 0x23f   :  { %19134 = vmatprep.subr.bf16.mxu0 %v25356_v60 }
 0x242   :  { %19136 = vmatpush3.bf16.msra.mxu0 %v22357_v26 }
 0x243   :  { %19137 = vmatprep.subr.bf16.mxu0 %v25356_v60 }
 0x246   :  { %19139 = vmatpush3.bf16.msra.mxu0 %v22363_v48 }
 0x247   :  { %19140 = vmatprep.subr.bf16.mxu0 %v25356_v60 }
 0x24a   :  { %19142 = vmatpush3.bf16.msra.mxu0 %v22369_v38 }
 0x24b   :  { %19143 = vmatprep.subr.bf16.mxu0 %v25356_v60 }
 0x24e   :  { %19145 = vmatpush3.bf16.msra.mxu0 %v22371_v17 }
 0x24f   :  { %19146 = vmatprep.subr.bf16.mxu0 %v25356_v60 }
 0x252   :  { %19148 = vmatpush3.bf16.msra.mxu0 %v22373_v41 }
 0x253   :  { %19149 = vmatprep.subr.bf16.mxu0 %v25356_v60 }
 0x255   :  { %15548 = vmatmul.mubr.f32.vlgmr.msra.gmra.mrb[18].mxu0 %v22663_v1 }
 0x256   :  { %19151 = vmatpush3.bf16.msra.mxu0 %v22000_v19  ;;  %15582 = vmatprep.mubr.msk.f32.mxu0 %vm21880_vm1, %v25379_v28 }
 0x257   :  { %19152 = vmatprep.subr.bf16.mxu0 %v25356_v60 }
 0x25a   :  { %19154 = vmatpush3.bf16.msra.mxu0 %v22061_v4 }
 0x25b   :  { %19155 = vmatprep.subr.bf16.mxu0 %v25356_v60 }
 0x25e   :  { %19157 = vmatpush3.bf16.msra.mxu0 %v22087_v37 }
 0x25f   :  { %19158 = vmatprep.subr.bf16.mxu0 %v25356_v60 }
 0x262   :  { %19160 = vmatpush3.bf16.msra.mxu0 %v22146_v61 }
 0x263   :  { %19161 = vmatprep.subr.bf16.mxu0 %v25356_v60 }
 0x266   :  { %19163 = vmatpush3.bf16.msra.mxu0 %v22175_v44 }
 0x267   :  { %19164 = vmatprep.subr.bf16.mxu0 %v25356_v60 }
 0x26a   :  { %19166 = vmatpush3.bf16.msra.mxu0 %v22216_v24 }
 0x26b   :  { %19167 = vmatprep.subr.bf16.mxu0 %v25356_v60 }
 0x26e   :  { %19169 = vmatpush3.bf16.msra.mxu0 %v22260_v62 }
 0x26f   :  { %19170 = vmatprep.subr.bf16.mxu0 %v25356_v60 }
 0x272   :  { %19172 = vmatpush3.bf16.msra.mxu0 %v25398_v27 }
 0x273   :  { %19317 = vmatprep.subr.bf16.mxu0 %v25356_v60 }
 0x275   :  { %15583 = vmatmul.mubr.f32.vlgmr.msra.gmra.mrb[18].mxu0 %v22663_v1 }
 0x276   :  { %19319 = vmatpush3.bf16.msra.mxu0 %v22000_v19  ;;  %15827 = vmatprep.mubr.msk.f32.mxu0 %vm21880_vm1, %v25379_v28 }
 0x277   :  { %19320 = vmatprep.subr.bf16.mxu0 %v25356_v60 }
 0x27a   :  { %19322 = vmatpush3.bf16.msra.mxu0 %v22061_v4 }
 0x27b   :  { %19323 = vmatprep.subr.bf16.mxu0 %v25356_v60 }
 0x27e   :  { %19325 = vmatpush3.bf16.msra.mxu0 %v22087_v37 }
 0x27f   :  { %19326 = vmatprep.subr.bf16.mxu0 %v25356_v60 }
 0x282   :  { %19328 = vmatpush3.bf16.msra.mxu0 %v22146_v61 }
 0x283   :  { %19329 = vmatprep.subr.bf16.mxu0 %v25356_v60 }
 0x286   :  { %19331 = vmatpush3.bf16.msra.mxu0 %v22175_v44 }
 0x287   :  { %19332 = vmatprep.subr.bf16.mxu0 %v25356_v60 }
 0x28a   :  { %19334 = vmatpush3.bf16.msra.mxu0 %v22216_v24 }
 0x28b   :  { %19335 = vmatprep.subr.bf16.mxu0 %v25356_v60 }
 0x28e   :  { %19337 = vmatpush3.bf16.msra.mxu0 %v22260_v62 }
 0x28f   :  { %19338 = vmatprep.subr.bf16.mxu0 %v25356_v60 }
 0x292   :  { %19340 = vmatpush3.bf16.msra.mxu0 %v25398_v27 }
 0x293   :  { %19341 = vmatprep.subr.bf16.mxu0 %v25356_v60 }
 0x348   :  { %v2544_v10 = vpop.f32.mrb[18].mxu0 }
 0x349   :  { %v2548_v35 = vadd.f32 %v22630_v59, %v2544_v10  ;;  %v15584_v58 = vpop.f32.mrb[19].mxu0 }
 0x34b   :  { %2549 = vst [vmem:[%s25151_s8 + $0x8] sm:$0xff] %v2548_v35  ;;  %v22781_v54 = vand.u32 4294901760, %v2548_v35 }
 0x34d   :  { %v2632_v51 = vsub.f32 %v2548_v35, %v22781_v54 }
 0x34f   :  { %v2633_v16 = vand.u32 4294901760, %v2632_v51 }
 0x351   :  { %v2634_v53 = vsub.f32 %v2632_v51, %v2633_v16 }
 0x353   :  { %v2635_v57 = vand.u32 4294901760, %v2634_v53 }
 0x355   :  { %15618 = vmatmul.mubr.f32.vlgmr.msra.gmra.mrb[18].mxu1 %v2635_v57 }
 0x356   :  { %19199 = vmatpush3.bf16.msra.mxu1 %v25413_v8  ;;  %15652 = vmatprep.mubr.msk.f32.mxu1 %vm21880_vm1, %v25379_v28 }
 0x357   :  { %19200 = vmatprep.subr.bf16.mxu1 %v25356_v60 }
 0x35a   :  { %19202 = vmatpush3.bf16.msra.mxu1 %v25414_v15 }
 0x35b   :  { %19203 = vmatprep.subr.bf16.mxu1 %v25356_v60 }
 0x35e   :  { %19205 = vmatpush3.bf16.msra.mxu1 %v25415_v30 }
 0x35f   :  { %19206 = vmatprep.subr.bf16.mxu1 %v25356_v60 }
 0x362   :  { %19208 = vmatpush3.bf16.msra.mxu1 %v25416_v34 }
 0x363   :  { %19209 = vmatprep.subr.bf16.mxu1 %v25356_v60 }
 0x366   :  { %19211 = vmatpush3.bf16.msra.mxu1 %v25417_v45 }
 0x367   :  { %19212 = vmatprep.subr.bf16.mxu1 %v25356_v60 }
 0x36a   :  { %19214 = vmatpush3.bf16.msra.mxu1 %v25418_v40 }
 0x36b   :  { %19215 = vmatprep.subr.bf16.mxu1 %v25356_v60 }
 0x36e   :  { %19217 = vmatpush3.bf16.msra.mxu1 %v25419_v39 }
 0x36f   :  { %19218 = vmatprep.subr.bf16.mxu1 %v25356_v60 }
 0x372   :  { %19220 = vmatpush3.bf16.msra.mxu1 %v22339_v52 }
 0x373   :  { %19221 = vmatprep.subr.bf16.mxu1 %v25356_v60 }
 0x375   :  { %15653 = vmatmul.mubr.f32.vlgmr.msra.gmra.mrb[18].mxu1 %v22781_v54 }
 0x376   :  { %19223 = vmatpush3.bf16.msra.mxu1 %v22378_v43  ;;  %15687 = vmatprep.mubr.msk.f32.mxu1 %vm21880_vm1, %v25379_v28 }
 0x377   :  { %19224 = vmatprep.subr.bf16.mxu1 %v25356_v60 }
 0x37a   :  { %19226 = vmatpush3.bf16.msra.mxu1 %v22387_v11 }
 0x37b   :  { %19227 = vmatprep.subr.bf16.mxu1 %v25356_v60 }
 0x37e   :  { %19229 = vmatpush3.bf16.msra.mxu1 %v22397_v20 }
 0x37f   :  { %19230 = vmatprep.subr.bf16.mxu1 %v25356_v60 }
 0x382   :  { %19232 = vmatpush3.bf16.msra.mxu1 %v22405_v21 }
 0x383   :  { %19233 = vmatprep.subr.bf16.mxu1 %v25356_v60 }
 0x386   :  { %19235 = vmatpush3.bf16.msra.mxu1 %v22413_v5 }
 0x387   :  { %19236 = vmatprep.subr.bf16.mxu1 %v25356_v60 }
 0x38a   :  { %19238 = vmatpush3.bf16.msra.mxu1 %v22421_v6 }
 0x38b   :  { %19239 = vmatprep.subr.bf16.mxu1 %v25356_v60 }
 0x38e   :  { %19241 = vmatpush3.bf16.msra.mxu1 %v22430_v42 }
 0x38f   :  { %19242 = vmatprep.subr.bf16.mxu1 %v25356_v60 }
 0x392   :  { %19244 = vmatpush3.bf16.msra.mxu1 %v22441_v18 }
 0x393   :  { %19245 = vmatprep.subr.bf16.mxu1 %v25356_v60 }
 0x395   :  { %15688 = vmatmul.mubr.f32.vlgmr.msra.gmra.mrb[18].mxu1 %v2632_v51 }
 0x396   :  { %19247 = vmatpush3.bf16.msra.mxu1 %v22000_v19  ;;  %15722 = vmatprep.mubr.msk.f32.mxu1 %vm21880_vm1, %v25379_v28 }
 0x397   :  { %19248 = vmatprep.subr.bf16.mxu1 %v25356_v60 }
 0x39a   :  { %19250 = vmatpush3.bf16.msra.mxu1 %v22061_v4 }
 0x39b   :  { %19251 = vmatprep.subr.bf16.mxu1 %v25356_v60 }
 0x39e   :  { %19253 = vmatpush3.bf16.msra.mxu1 %v22087_v37 }
 0x39f   :  { %19254 = vmatprep.subr.bf16.mxu1 %v25356_v60 }
 0x3a2   :  { %19256 = vmatpush3.bf16.msra.mxu1 %v22146_v61 }
 0x3a3   :  { %19257 = vmatprep.subr.bf16.mxu1 %v25356_v60 }
 0x3a6   :  { %19259 = vmatpush3.bf16.msra.mxu1 %v22175_v44 }
 0x3a7   :  { %19260 = vmatprep.subr.bf16.mxu1 %v25356_v60 }
 0x3aa   :  { %19262 = vmatpush3.bf16.msra.mxu1 %v22216_v24 }
 0x3ab   :  { %19263 = vmatprep.subr.bf16.mxu1 %v25356_v60 }
 0x3ae   :  { %19265 = vmatpush3.bf16.msra.mxu1 %v22260_v62 }
 0x3af   :  { %19266 = vmatprep.subr.bf16.mxu1 %v25356_v60 }
 0x3b2   :  { %19268 = vmatpush3.bf16.msra.mxu1 %v25398_v27 }
 0x3b3   :  { %19269 = vmatprep.subr.bf16.mxu1 %v25356_v60 }
 0x3b5   :  { %15723 = vmatmul.mubr.f32.vlgmr.msra.gmra.mrb[18].mxu1 %v2633_v16 }
 0x3b6   :  { %19271 = vmatpush3.bf16.msra.mxu1 %v25401_v32  ;;  %15757 = vmatprep.mubr.msk.f32.mxu1 %vm21880_vm1, %v25379_v28 }
 0x3b7   :  { %19272 = vmatprep.subr.bf16.mxu1 %v25356_v60 }
 0x3ba   :  { %19274 = vmatpush3.bf16.msra.mxu1 %v25404_v63 }
 0x3bb   :  { %19275 = vmatprep.subr.bf16.mxu1 %v25356_v60 }
 0x3be   :  { %19277 = vmatpush3.bf16.msra.mxu1 %v22351_v12 }
 0x3bf   :  { %19278 = vmatprep.subr.bf16.mxu1 %v25356_v60 }
 0x3c2   :  { %19280 = vmatpush3.bf16.msra.mxu1 %v22357_v26 }
 0x3c3   :  { %19281 = vmatprep.subr.bf16.mxu1 %v25356_v60 }
 0x3c6   :  { %19283 = vmatpush3.bf16.msra.mxu1 %v22363_v48 }
 0x3c7   :  { %19284 = vmatprep.subr.bf16.mxu1 %v25356_v60 }
 0x3ca   :  { %19286 = vmatpush3.bf16.msra.mxu1 %v22369_v38 }
 0x3cb   :  { %19287 = vmatprep.subr.bf16.mxu1 %v25356_v60 }
 0x3ce   :  { %19289 = vmatpush3.bf16.msra.mxu1 %v22371_v17 }
 0x3cf   :  { %19290 = vmatprep.subr.bf16.mxu1 %v25356_v60 }
 0x3d2   :  { %19292 = vmatpush3.bf16.msra.mxu1 %v22373_v41 }
 0x3d3   :  { %19293 = vmatprep.subr.bf16.mxu1 %v25356_v60 }
 0x3d5   :  { %15758 = vmatmul.mubr.f32.vlgmr.msra.gmra.mrb[18].mxu1 %v22781_v54 }
 0x3d6   :  { %19295 = vmatpush3.bf16.msra.mxu1 %v22000_v19  ;;  %15792 = vmatprep.mubr.msk.f32.mxu1 %vm21880_vm1, %v25379_v28 }
 0x3d7   :  { %19296 = vmatprep.subr.bf16.mxu1 %v25356_v60 }
 0x3da   :  { %19298 = vmatpush3.bf16.msra.mxu1 %v22061_v4 }
 0x3db   :  { %19299 = vmatprep.subr.bf16.mxu1 %v25356_v60 }
 0x3de   :  { %19301 = vmatpush3.bf16.msra.mxu1 %v22087_v37 }
 0x3df   :  { %19302 = vmatprep.subr.bf16.mxu1 %v25356_v60 }
 0x3e2   :  { %19304 = vmatpush3.bf16.msra.mxu1 %v22146_v61 }
 0x3e3   :  { %19305 = vmatprep.subr.bf16.mxu1 %v25356_v60 }
 0x3e6   :  { %19307 = vmatpush3.bf16.msra.mxu1 %v22175_v44 }
 0x3e7   :  { %19308 = vmatprep.subr.bf16.mxu1 %v25356_v60 }
 0x3ea   :  { %19310 = vmatpush3.bf16.msra.mxu1 %v22216_v24 }
 0x3eb   :  { %19311 = vmatprep.subr.bf16.mxu1 %v25356_v60 }
 0x3ee   :  { %19313 = vmatpush3.bf16.msra.mxu1 %v22260_v62 }
 0x3ef   :  { %19314 = vmatprep.subr.bf16.mxu1 %v25356_v60 }
 0x3f2   :  { %19316 = vmatpush3.bf16.msra.mxu1 %v25398_v27 }
 0x3f3   :  { %19461 = vmatprep.subr.bf16.mxu1 %v25356_v60 }
 0x3f5   :  { %15793 = vmatmul.mubr.f32.vlgmr.msra.gmra.mrb[18].mxu1 %v22781_v54 }
 0x3f6   :  { %19463 = vmatpush3.bf16.msra.mxu1 %v22000_v19  ;;  %16037 = vmatprep.mubr.msk.f32.mxu1 %vm21880_vm1, %v25379_v28 }
 0x3f7   :  { %19464 = vmatprep.subr.bf16.mxu1 %v25356_v60 }
 0x3fa   :  { %19466 = vmatpush3.bf16.msra.mxu1 %v22061_v4 }
 0x3fb   :  { %19467 = vmatprep.subr.bf16.mxu1 %v25356_v60 }
 0x3fe   :  { %19469 = vmatpush3.bf16.msra.mxu1 %v22087_v37 }
 0x3ff   :  { %19470 = vmatprep.subr.bf16.mxu1 %v25356_v60 }
 0x402   :  { %19472 = vmatpush3.bf16.msra.mxu1 %v22146_v61 }
 0x403   :  { %19473 = vmatprep.subr.bf16.mxu1 %v25356_v60 }
 0x406   :  { %19475 = vmatpush3.bf16.msra.mxu1 %v22175_v44 }
 0x407   :  { %19476 = vmatprep.subr.bf16.mxu1 %v25356_v60 }
 0x40a   :  { %19478 = vmatpush3.bf16.msra.mxu1 %v22216_v24 }
 0x40b   :  { %19479 = vmatprep.subr.bf16.mxu1 %v25356_v60 }
 0x40e   :  { %19481 = vmatpush3.bf16.msra.mxu1 %v22260_v62 }
 0x40f   :  { %19482 = vmatprep.subr.bf16.mxu1 %v25356_v60 }
 0x412   :  { %19484 = vmatpush3.bf16.msra.mxu1 %v25398_v27 }
 0x413   :  { %19485 = vmatprep.subr.bf16.mxu1 %v25356_v60 }
 0x4c8   :  { %v3187_v59 = vpop.f32.mrb[18].mxu1 }
 0x4c9   :  { %v3191_v46 = vadd.f32 %v22634_v23, %v3187_v59  ;;  %v15794_v36 = vpop.f32.mrb[19].mxu1 }
 0x4cb   :  { %3192 = vst [vmem:[%s25151_s8 + $0x10] sm:$0xff] %v3191_v46  ;;  %v22899_v1 = vand.u32 4294901760, %v3191_v46 }
 0x4cd   :  { %v3275_v14 = vsub.f32 %v3191_v46, %v22899_v1 }
 0x4cf   :  { %v3276_v13 = vand.u32 4294901760, %v3275_v14 }
 0x4d1   :  { %v3277_v7 = vsub.f32 %v3275_v14, %v3276_v13 }
 0x4d3   :  { %v3278_v3 = vand.u32 4294901760, %v3277_v7 }
 0x4d5   :  { %15828 = vmatmul.mubr.f32.vlgmr.msra.gmra.mrb[20].mxu0 %v3278_v3 }
 0x4d6   :  { %19343 = vmatpush3.bf16.msra.mxu0 %v25413_v8  ;;  %15862 = vmatprep.mubr.msk.f32.mxu0 %vm21880_vm1, %v25379_v28 }
 0x4d7   :  { %19344 = vmatprep.subr.bf16.mxu0 %v25356_v60 }
 0x4da   :  { %19346 = vmatpush3.bf16.msra.mxu0 %v25414_v15 }
 0x4db   :  { %19347 = vmatprep.subr.bf16.mxu0 %v25356_v60 }
 0x4de   :  { %19349 = vmatpush3.bf16.msra.mxu0 %v25415_v30 }
 0x4df   :  { %19350 = vmatprep.subr.bf16.mxu0 %v25356_v60 }
 0x4e2   :  { %19352 = vmatpush3.bf16.msra.mxu0 %v25416_v34 }
 0x4e3   :  { %19353 = vmatprep.subr.bf16.mxu0 %v25356_v60 }
 0x4e6   :  { %19355 = vmatpush3.bf16.msra.mxu0 %v25417_v45 }
 0x4e7   :  { %19356 = vmatprep.subr.bf16.mxu0 %v25356_v60 }
 0x4ea   :  { %19358 = vmatpush3.bf16.msra.mxu0 %v25418_v40 }
 0x4eb   :  { %19359 = vmatprep.subr.bf16.mxu0 %v25356_v60 }
 0x4ee   :  { %19361 = vmatpush3.bf16.msra.mxu0 %v25419_v39 }
 0x4ef   :  { %19362 = vmatprep.subr.bf16.mxu0 %v25356_v60 }
 0x4f2   :  { %19364 = vmatpush3.bf16.msra.mxu0 %v22339_v52 }
 0x4f3   :  { %19365 = vmatprep.subr.bf16.mxu0 %v25356_v60 }
 0x4f5   :  { %15863 = vmatmul.mubr.f32.vlgmr.msra.gmra.mrb[20].mxu0 %v22899_v1 }
 0x4f6   :  { %19367 = vmatpush3.bf16.msra.mxu0 %v22378_v43  ;;  %15897 = vmatprep.mubr.msk.f32.mxu0 %vm21880_vm1, %v25379_v28 }
 0x4f7   :  { %19368 = vmatprep.subr.bf16.mxu0 %v25356_v60 }
 0x4fa   :  { %19370 = vmatpush3.bf16.msra.mxu0 %v22387_v11 }
 0x4fb   :  { %19371 = vmatprep.subr.bf16.mxu0 %v25356_v60 }
 0x4fe   :  { %19373 = vmatpush3.bf16.msra.mxu0 %v22397_v20 }
 0x4ff   :  { %19374 = vmatprep.subr.bf16.mxu0 %v25356_v60 }
 0x502   :  { %19376 = vmatpush3.bf16.msra.mxu0 %v22405_v21 }
 0x503   :  { %19377 = vmatprep.subr.bf16.mxu0 %v25356_v60 }
 0x506   :  { %19379 = vmatpush3.bf16.msra.mxu0 %v22413_v5 }
 0x507   :  { %19380 = vmatprep.subr.bf16.mxu0 %v25356_v60 }
 0x50a   :  { %19382 = vmatpush3.bf16.msra.mxu0 %v22421_v6 }
 0x50b   :  { %19383 = vmatprep.subr.bf16.mxu0 %v25356_v60 }
 0x50e   :  { %19385 = vmatpush3.bf16.msra.mxu0 %v22430_v42 }
 0x50f   :  { %19386 = vmatprep.subr.bf16.mxu0 %v25356_v60 }
 0x512   :  { %19388 = vmatpush3.bf16.msra.mxu0 %v22441_v18 }
 0x513   :  { %19389 = vmatprep.subr.bf16.mxu0 %v25356_v60 }
 0x515   :  { %15898 = vmatmul.mubr.f32.vlgmr.msra.gmra.mrb[20].mxu0 %v3275_v14 }
 0x516   :  { %19391 = vmatpush3.bf16.msra.mxu0 %v22000_v19  ;;  %15932 = vmatprep.mubr.msk.f32.mxu0 %vm21880_vm1, %v25379_v28 }
 0x517   :  { %19392 = vmatprep.subr.bf16.mxu0 %v25356_v60 }
 0x51a   :  { %19394 = vmatpush3.bf16.msra.mxu0 %v22061_v4 }
 0x51b   :  { %19395 = vmatprep.subr.bf16.mxu0 %v25356_v60 }
 0x51e   :  { %19397 = vmatpush3.bf16.msra.mxu0 %v22087_v37 }
 0x51f   :  { %19398 = vmatprep.subr.bf16.mxu0 %v25356_v60 }
 0x522   :  { %19400 = vmatpush3.bf16.msra.mxu0 %v22146_v61 }
 0x523   :  { %19401 = vmatprep.subr.bf16.mxu0 %v25356_v60 }
 0x526   :  { %19403 = vmatpush3.bf16.msra.mxu0 %v22175_v44 }
 0x527   :  { %19404 = vmatprep.subr.bf16.mxu0 %v25356_v60 }
 0x52a   :  { %19406 = vmatpush3.bf16.msra.mxu0 %v22216_v24 }
 0x52b   :  { %19407 = vmatprep.subr.bf16.mxu0 %v25356_v60 }
 0x52e   :  { %19409 = vmatpush3.bf16.msra.mxu0 %v22260_v62 }
 0x52f   :  { %19410 = vmatprep.subr.bf16.mxu0 %v25356_v60 }
 0x532   :  { %19412 = vmatpush3.bf16.msra.mxu0 %v25398_v27 }
 0x533   :  { %19413 = vmatprep.subr.bf16.mxu0 %v25356_v60 }
 0x535   :  { %15933 = vmatmul.mubr.f32.vlgmr.msra.gmra.mrb[20].mxu0 %v3276_v13 }
 0x536   :  { %19415 = vmatpush3.bf16.msra.mxu0 %v25401_v32  ;;  %15967 = vmatprep.mubr.msk.f32.mxu0 %vm21880_vm1, %v25379_v28 }
 0x537   :  { %19416 = vmatprep.subr.bf16.mxu0 %v25356_v60 }
 0x53a   :  { %19418 = vmatpush3.bf16.msra.mxu0 %v25404_v63 }
 0x53b   :  { %19419 = vmatprep.subr.bf16.mxu0 %v25356_v60 }
 0x53e   :  { %19421 = vmatpush3.bf16.msra.mxu0 %v22351_v12 }
 0x53f   :  { %19422 = vmatprep.subr.bf16.mxu0 %v25356_v60 }
 0x542   :  { %19424 = vmatpush3.bf16.msra.mxu0 %v22357_v26 }
 0x543   :  { %19425 = vmatprep.subr.bf16.mxu0 %v25356_v60 }
 0x546   :  { %19427 = vmatpush3.bf16.msra.mxu0 %v22363_v48 }
 0x547   :  { %19428 = vmatprep.subr.bf16.mxu0 %v25356_v60 }
 0x54a   :  { %19430 = vmatpush3.bf16.msra.mxu0 %v22369_v38 }
 0x54b   :  { %19431 = vmatprep.subr.bf16.mxu0 %v25356_v60 }
 0x54e   :  { %19433 = vmatpush3.bf16.msra.mxu0 %v22371_v17 }
 0x54f   :  { %19434 = vmatprep.subr.bf16.mxu0 %v25356_v60 }
 0x552   :  { %19436 = vmatpush3.bf16.msra.mxu0 %v22373_v41 }
 0x553   :  { %19437 = vmatprep.subr.bf16.mxu0 %v25356_v60 }
 0x555   :  { %15968 = vmatmul.mubr.f32.vlgmr.msra.gmra.mrb[20].mxu0 %v22899_v1 }
 0x556   :  { %19439 = vmatpush3.bf16.msra.mxu0 %v22000_v19  ;;  %16002 = vmatprep.mubr.msk.f32.mxu0 %vm21880_vm1, %v25379_v28 }
 0x557   :  { %19440 = vmatprep.subr.bf16.mxu0 %v25356_v60 }
 0x55a   :  { %19442 = vmatpush3.bf16.msra.mxu0 %v22061_v4 }
 0x55b   :  { %19443 = vmatprep.subr.bf16.mxu0 %v25356_v60 }
 0x55e   :  { %19445 = vmatpush3.bf16.msra.mxu0 %v22087_v37 }
 0x55f   :  { %19446 = vmatprep.subr.bf16.mxu0 %v25356_v60 }
 0x562   :  { %19448 = vmatpush3.bf16.msra.mxu0 %v22146_v61 }
 0x563   :  { %19449 = vmatprep.subr.bf16.mxu0 %v25356_v60 }
 0x566   :  { %19451 = vmatpush3.bf16.msra.mxu0 %v22175_v44 }
 0x567   :  { %19452 = vmatprep.subr.bf16.mxu0 %v25356_v60 }
 0x56a   :  { %19454 = vmatpush3.bf16.msra.mxu0 %v22216_v24 }
 0x56b   :  { %19455 = vmatprep.subr.bf16.mxu0 %v25356_v60 }
 0x56e   :  { %19457 = vmatpush3.bf16.msra.mxu0 %v22260_v62 }
 0x56f   :  { %19458 = vmatprep.subr.bf16.mxu0 %v25356_v60 }
 0x572   :  { %19460 = vmatpush3.bf16.msra.mxu0 %v25398_v27 }
 0x573   :  { %19605 = vmatprep.subr.bf16.mxu0 %v25356_v60 }
 0x575   :  { %16003 = vmatmul.mubr.f32.vlgmr.msra.gmra.mrb[20].mxu0 %v22899_v1 }
 0x576   :  { %19607 = vmatpush3.bf16.msra.mxu0 %v22000_v19  ;;  %16247 = vmatprep.mubr.msk.f32.mxu0 %vm21880_vm1, %v25379_v28 }
 0x577   :  { %19608 = vmatprep.subr.bf16.mxu0 %v25356_v60 }
 0x57a   :  { %19610 = vmatpush3.bf16.msra.mxu0 %v22061_v4 }
 0x57b   :  { %19611 = vmatprep.subr.bf16.mxu0 %v25356_v60 }
 0x57e   :  { %19613 = vmatpush3.bf16.msra.mxu0 %v22087_v37 }
 0x57f   :  { %19614 = vmatprep.subr.bf16.mxu0 %v25356_v60 }
 0x582   :  { %19616 = vmatpush3.bf16.msra.mxu0 %v22146_v61 }
 0x583   :  { %19617 = vmatprep.subr.bf16.mxu0 %v25356_v60 }
 0x586   :  { %19619 = vmatpush3.bf16.msra.mxu0 %v22175_v44 }
 0x587   :  { %19620 = vmatprep.subr.bf16.mxu0 %v25356_v60 }
 0x58a   :  { %19622 = vmatpush3.bf16.msra.mxu0 %v22216_v24 }
 0x58b   :  { %19623 = vmatprep.subr.bf16.mxu0 %v25356_v60 }
 0x58e   :  { %19625 = vmatpush3.bf16.msra.mxu0 %v22260_v62 }
 0x58f   :  { %19626 = vmatprep.subr.bf16.mxu0 %v25356_v60 }
 0x592   :  { %19628 = vmatpush3.bf16.msra.mxu0 %v25398_v27 }
 0x593   :  { %19629 = vmatprep.subr.bf16.mxu0 %v25356_v60 }
 0x648   :  { %v3830_v23 = vpop.f32.mrb[20].mxu0 }
 0x649   :  { %v3834_v10 = vadd.f32 %v22632_v22, %v3830_v23  ;;  %v16004_v35 = vpop.f32.mrb[21].mxu0 }
 0x64b   :  { %3835 = vst [vmem:[%s25151_s8 + $0x18] sm:$0xff] %v3834_v10  ;;  %v23017_v58 = vand.u32 4294901760, %v3834_v10 }
 0x64d   :  { %v3918_v54 = vsub.f32 %v3834_v10, %v23017_v58 }
 0x64f   :  { %v3919_v51 = vand.u32 4294901760, %v3918_v54 }
 0x651   :  { %v3920_v16 = vsub.f32 %v3918_v54, %v3919_v51 }
 0x653   :  { %v3921_v53 = vand.u32 4294901760, %v3920_v16 }
 0x655   :  { %16038 = vmatmul.mubr.f32.vlgmr.msra.gmra.mrb[20].mxu1 %v3921_v53 }
 0x656   :  { %19487 = vmatpush3.bf16.msra.mxu1 %v25413_v8  ;;  %16072 = vmatprep.mubr.msk.f32.mxu1 %vm21880_vm1, %v25379_v28 }
 0x657   :  { %19488 = vmatprep.subr.bf16.mxu1 %v25356_v60 }
 0x65a   :  { %19490 = vmatpush3.bf16.msra.mxu1 %v25414_v15 }
 0x65b   :  { %19491 = vmatprep.subr.bf16.mxu1 %v25356_v60 }
 0x65e   :  { %19493 = vmatpush3.bf16.msra.mxu1 %v25415_v30 }
 0x65f   :  { %19494 = vmatprep.subr.bf16.mxu1 %v25356_v60 }
 0x662   :  { %19496 = vmatpush3.bf16.msra.mxu1 %v25416_v34 }
 0x663   :  { %19497 = vmatprep.subr.bf16.mxu1 %v25356_v60 }
 0x666   :  { %19499 = vmatpush3.bf16.msra.mxu1 %v25417_v45 }
 0x667   :  { %19500 = vmatprep.subr.bf16.mxu1 %v25356_v60 }
 0x66a   :  { %19502 = vmatpush3.bf16.msra.mxu1 %v25418_v40 }
 0x66b   :  { %19503 = vmatprep.subr.bf16.mxu1 %v25356_v60 }
 0x66e   :  { %19505 = vmatpush3.bf16.msra.mxu1 %v25419_v39 }
 0x66f   :  { %19506 = vmatprep.subr.bf16.mxu1 %v25356_v60 }
 0x672   :  { %19508 = vmatpush3.bf16.msra.mxu1 %v22339_v52 }
 0x673   :  { %19509 = vmatprep.subr.bf16.mxu1 %v25356_v60 }
 0x675   :  { %16073 = vmatmul.mubr.f32.vlgmr.msra.gmra.mrb[20].mxu1 %v23017_v58 }
 0x676   :  { %19511 = vmatpush3.bf16.msra.mxu1 %v22378_v43  ;;  %16107 = vmatprep.mubr.msk.f32.mxu1 %vm21880_vm1, %v25379_v28 }
 0x677   :  { %19512 = vmatprep.subr.bf16.mxu1 %v25356_v60 }
 0x67a   :  { %19514 = vmatpush3.bf16.msra.mxu1 %v22387_v11 }
 0x67b   :  { %19515 = vmatprep.subr.bf16.mxu1 %v25356_v60 }
 0x67e   :  { %19517 = vmatpush3.bf16.msra.mxu1 %v22397_v20 }
 0x67f   :  { %19518 = vmatprep.subr.bf16.mxu1 %v25356_v60 }
 0x682   :  { %19520 = vmatpush3.bf16.msra.mxu1 %v22405_v21 }
 0x683   :  { %19521 = vmatprep.subr.bf16.mxu1 %v25356_v60 }
 0x686   :  { %19523 = vmatpush3.bf16.msra.mxu1 %v22413_v5 }
 0x687   :  { %19524 = vmatprep.subr.bf16.mxu1 %v25356_v60 }
 0x68a   :  { %19526 = vmatpush3.bf16.msra.mxu1 %v22421_v6 }
 0x68b   :  { %19527 = vmatprep.subr.bf16.mxu1 %v25356_v60 }
 0x68e   :  { %19529 = vmatpush3.bf16.msra.mxu1 %v22430_v42 }
 0x68f   :  { %19530 = vmatprep.subr.bf16.mxu1 %v25356_v60 }
 0x692   :  { %19532 = vmatpush3.bf16.msra.mxu1 %v22441_v18 }
 0x693   :  { %19533 = vmatprep.subr.bf16.mxu1 %v25356_v60 }
 0x695   :  { %16108 = vmatmul.mubr.f32.vlgmr.msra.gmra.mrb[20].mxu1 %v3918_v54 }
 0x696   :  { %19535 = vmatpush3.bf16.msra.mxu1 %v22000_v19  ;;  %16142 = vmatprep.mubr.msk.f32.mxu1 %vm21880_vm1, %v25379_v28 }
 0x697   :  { %19536 = vmatprep.subr.bf16.mxu1 %v25356_v60 }
 0x69a   :  { %19538 = vmatpush3.bf16.msra.mxu1 %v22061_v4 }
 0x69b   :  { %19539 = vmatprep.subr.bf16.mxu1 %v25356_v60 }
 0x69e   :  { %19541 = vmatpush3.bf16.msra.mxu1 %v22087_v37 }
 0x69f   :  { %19542 = vmatprep.subr.bf16.mxu1 %v25356_v60 }
 0x6a2   :  { %19544 = vmatpush3.bf16.msra.mxu1 %v22146_v61 }
 0x6a3   :  { %19545 = vmatprep.subr.bf16.mxu1 %v25356_v60 }
 0x6a6   :  { %19547 = vmatpush3.bf16.msra.mxu1 %v22175_v44 }
 0x6a7   :  { %19548 = vmatprep.subr.bf16.mxu1 %v25356_v60 }
 0x6aa   :  { %19550 = vmatpush3.bf16.msra.mxu1 %v22216_v24 }
 0x6ab   :  { %19551 = vmatprep.subr.bf16.mxu1 %v25356_v60 }
 0x6ae   :  { %19553 = vmatpush3.bf16.msra.mxu1 %v22260_v62 }
 0x6af   :  { %19554 = vmatprep.subr.bf16.mxu1 %v25356_v60 }
 0x6b2   :  { %19556 = vmatpush3.bf16.msra.mxu1 %v25398_v27 }
 0x6b3   :  { %19557 = vmatprep.subr.bf16.mxu1 %v25356_v60 }
 0x6b5   :  { %16143 = vmatmul.mubr.f32.vlgmr.msra.gmra.mrb[20].mxu1 %v3919_v51 }
 0x6b6   :  { %19559 = vmatpush3.bf16.msra.mxu1 %v25401_v32  ;;  %16177 = vmatprep.mubr.msk.f32.mxu1 %vm21880_vm1, %v25379_v28 }
 0x6b7   :  { %19560 = vmatprep.subr.bf16.mxu1 %v25356_v60 }
 0x6ba   :  { %19562 = vmatpush3.bf16.msra.mxu1 %v25404_v63 }
 0x6bb   :  { %19563 = vmatprep.subr.bf16.mxu1 %v25356_v60 }
 0x6be   :  { %19565 = vmatpush3.bf16.msra.mxu1 %v22351_v12 }
 0x6bf   :  { %19566 = vmatprep.subr.bf16.mxu1 %v25356_v60 }
 0x6c2   :  { %19568 = vmatpush3.bf16.msra.mxu1 %v22357_v26 }
 0x6c3   :  { %19569 = vmatprep.subr.bf16.mxu1 %v25356_v60 }
 0x6c6   :  { %19571 = vmatpush3.bf16.msra.mxu1 %v22363_v48 }
 0x6c7   :  { %19572 = vmatprep.subr.bf16.mxu1 %v25356_v60 }
 0x6ca   :  { %19574 = vmatpush3.bf16.msra.mxu1 %v22369_v38 }
 0x6cb   :  { %19575 = vmatprep.subr.bf16.mxu1 %v25356_v60 }
 0x6ce   :  { %19577 = vmatpush3.bf16.msra.mxu1 %v22371_v17 }
 0x6cf   :  { %19578 = vmatprep.subr.bf16.mxu1 %v25356_v60 }
 0x6d2   :  { %19580 = vmatpush3.bf16.msra.mxu1 %v22373_v41 }
 0x6d3   :  { %19581 = vmatprep.subr.bf16.mxu1 %v25356_v60 }
 0x6d5   :  { %16178 = vmatmul.mubr.f32.vlgmr.msra.gmra.mrb[20].mxu1 %v23017_v58 }
 0x6d6   :  { %19583 = vmatpush3.bf16.msra.mxu1 %v22000_v19  ;;  %16212 = vmatprep.mubr.msk.f32.mxu1 %vm21880_vm1, %v25379_v28 }
 0x6d7   :  { %19584 = vmatprep.subr.bf16.mxu1 %v25356_v60 }
 0x6da   :  { %19586 = vmatpush3.bf16.msra.mxu1 %v22061_v4 }
 0x6db   :  { %19587 = vmatprep.subr.bf16.mxu1 %v25356_v60 }
 0x6de   :  { %19589 = vmatpush3.bf16.msra.mxu1 %v22087_v37 }
 0x6df   :  { %19590 = vmatprep.subr.bf16.mxu1 %v25356_v60 }
 0x6e2   :  { %19592 = vmatpush3.bf16.msra.mxu1 %v22146_v61 }
 0x6e3   :  { %19593 = vmatprep.subr.bf16.mxu1 %v25356_v60 }
 0x6e6   :  { %19595 = vmatpush3.bf16.msra.mxu1 %v22175_v44 }
 0x6e7   :  { %19596 = vmatprep.subr.bf16.mxu1 %v25356_v60 }
 0x6ea   :  { %19598 = vmatpush3.bf16.msra.mxu1 %v22216_v24 }
 0x6eb   :  { %19599 = vmatprep.subr.bf16.mxu1 %v25356_v60 }
 0x6ee   :  { %19601 = vmatpush3.bf16.msra.mxu1 %v22260_v62 }
 0x6ef   :  { %19602 = vmatprep.subr.bf16.mxu1 %v25356_v60 }
 0x6f2   :  { %19604 = vmatpush3.bf16.msra.mxu1 %v25398_v27 }
 0x6f3   :  { %19749 = vmatprep.subr.bf16.mxu1 %v25356_v60 }
 0x6f5   :  { %16213 = vmatmul.mubr.f32.vlgmr.msra.gmra.mrb[20].mxu1 %v23017_v58 }
 0x6f6   :  { %19751 = vmatpush3.bf16.msra.mxu1 %v22000_v19  ;;  %16457 = vmatprep.mubr.msk.f32.mxu1 %vm21880_vm1, %v25379_v28 }
 0x6f7   :  { %19752 = vmatprep.subr.bf16.mxu1 %v25356_v60 }
 0x6fa   :  { %19754 = vmatpush3.bf16.msra.mxu1 %v22061_v4 }
 0x6fb   :  { %19755 = vmatprep.subr.bf16.mxu1 %v25356_v60 }
 0x6fe   :  { %19757 = vmatpush3.bf16.msra.mxu1 %v22087_v37 }
 0x6ff   :  { %19758 = vmatprep.subr.bf16.mxu1 %v25356_v60 }
 0x702   :  { %19760 = vmatpush3.bf16.msra.mxu1 %v22146_v61 }
 0x703   :  { %19761 = vmatprep.subr.bf16.mxu1 %v25356_v60 }
 0x706   :  { %19763 = vmatpush3.bf16.msra.mxu1 %v22175_v44 }
 0x707   :  { %19764 = vmatprep.subr.bf16.mxu1 %v25356_v60 }
 0x70a   :  { %19766 = vmatpush3.bf16.msra.mxu1 %v22216_v24 }
 0x70b   :  { %19767 = vmatprep.subr.bf16.mxu1 %v25356_v60 }
 0x70e   :  { %19769 = vmatpush3.bf16.msra.mxu1 %v22260_v62 }
 0x70f   :  { %19770 = vmatprep.subr.bf16.mxu1 %v25356_v60 }
 0x712   :  { %19772 = vmatpush3.bf16.msra.mxu1 %v25398_v27 }
 0x713   :  { %19773 = vmatprep.subr.bf16.mxu1 %v25356_v60 }
 0x7c8   :  { %v4473_v22 = vpop.f32.mrb[20].mxu1 }
 0x7c9   :  { %v4477_v57 = vadd.f32 %v22638_v33, %v4473_v22  ;;  %v16214_v59 = vpop.f32.mrb[21].mxu1 }
 0x7cb   :  { %4478 = vst [vmem:[%s25151_s8 + $0x20] sm:$0xff] %v4477_v57  ;;  %v23135_v46 = vand.u32 4294901760, %v4477_v57 }
 0x7cd   :  { %v4561_v36 = vsub.f32 %v4477_v57, %v23135_v46 }
 0x7cf   :  { %v4562_v1 = vand.u32 4294901760, %v4561_v36 }
 0x7d1   :  { %v4563_v14 = vsub.f32 %v4561_v36, %v4562_v1 }
 0x7d3   :  { %v4564_v13 = vand.u32 4294901760, %v4563_v14 }
 0x7d5   :  { %16248 = vmatmul.mubr.f32.vlgmr.msra.gmra.mrb[22].mxu0 %v4564_v13 }
 0x7d6   :  { %19631 = vmatpush3.bf16.msra.mxu0 %v25413_v8  ;;  %16282 = vmatprep.mubr.msk.f32.mxu0 %vm21880_vm1, %v25379_v28 }
 0x7d7   :  { %19632 = vmatprep.subr.bf16.mxu0 %v25356_v60 }
 0x7da   :  { %19634 = vmatpush3.bf16.msra.mxu0 %v25414_v15 }
 0x7db   :  { %19635 = vmatprep.subr.bf16.mxu0 %v25356_v60 }
 0x7de   :  { %19637 = vmatpush3.bf16.msra.mxu0 %v25415_v30 }
 0x7df   :  { %19638 = vmatprep.subr.bf16.mxu0 %v25356_v60 }
 0x7e2   :  { %19640 = vmatpush3.bf16.msra.mxu0 %v25416_v34 }
 0x7e3   :  { %19641 = vmatprep.subr.bf16.mxu0 %v25356_v60 }
 0x7e6   :  { %19643 = vmatpush3.bf16.msra.mxu0 %v25417_v45 }
 0x7e7   :  { %19644 = vmatprep.subr.bf16.mxu0 %v25356_v60 }
 0x7ea   :  { %19646 = vmatpush3.bf16.msra.mxu0 %v25418_v40 }
 0x7eb   :  { %19647 = vmatprep.subr.bf16.mxu0 %v25356_v60 }
 0x7ee   :  { %19649 = vmatpush3.bf16.msra.mxu0 %v25419_v39 }
 0x7ef   :  { %19650 = vmatprep.subr.bf16.mxu0 %v25356_v60 }
 0x7f2   :  { %19652 = vmatpush3.bf16.msra.mxu0 %v22339_v52 }
 0x7f3   :  { %19653 = vmatprep.subr.bf16.mxu0 %v25356_v60 }
 0x7f5   :  { %16283 = vmatmul.mubr.f32.vlgmr.msra.gmra.mrb[22].mxu0 %v23135_v46 }
 0x7f6   :  { %19655 = vmatpush3.bf16.msra.mxu0 %v22378_v43  ;;  %16317 = vmatprep.mubr.msk.f32.mxu0 %vm21880_vm1, %v25379_v28 }
 0x7f7   :  { %19656 = vmatprep.subr.bf16.mxu0 %v25356_v60 }
 0x7fa   :  { %19658 = vmatpush3.bf16.msra.mxu0 %v22387_v11 }
 0x7fb   :  { %19659 = vmatprep.subr.bf16.mxu0 %v25356_v60 }
 0x7fe   :  { %19661 = vmatpush3.bf16.msra.mxu0 %v22397_v20 }
 0x7ff   :  { %19662 = vmatprep.subr.bf16.mxu0 %v25356_v60 }
 0x802   :  { %19664 = vmatpush3.bf16.msra.mxu0 %v22405_v21 }
 0x803   :  { %19665 = vmatprep.subr.bf16.mxu0 %v25356_v60 }
 0x806   :  { %19667 = vmatpush3.bf16.msra.mxu0 %v22413_v5 }
 0x807   :  { %19668 = vmatprep.subr.bf16.mxu0 %v25356_v60 }
 0x80a   :  { %19670 = vmatpush3.bf16.msra.mxu0 %v22421_v6 }
 0x80b   :  { %19671 = vmatprep.subr.bf16.mxu0 %v25356_v60 }
 0x80e   :  { %19673 = vmatpush3.bf16.msra.mxu0 %v22430_v42 }
 0x80f   :  { %19674 = vmatprep.subr.bf16.mxu0 %v25356_v60 }
 0x812   :  { %19676 = vmatpush3.bf16.msra.mxu0 %v22441_v18 }
 0x813   :  { %19677 = vmatprep.subr.bf16.mxu0 %v25356_v60 }
 0x815   :  { %16318 = vmatmul.mubr.f32.vlgmr.msra.gmra.mrb[22].mxu0 %v4561_v36 }
 0x816   :  { %19679 = vmatpush3.bf16.msra.mxu0 %v22000_v19  ;;  %16352 = vmatprep.mubr.msk.f32.mxu0 %vm21880_vm1, %v25379_v28 }
 0x817   :  { %19680 = vmatprep.subr.bf16.mxu0 %v25356_v60 }
 0x81a   :  { %19682 = vmatpush3.bf16.msra.mxu0 %v22061_v4 }
 0x81b   :  { %19683 = vmatprep.subr.bf16.mxu0 %v25356_v60 }
 0x81e   :  { %19685 = vmatpush3.bf16.msra.mxu0 %v22087_v37 }
 0x81f   :  { %19686 = vmatprep.subr.bf16.mxu0 %v25356_v60 }
 0x822   :  { %19688 = vmatpush3.bf16.msra.mxu0 %v22146_v61 }
 0x823   :  { %19689 = vmatprep.subr.bf16.mxu0 %v25356_v60 }
 0x826   :  { %19691 = vmatpush3.bf16.msra.mxu0 %v22175_v44 }
 0x827   :  { %19692 = vmatprep.subr.bf16.mxu0 %v25356_v60 }
 0x82a   :  { %19694 = vmatpush3.bf16.msra.mxu0 %v22216_v24 }
 0x82b   :  { %19695 = vmatprep.subr.bf16.mxu0 %v25356_v60 }
 0x82e   :  { %19697 = vmatpush3.bf16.msra.mxu0 %v22260_v62 }
 0x82f   :  { %19698 = vmatprep.subr.bf16.mxu0 %v25356_v60 }
 0x832   :  { %19700 = vmatpush3.bf16.msra.mxu0 %v25398_v27 }
 0x833   :  { %19701 = vmatprep.subr.bf16.mxu0 %v25356_v60 }
 0x835   :  { %16353 = vmatmul.mubr.f32.vlgmr.msra.gmra.mrb[22].mxu0 %v4562_v1 }
 0x836   :  { %19703 = vmatpush3.bf16.msra.mxu0 %v25401_v32  ;;  %16387 = vmatprep.mubr.msk.f32.mxu0 %vm21880_vm1, %v25379_v28 }
 0x837   :  { %19704 = vmatprep.subr.bf16.mxu0 %v25356_v60 }
 0x83a   :  { %19706 = vmatpush3.bf16.msra.mxu0 %v25404_v63 }
 0x83b   :  { %19707 = vmatprep.subr.bf16.mxu0 %v25356_v60 }
 0x83e   :  { %19709 = vmatpush3.bf16.msra.mxu0 %v22351_v12 }
 0x83f   :  { %19710 = vmatprep.subr.bf16.mxu0 %v25356_v60 }
 0x842   :  { %19712 = vmatpush3.bf16.msra.mxu0 %v22357_v26 }
 0x843   :  { %19713 = vmatprep.subr.bf16.mxu0 %v25356_v60 }
 0x846   :  { %19715 = vmatpush3.bf16.msra.mxu0 %v22363_v48 }
 0x847   :  { %19716 = vmatprep.subr.bf16.mxu0 %v25356_v60 }
 0x84a   :  { %19718 = vmatpush3.bf16.msra.mxu0 %v22369_v38 }
 0x84b   :  { %19719 = vmatprep.subr.bf16.mxu0 %v25356_v60 }
 0x84e   :  { %19721 = vmatpush3.bf16.msra.mxu0 %v22371_v17 }
 0x84f   :  { %19722 = vmatprep.subr.bf16.mxu0 %v25356_v60 }
 0x852   :  { %19724 = vmatpush3.bf16.msra.mxu0 %v22373_v41 }
 0x853   :  { %19725 = vmatprep.subr.bf16.mxu0 %v25356_v60 }
 0x855   :  { %16388 = vmatmul.mubr.f32.vlgmr.msra.gmra.mrb[22].mxu0 %v23135_v46 }
 0x856   :  { %19727 = vmatpush3.bf16.msra.mxu0 %v22000_v19  ;;  %16422 = vmatprep.mubr.msk.f32.mxu0 %vm21880_vm1, %v25379_v28 }
 0x857   :  { %19728 = vmatprep.subr.bf16.mxu0 %v25356_v60 }
 0x85a   :  { %19730 = vmatpush3.bf16.msra.mxu0 %v22061_v4 }
 0x85b   :  { %19731 = vmatprep.subr.bf16.mxu0 %v25356_v60 }
 0x85e   :  { %19733 = vmatpush3.bf16.msra.mxu0 %v22087_v37 }
 0x85f   :  { %19734 = vmatprep.subr.bf16.mxu0 %v25356_v60 }
 0x862   :  { %19736 = vmatpush3.bf16.msra.mxu0 %v22146_v61 }
 0x863   :  { %19737 = vmatprep.subr.bf16.mxu0 %v25356_v60 }
 0x866   :  { %19739 = vmatpush3.bf16.msra.mxu0 %v22175_v44 }
 0x867   :  { %19740 = vmatprep.subr.bf16.mxu0 %v25356_v60 }
 0x86a   :  { %19742 = vmatpush3.bf16.msra.mxu0 %v22216_v24 }
 0x86b   :  { %19743 = vmatprep.subr.bf16.mxu0 %v25356_v60 }
 0x86e   :  { %19745 = vmatpush3.bf16.msra.mxu0 %v22260_v62 }
 0x86f   :  { %19746 = vmatprep.subr.bf16.mxu0 %v25356_v60 }
 0x872   :  { %19748 = vmatpush3.bf16.msra.mxu0 %v25398_v27 }
 0x873   :  { %19893 = vmatprep.subr.bf16.mxu0 %v25356_v60 }
 0x875   :  { %16423 = vmatmul.mubr.f32.vlgmr.msra.gmra.mrb[22].mxu0 %v23135_v46 }
 0x876   :  { %19895 = vmatpush3.bf16.msra.mxu0 %v22000_v19  ;;  %16667 = vmatprep.mubr.msk.f32.mxu0 %vm21880_vm1, %v25379_v28 }
 0x877   :  { %19896 = vmatprep.subr.bf16.mxu0 %v25356_v60 }
 0x87a   :  { %19898 = vmatpush3.bf16.msra.mxu0 %v22061_v4 }
 0x87b   :  { %19899 = vmatprep.subr.bf16.mxu0 %v25356_v60 }
 0x87e   :  { %19901 = vmatpush3.bf16.msra.mxu0 %v22087_v37 }
 0x87f   :  { %19902 = vmatprep.subr.bf16.mxu0 %v25356_v60 }
 0x882   :  { %19904 = vmatpush3.bf16.msra.mxu0 %v22146_v61 }
 0x883   :  { %19905 = vmatprep.subr.bf16.mxu0 %v25356_v60 }
 0x886   :  { %19907 = vmatpush3.bf16.msra.mxu0 %v22175_v44 }
 0x887   :  { %19908 = vmatprep.subr.bf16.mxu0 %v25356_v60 }
 0x88a   :  { %19910 = vmatpush3.bf16.msra.mxu0 %v22216_v24 }
 0x88b   :  { %19911 = vmatprep.subr.bf16.mxu0 %v25356_v60 }
 0x88e   :  { %19913 = vmatpush3.bf16.msra.mxu0 %v22260_v62 }
 0x88f   :  { %19914 = vmatprep.subr.bf16.mxu0 %v25356_v60 }
 0x892   :  { %19916 = vmatpush3.bf16.msra.mxu0 %v25398_v27 }
 0x893   :  { %19917 = vmatprep.subr.bf16.mxu0 %v25356_v60 }
 0x948   :  { %v5116_v33 = vpop.f32.mrb[22].mxu0 }
 0x949   :  { %v5120_v7 = vadd.f32 %v22636_v55, %v5116_v33  ;;  %v16424_v3 = vpop.f32.mrb[23].mxu0 }
 0x94b   :  { %5121 = vst [vmem:[%s25151_s8 + $0x28] sm:$0xff] %v5120_v7  ;;  %v23253_v23 = vand.u32 4294901760, %v5120_v7 }
 0x94d   :  { %v5204_v10 = vsub.f32 %v5120_v7, %v23253_v23 }
 0x94f   :  { %v5205_v35 = vand.u32 4294901760, %v5204_v10 }
 0x951   :  { %v5206_v58 = vsub.f32 %v5204_v10, %v5205_v35 }
 0x953   :  { %v5207_v54 = vand.u32 4294901760, %v5206_v58 }
 0x955   :  { %16458 = vmatmul.mubr.f32.vlgmr.msra.gmra.mrb[22].mxu1 %v5207_v54 }
 0x956   :  { %19775 = vmatpush3.bf16.msra.mxu1 %v25413_v8  ;;  %16492 = vmatprep.mubr.msk.f32.mxu1 %vm21880_vm1, %v25379_v28 }
 0x957   :  { %19776 = vmatprep.subr.bf16.mxu1 %v25356_v60 }
 0x95a   :  { %19778 = vmatpush3.bf16.msra.mxu1 %v25414_v15 }
 0x95b   :  { %19779 = vmatprep.subr.bf16.mxu1 %v25356_v60 }
 0x95e   :  { %19781 = vmatpush3.bf16.msra.mxu1 %v25415_v30 }
 0x95f   :  { %19782 = vmatprep.subr.bf16.mxu1 %v25356_v60 }
 0x962   :  { %19784 = vmatpush3.bf16.msra.mxu1 %v25416_v34 }
 0x963   :  { %19785 = vmatprep.subr.bf16.mxu1 %v25356_v60 }
 0x966   :  { %19787 = vmatpush3.bf16.msra.mxu1 %v25417_v45 }
 0x967   :  { %19788 = vmatprep.subr.bf16.mxu1 %v25356_v60 }
 0x96a   :  { %19790 = vmatpush3.bf16.msra.mxu1 %v25418_v40 }
 0x96b   :  { %19791 = vmatprep.subr.bf16.mxu1 %v25356_v60 }
 0x96e   :  { %19793 = vmatpush3.bf16.msra.mxu1 %v25419_v39 }
 0x96f   :  { %19794 = vmatprep.subr.bf16.mxu1 %v25356_v60 }
 0x972   :  { %19796 = vmatpush3.bf16.msra.mxu1 %v22339_v52 }
 0x973   :  { %19797 = vmatprep.subr.bf16.mxu1 %v25356_v60 }
 0x975   :  { %16493 = vmatmul.mubr.f32.vlgmr.msra.gmra.mrb[22].mxu1 %v23253_v23 }
 0x976   :  { %19799 = vmatpush3.bf16.msra.mxu1 %v22378_v43  ;;  %16527 = vmatprep.mubr.msk.f32.mxu1 %vm21880_vm1, %v25379_v28 }
 0x977   :  { %19800 = vmatprep.subr.bf16.mxu1 %v25356_v60 }
 0x97a   :  { %19802 = vmatpush3.bf16.msra.mxu1 %v22387_v11 }
 0x97b   :  { %19803 = vmatprep.subr.bf16.mxu1 %v25356_v60 }
 0x97e   :  { %19805 = vmatpush3.bf16.msra.mxu1 %v22397_v20 }
 0x97f   :  { %19806 = vmatprep.subr.bf16.mxu1 %v25356_v60 }
 0x982   :  { %19808 = vmatpush3.bf16.msra.mxu1 %v22405_v21 }
 0x983   :  { %19809 = vmatprep.subr.bf16.mxu1 %v25356_v60 }
 0x986   :  { %19811 = vmatpush3.bf16.msra.mxu1 %v22413_v5 }
 0x987   :  { %19812 = vmatprep.subr.bf16.mxu1 %v25356_v60 }
 0x98a   :  { %19814 = vmatpush3.bf16.msra.mxu1 %v22421_v6 }
 0x98b   :  { %19815 = vmatprep.subr.bf16.mxu1 %v25356_v60 }
 0x98e   :  { %19817 = vmatpush3.bf16.msra.mxu1 %v22430_v42 }
 0x98f   :  { %19818 = vmatprep.subr.bf16.mxu1 %v25356_v60 }
 0x992   :  { %19820 = vmatpush3.bf16.msra.mxu1 %v22441_v18 }
 0x993   :  { %19821 = vmatprep.subr.bf16.mxu1 %v25356_v60 }
 0x995   :  { %16528 = vmatmul.mubr.f32.vlgmr.msra.gmra.mrb[22].mxu1 %v5204_v10 }
 0x996   :  { %19823 = vmatpush3.bf16.msra.mxu1 %v22000_v19  ;;  %16562 = vmatprep.mubr.msk.f32.mxu1 %vm21880_vm1, %v25379_v28 }
 0x997   :  { %19824 = vmatprep.subr.bf16.mxu1 %v25356_v60 }
 0x99a   :  { %19826 = vmatpush3.bf16.msra.mxu1 %v22061_v4 }
 0x99b   :  { %19827 = vmatprep.subr.bf16.mxu1 %v25356_v60 }
 0x99e   :  { %19829 = vmatpush3.bf16.msra.mxu1 %v22087_v37 }
 0x99f   :  { %19830 = vmatprep.subr.bf16.mxu1 %v25356_v60 }
 0x9a2   :  { %19832 = vmatpush3.bf16.msra.mxu1 %v22146_v61 }
 0x9a3   :  { %19833 = vmatprep.subr.bf16.mxu1 %v25356_v60 }
 0x9a6   :  { %19835 = vmatpush3.bf16.msra.mxu1 %v22175_v44 }
 0x9a7   :  { %19836 = vmatprep.subr.bf16.mxu1 %v25356_v60 }
 0x9aa   :  { %19838 = vmatpush3.bf16.msra.mxu1 %v22216_v24 }
 0x9ab   :  { %19839 = vmatprep.subr.bf16.mxu1 %v25356_v60 }
 0x9ae   :  { %19841 = vmatpush3.bf16.msra.mxu1 %v22260_v62 }
 0x9af   :  { %19842 = vmatprep.subr.bf16.mxu1 %v25356_v60 }
 0x9b2   :  { %19844 = vmatpush3.bf16.msra.mxu1 %v25398_v27 }
 0x9b3   :  { %19845 = vmatprep.subr.bf16.mxu1 %v25356_v60 }
 0x9b5   :  { %16563 = vmatmul.mubr.f32.vlgmr.msra.gmra.mrb[22].mxu1 %v5205_v35 }
 0x9b6   :  { %19847 = vmatpush3.bf16.msra.mxu1 %v25401_v32  ;;  %16597 = vmatprep.mubr.msk.f32.mxu1 %vm21880_vm1, %v25379_v28 }
 0x9b7   :  { %19848 = vmatprep.subr.bf16.mxu1 %v25356_v60 }
 0x9ba   :  { %19850 = vmatpush3.bf16.msra.mxu1 %v25404_v63 }
 0x9bb   :  { %19851 = vmatprep.subr.bf16.mxu1 %v25356_v60 }
 0x9be   :  { %19853 = vmatpush3.bf16.msra.mxu1 %v22351_v12 }
 0x9bf   :  { %19854 = vmatprep.subr.bf16.mxu1 %v25356_v60 }
 0x9c2   :  { %19856 = vmatpush3.bf16.msra.mxu1 %v22357_v26 }
 0x9c3   :  { %19857 = vmatprep.subr.bf16.mxu1 %v25356_v60 }
 0x9c6   :  { %19859 = vmatpush3.bf16.msra.mxu1 %v22363_v48 }
 0x9c7   :  { %19860 = vmatprep.subr.bf16.mxu1 %v25356_v60 }
 0x9ca   :  { %19862 = vmatpush3.bf16.msra.mxu1 %v22369_v38 }
 0x9cb   :  { %19863 = vmatprep.subr.bf16.mxu1 %v25356_v60 }
 0x9ce   :  { %19865 = vmatpush3.bf16.msra.mxu1 %v22371_v17 }
 0x9cf   :  { %19866 = vmatprep.subr.bf16.mxu1 %v25356_v60 }
 0x9d2   :  { %19868 = vmatpush3.bf16.msra.mxu1 %v22373_v41 }
 0x9d3   :  { %19869 = vmatprep.subr.bf16.mxu1 %v25356_v60 }
 0x9d5   :  { %16598 = vmatmul.mubr.f32.vlgmr.msra.gmra.mrb[22].mxu1 %v23253_v23 }
 0x9d6   :  { %19871 = vmatpush3.bf16.msra.mxu1 %v22000_v19  ;;  %16632 = vmatprep.mubr.msk.f32.mxu1 %vm21880_vm1, %v25379_v28 }
 0x9d7   :  { %19872 = vmatprep.subr.bf16.mxu1 %v25356_v60 }
 0x9da   :  { %19874 = vmatpush3.bf16.msra.mxu1 %v22061_v4 }
 0x9db   :  { %19875 = vmatprep.subr.bf16.mxu1 %v25356_v60 }
 0x9de   :  { %19877 = vmatpush3.bf16.msra.mxu1 %v22087_v37 }
 0x9df   :  { %19878 = vmatprep.subr.bf16.mxu1 %v25356_v60 }
 0x9e2   :  { %19880 = vmatpush3.bf16.msra.mxu1 %v22146_v61 }
 0x9e3   :  { %19881 = vmatprep.subr.bf16.mxu1 %v25356_v60 }
 0x9e6   :  { %19883 = vmatpush3.bf16.msra.mxu1 %v22175_v44 }
 0x9e7   :  { %19884 = vmatprep.subr.bf16.mxu1 %v25356_v60 }
 0x9ea   :  { %19886 = vmatpush3.bf16.msra.mxu1 %v22216_v24 }
 0x9eb   :  { %19887 = vmatprep.subr.bf16.mxu1 %v25356_v60 }
 0x9ee   :  { %19889 = vmatpush3.bf16.msra.mxu1 %v22260_v62 }
 0x9ef   :  { %19890 = vmatprep.subr.bf16.mxu1 %v25356_v60 }
 0x9f2   :  { %19892 = vmatpush3.bf16.msra.mxu1 %v25398_v27 }
 0x9f3   :  { %20037 = vmatprep.subr.bf16.mxu1 %v25356_v60 }
 0x9f5   :  { %16633 = vmatmul.mubr.f32.vlgmr.msra.gmra.mrb[22].mxu1 %v23253_v23 }
 0x9f6   :  { %20039 = vmatpush3.bf16.msra.mxu1 %v22000_v19  ;;  %16877 = vmatprep.mubr.msk.f32.mxu1 %vm21880_vm1, %v25379_v28 }
 0x9f7   :  { %20040 = vmatprep.subr.bf16.mxu1 %v25356_v60 }
 0x9fa   :  { %20042 = vmatpush3.bf16.msra.mxu1 %v22061_v4 }
 0x9fb   :  { %20043 = vmatprep.subr.bf16.mxu1 %v25356_v60 }
 0x9fe   :  { %20045 = vmatpush3.bf16.msra.mxu1 %v22087_v37 }
 0x9ff   :  { %20046 = vmatprep.subr.bf16.mxu1 %v25356_v60 }
 0xa02   :  { %20048 = vmatpush3.bf16.msra.mxu1 %v22146_v61 }
 0xa03   :  { %20049 = vmatprep.subr.bf16.mxu1 %v25356_v60 }
 0xa06   :  { %20051 = vmatpush3.bf16.msra.mxu1 %v22175_v44 }
 0xa07   :  { %20052 = vmatprep.subr.bf16.mxu1 %v25356_v60 }
 0xa0a   :  { %20054 = vmatpush3.bf16.msra.mxu1 %v22216_v24 }
 0xa0b   :  { %20055 = vmatprep.subr.bf16.mxu1 %v25356_v60 }
 0xa0e   :  { %20057 = vmatpush3.bf16.msra.mxu1 %v22260_v62 }
 0xa0f   :  { %20058 = vmatprep.subr.bf16.mxu1 %v25356_v60 }
 0xa12   :  { %20060 = vmatpush3.bf16.msra.mxu1 %v25398_v27 }
 0xa13   :  { %20061 = vmatprep.subr.bf16.mxu1 %v25356_v60 }
 0xac8   :  { %v5759_v55 = vpop.f32.mrb[22].mxu1 }
 0xac9   :  { %v5763_v51 = vadd.f32 %v22642_v29, %v5759_v55  ;;  %v16634_v16 = vpop.f32.mrb[23].mxu1 }
 0xacb   :  { %5764 = vst [vmem:[%s25151_s8 + $0x30] sm:$0xff] %v5763_v51  ;;  %v23371_v53 = vand.u32 4294901760, %v5763_v51 }
 0xacd   :  { %v5847_v22 = vsub.f32 %v5763_v51, %v23371_v53 }
 0xacf   :  { %v5848_v57 = vand.u32 4294901760, %v5847_v22 }
 0xad1   :  { %v5849_v59 = vsub.f32 %v5847_v22, %v5848_v57 }
 0xad3   :  { %v5850_v46 = vand.u32 4294901760, %v5849_v59 }
 0xad5   :  { %16668 = vmatmul.mubr.f32.vlgmr.msra.gmra.mrb[24].mxu0 %v5850_v46 }
 0xad6   :  { %19919 = vmatpush3.bf16.msra.mxu0 %v25413_v8  ;;  %16702 = vmatprep.mubr.msk.f32.mxu0 %vm21880_vm1, %v25379_v28 }
 0xad7   :  { %19920 = vmatprep.subr.bf16.mxu0 %v25356_v60 }
 0xada   :  { %19922 = vmatpush3.bf16.msra.mxu0 %v25414_v15 }
 0xadb   :  { %19923 = vmatprep.subr.bf16.mxu0 %v25356_v60 }
 0xade   :  { %19925 = vmatpush3.bf16.msra.mxu0 %v25415_v30 }
 0xadf   :  { %19926 = vmatprep.subr.bf16.mxu0 %v25356_v60 }
 0xae2   :  { %19928 = vmatpush3.bf16.msra.mxu0 %v25416_v34 }
 0xae3   :  { %19929 = vmatprep.subr.bf16.mxu0 %v25356_v60 }
 0xae6   :  { %19931 = vmatpush3.bf16.msra.mxu0 %v25417_v45 }
 0xae7   :  { %19932 = vmatprep.subr.bf16.mxu0 %v25356_v60 }
 0xaea   :  { %19934 = vmatpush3.bf16.msra.mxu0 %v25418_v40 }
 0xaeb   :  { %19935 = vmatprep.subr.bf16.mxu0 %v25356_v60 }
 0xaee   :  { %19937 = vmatpush3.bf16.msra.mxu0 %v25419_v39 }
 0xaef   :  { %19938 = vmatprep.subr.bf16.mxu0 %v25356_v60 }
 0xaf2   :  { %19940 = vmatpush3.bf16.msra.mxu0 %v22339_v52 }
 0xaf3   :  { %19941 = vmatprep.subr.bf16.mxu0 %v25356_v60 }
 0xaf5   :  { %16703 = vmatmul.mubr.f32.vlgmr.msra.gmra.mrb[24].mxu0 %v23371_v53 }
 0xaf6   :  { %19943 = vmatpush3.bf16.msra.mxu0 %v22378_v43  ;;  %16737 = vmatprep.mubr.msk.f32.mxu0 %vm21880_vm1, %v25379_v28 }
 0xaf7   :  { %19944 = vmatprep.subr.bf16.mxu0 %v25356_v60 }
 0xafa   :  { %19946 = vmatpush3.bf16.msra.mxu0 %v22387_v11 }
 0xafb   :  { %19947 = vmatprep.subr.bf16.mxu0 %v25356_v60 }
 0xafe   :  { %19949 = vmatpush3.bf16.msra.mxu0 %v22397_v20 }
 0xaff   :  { %19950 = vmatprep.subr.bf16.mxu0 %v25356_v60 }
 0xb02   :  { %19952 = vmatpush3.bf16.msra.mxu0 %v22405_v21 }
 0xb03   :  { %19953 = vmatprep.subr.bf16.mxu0 %v25356_v60 }
 0xb06   :  { %19955 = vmatpush3.bf16.msra.mxu0 %v22413_v5 }
 0xb07   :  { %19956 = vmatprep.subr.bf16.mxu0 %v25356_v60 }
 0xb0a   :  { %19958 = vmatpush3.bf16.msra.mxu0 %v22421_v6 }
 0xb0b   :  { %19959 = vmatprep.subr.bf16.mxu0 %v25356_v60 }
 0xb0e   :  { %19961 = vmatpush3.bf16.msra.mxu0 %v22430_v42 }
 0xb0f   :  { %19962 = vmatprep.subr.bf16.mxu0 %v25356_v60 }
 0xb12   :  { %19964 = vmatpush3.bf16.msra.mxu0 %v22441_v18 }
 0xb13   :  { %19965 = vmatprep.subr.bf16.mxu0 %v25356_v60 }
 0xb15   :  { %16738 = vmatmul.mubr.f32.vlgmr.msra.gmra.mrb[24].mxu0 %v5847_v22 }
 0xb16   :  { %19967 = vmatpush3.bf16.msra.mxu0 %v22000_v19  ;;  %16772 = vmatprep.mubr.msk.f32.mxu0 %vm21880_vm1, %v25379_v28 }
 0xb17   :  { %19968 = vmatprep.subr.bf16.mxu0 %v25356_v60 }
 0xb1a   :  { %19970 = vmatpush3.bf16.msra.mxu0 %v22061_v4 }
 0xb1b   :  { %19971 = vmatprep.subr.bf16.mxu0 %v25356_v60 }
 0xb1e   :  { %19973 = vmatpush3.bf16.msra.mxu0 %v22087_v37 }
 0xb1f   :  { %19974 = vmatprep.subr.bf16.mxu0 %v25356_v60 }
 0xb22   :  { %19976 = vmatpush3.bf16.msra.mxu0 %v22146_v61 }
 0xb23   :  { %19977 = vmatprep.subr.bf16.mxu0 %v25356_v60 }
 0xb26   :  { %19979 = vmatpush3.bf16.msra.mxu0 %v22175_v44 }
 0xb27   :  { %19980 = vmatprep.subr.bf16.mxu0 %v25356_v60 }
 0xb2a   :  { %19982 = vmatpush3.bf16.msra.mxu0 %v22216_v24 }
 0xb2b   :  { %19983 = vmatprep.subr.bf16.mxu0 %v25356_v60 }
 0xb2e   :  { %19985 = vmatpush3.bf16.msra.mxu0 %v22260_v62 }
 0xb2f   :  { %19986 = vmatprep.subr.bf16.mxu0 %v25356_v60 }
 0xb32   :  { %19988 = vmatpush3.bf16.msra.mxu0 %v25398_v27 }
 0xb33   :  { %19989 = vmatprep.subr.bf16.mxu0 %v25356_v60 }
 0xb35   :  { %16773 = vmatmul.mubr.f32.vlgmr.msra.gmra.mrb[24].mxu0 %v5848_v57 }
 0xb36   :  { %19991 = vmatpush3.bf16.msra.mxu0 %v25401_v32  ;;  %16807 = vmatprep.mubr.msk.f32.mxu0 %vm21880_vm1, %v25379_v28 }
 0xb37   :  { %19992 = vmatprep.subr.bf16.mxu0 %v25356_v60 }
 0xb3a   :  { %19994 = vmatpush3.bf16.msra.mxu0 %v25404_v63 }
 0xb3b   :  { %19995 = vmatprep.subr.bf16.mxu0 %v25356_v60 }
 0xb3e   :  { %19997 = vmatpush3.bf16.msra.mxu0 %v22351_v12 }
 0xb3f   :  { %19998 = vmatprep.subr.bf16.mxu0 %v25356_v60 }
 0xb42   :  { %20000 = vmatpush3.bf16.msra.mxu0 %v22357_v26 }
 0xb43   :  { %20001 = vmatprep.subr.bf16.mxu0 %v25356_v60 }
 0xb46   :  { %20003 = vmatpush3.bf16.msra.mxu0 %v22363_v48 }
 0xb47   :  { %20004 = vmatprep.subr.bf16.mxu0 %v25356_v60 }
 0xb4a   :  { %20006 = vmatpush3.bf16.msra.mxu0 %v22369_v38 }
 0xb4b   :  { %20007 = vmatprep.subr.bf16.mxu0 %v25356_v60 }
 0xb4e   :  { %20009 = vmatpush3.bf16.msra.mxu0 %v22371_v17 }
 0xb4f   :  { %20010 = vmatprep.subr.bf16.mxu0 %v25356_v60 }
 0xb52   :  { %20012 = vmatpush3.bf16.msra.mxu0 %v22373_v41 }
 0xb53   :  { %20013 = vmatprep.subr.bf16.mxu0 %v25356_v60 }
 0xb55   :  { %16808 = vmatmul.mubr.f32.vlgmr.msra.gmra.mrb[24].mxu0 %v23371_v53 }
 0xb56   :  { %20015 = vmatpush3.bf16.msra.mxu0 %v22000_v19  ;;  %16842 = vmatprep.mubr.msk.f32.mxu0 %vm21880_vm1, %v25379_v28 }
 0xb57   :  { %20016 = vmatprep.subr.bf16.mxu0 %v25356_v60 }
 0xb5a   :  { %20018 = vmatpush3.bf16.msra.mxu0 %v22061_v4 }
 0xb5b   :  { %20019 = vmatprep.subr.bf16.mxu0 %v25356_v60 }
 0xb5e   :  { %20021 = vmatpush3.bf16.msra.mxu0 %v22087_v37 }
 0xb5f   :  { %20022 = vmatprep.subr.bf16.mxu0 %v25356_v60 }
 0xb62   :  { %20024 = vmatpush3.bf16.msra.mxu0 %v22146_v61 }
 0xb63   :  { %20025 = vmatprep.subr.bf16.mxu0 %v25356_v60 }
 0xb66   :  { %20027 = vmatpush3.bf16.msra.mxu0 %v22175_v44 }
 0xb67   :  { %20028 = vmatprep.subr.bf16.mxu0 %v25356_v60 }
 0xb6a   :  { %20030 = vmatpush3.bf16.msra.mxu0 %v22216_v24 }
 0xb6b   :  { %20031 = vmatprep.subr.bf16.mxu0 %v25356_v60 }
 0xb6e   :  { %20033 = vmatpush3.bf16.msra.mxu0 %v22260_v62 }
 0xb6f   :  { %20034 = vmatprep.subr.bf16.mxu0 %v25356_v60 }
 0xb72   :  { %20036 = vmatpush3.bf16.msra.mxu0 %v25398_v27 }
 0xb73   :  { %20181 = vmatprep.subr.bf16.mxu0 %v25356_v60 }
 0xb75   :  { %16843 = vmatmul.mubr.f32.vlgmr.msra.gmra.mrb[24].mxu0 %v23371_v53 }
 0xb76   :  { %20183 = vmatpush3.bf16.msra.mxu0 %v22000_v19  ;;  %17087 = vmatprep.mubr.msk.f32.mxu0 %vm21880_vm1, %v25379_v28 }
 0xb77   :  { %20184 = vmatprep.subr.bf16.mxu0 %v25356_v60 }
 0xb7a   :  { %20186 = vmatpush3.bf16.msra.mxu0 %v22061_v4 }
 0xb7b   :  { %20187 = vmatprep.subr.bf16.mxu0 %v25356_v60 }
 0xb7e   :  { %20189 = vmatpush3.bf16.msra.mxu0 %v22087_v37 }
 0xb7f   :  { %20190 = vmatprep.subr.bf16.mxu0 %v25356_v60 }
 0xb82   :  { %20192 = vmatpush3.bf16.msra.mxu0 %v22146_v61 }
 0xb83   :  { %20193 = vmatprep.subr.bf16.mxu0 %v25356_v60 }
 0xb86   :  { %20195 = vmatpush3.bf16.msra.mxu0 %v22175_v44 }
 0xb87   :  { %20196 = vmatprep.subr.bf16.mxu0 %v25356_v60 }
 0xb8a   :  { %20198 = vmatpush3.bf16.msra.mxu0 %v22216_v24 }
 0xb8b   :  { %20199 = vmatprep.subr.bf16.mxu0 %v25356_v60 }
 0xb8e   :  { %20201 = vmatpush3.bf16.msra.mxu0 %v22260_v62 }
 0xb8f   :  { %20202 = vmatprep.subr.bf16.mxu0 %v25356_v60 }
 0xb92   :  { %20204 = vmatpush3.bf16.msra.mxu0 %v25398_v27 }
 0xb93   :  { %20205 = vmatprep.subr.bf16.mxu0 %v25356_v60 }
 0xc48   :  { %v6402_v29 = vpop.f32.mrb[24].mxu0 }
 0xc49   :  { %v6406_v36 = vadd.f32 %v22640_v25, %v6402_v29  ;;  %v16844_v1 = vpop.f32.mrb[25].mxu0 }
 0xc4b   :  { %6407 = vst [vmem:[%s25151_s8 + $0x38] sm:$0xff] %v6406_v36  ;;  %v23489_v14 = vand.u32 4294901760, %v6406_v36 }
 0xc4d   :  { %v6490_v13 = vsub.f32 %v6406_v36, %v23489_v14 }
 0xc4f   :  { %v6491_v33 = vand.u32 4294901760, %v6490_v13 }
 0xc51   :  { %v6492_v7 = vsub.f32 %v6490_v13, %v6491_v33 }
 0xc53   :  { %v6493_v3 = vand.u32 4294901760, %v6492_v7 }
 0xc55   :  { %16878 = vmatmul.mubr.f32.vlgmr.msra.gmra.mrb[24].mxu1 %v6493_v3 }
 0xc56   :  { %20063 = vmatpush3.bf16.msra.mxu1 %v25413_v8  ;;  %16912 = vmatprep.mubr.msk.f32.mxu1 %vm21880_vm1, %v25379_v28 }
 0xc57   :  { %20064 = vmatprep.subr.bf16.mxu1 %v25356_v60 }
 0xc5a   :  { %20066 = vmatpush3.bf16.msra.mxu1 %v25414_v15 }
 0xc5b   :  { %20067 = vmatprep.subr.bf16.mxu1 %v25356_v60 }
 0xc5e   :  { %20069 = vmatpush3.bf16.msra.mxu1 %v25415_v30 }
 0xc5f   :  { %20070 = vmatprep.subr.bf16.mxu1 %v25356_v60 }
 0xc62   :  { %20072 = vmatpush3.bf16.msra.mxu1 %v25416_v34 }
 0xc63   :  { %20073 = vmatprep.subr.bf16.mxu1 %v25356_v60 }
 0xc66   :  { %20075 = vmatpush3.bf16.msra.mxu1 %v25417_v45 }
 0xc67   :  { %20076 = vmatprep.subr.bf16.mxu1 %v25356_v60 }
 0xc6a   :  { %20078 = vmatpush3.bf16.msra.mxu1 %v25418_v40 }
 0xc6b   :  { %20079 = vmatprep.subr.bf16.mxu1 %v25356_v60 }
 0xc6e   :  { %20081 = vmatpush3.bf16.msra.mxu1 %v25419_v39 }
 0xc6f   :  { %20082 = vmatprep.subr.bf16.mxu1 %v25356_v60 }
 0xc72   :  { %20084 = vmatpush3.bf16.msra.mxu1 %v22339_v52 }
 0xc73   :  { %20085 = vmatprep.subr.bf16.mxu1 %v25356_v60 }
 0xc75   :  { %16913 = vmatmul.mubr.f32.vlgmr.msra.gmra.mrb[24].mxu1 %v23489_v14 }
 0xc76   :  { %20087 = vmatpush3.bf16.msra.mxu1 %v22378_v43  ;;  %16947 = vmatprep.mubr.msk.f32.mxu1 %vm21880_vm1, %v25379_v28 }
 0xc77   :  { %20088 = vmatprep.subr.bf16.mxu1 %v25356_v60 }
 0xc7a   :  { %20090 = vmatpush3.bf16.msra.mxu1 %v22387_v11 }
 0xc7b   :  { %20091 = vmatprep.subr.bf16.mxu1 %v25356_v60 }
 0xc7e   :  { %20093 = vmatpush3.bf16.msra.mxu1 %v22397_v20 }
 0xc7f   :  { %20094 = vmatprep.subr.bf16.mxu1 %v25356_v60 }
 0xc82   :  { %20096 = vmatpush3.bf16.msra.mxu1 %v22405_v21 }
 0xc83   :  { %20097 = vmatprep.subr.bf16.mxu1 %v25356_v60 }
 0xc86   :  { %20099 = vmatpush3.bf16.msra.mxu1 %v22413_v5 }
 0xc87   :  { %20100 = vmatprep.subr.bf16.mxu1 %v25356_v60 }
 0xc8a   :  { %20102 = vmatpush3.bf16.msra.mxu1 %v22421_v6 }
 0xc8b   :  { %20103 = vmatprep.subr.bf16.mxu1 %v25356_v60 }
 0xc8e   :  { %20105 = vmatpush3.bf16.msra.mxu1 %v22430_v42 }
 0xc8f   :  { %20106 = vmatprep.subr.bf16.mxu1 %v25356_v60 }
 0xc92   :  { %20108 = vmatpush3.bf16.msra.mxu1 %v22441_v18 }
 0xc93   :  { %20109 = vmatprep.subr.bf16.mxu1 %v25356_v60 }
 0xc95   :  { %16948 = vmatmul.mubr.f32.vlgmr.msra.gmra.mrb[24].mxu1 %v6490_v13 }
 0xc96   :  { %20111 = vmatpush3.bf16.msra.mxu1 %v22000_v19  ;;  %16982 = vmatprep.mubr.msk.f32.mxu1 %vm21880_vm1, %v25379_v28 }
 0xc97   :  { %20112 = vmatprep.subr.bf16.mxu1 %v25356_v60 }
 0xc9a   :  { %20114 = vmatpush3.bf16.msra.mxu1 %v22061_v4 }
 0xc9b   :  { %20115 = vmatprep.subr.bf16.mxu1 %v25356_v60 }
 0xc9e   :  { %20117 = vmatpush3.bf16.msra.mxu1 %v22087_v37 }
 0xc9f   :  { %20118 = vmatprep.subr.bf16.mxu1 %v25356_v60 }
 0xca2   :  { %20120 = vmatpush3.bf16.msra.mxu1 %v22146_v61 }
 0xca3   :  { %20121 = vmatprep.subr.bf16.mxu1 %v25356_v60 }
 0xca6   :  { %20123 = vmatpush3.bf16.msra.mxu1 %v22175_v44 }
 0xca7   :  { %20124 = vmatprep.subr.bf16.mxu1 %v25356_v60 }
 0xcaa   :  { %20126 = vmatpush3.bf16.msra.mxu1 %v22216_v24 }
 0xcab   :  { %20127 = vmatprep.subr.bf16.mxu1 %v25356_v60 }
 0xcae   :  { %20129 = vmatpush3.bf16.msra.mxu1 %v22260_v62 }
 0xcaf   :  { %20130 = vmatprep.subr.bf16.mxu1 %v25356_v60 }
 0xcb2   :  { %20132 = vmatpush3.bf16.msra.mxu1 %v25398_v27 }
 0xcb3   :  { %20133 = vmatprep.subr.bf16.mxu1 %v25356_v60 }
 0xcb5   :  { %16983 = vmatmul.mubr.f32.vlgmr.msra.gmra.mrb[24].mxu1 %v6491_v33 }
 0xcb6   :  { %20135 = vmatpush3.bf16.msra.mxu1 %v25401_v32  ;;  %17017 = vmatprep.mubr.msk.f32.mxu1 %vm21880_vm1, %v25379_v28 }
 0xcb7   :  { %20136 = vmatprep.subr.bf16.mxu1 %v25356_v60 }
 0xcba   :  { %20138 = vmatpush3.bf16.msra.mxu1 %v25404_v63 }
 0xcbb   :  { %20139 = vmatprep.subr.bf16.mxu1 %v25356_v60 }
 0xcbe   :  { %20141 = vmatpush3.bf16.msra.mxu1 %v22351_v12 }
 0xcbf   :  { %20142 = vmatprep.subr.bf16.mxu1 %v25356_v60 }
 0xcc2   :  { %20144 = vmatpush3.bf16.msra.mxu1 %v22357_v26 }
 0xcc3   :  { %20145 = vmatprep.subr.bf16.mxu1 %v25356_v60 }
 0xcc6   :  { %20147 = vmatpush3.bf16.msra.mxu1 %v22363_v48 }
 0xcc7   :  { %20148 = vmatprep.subr.bf16.mxu1 %v25356_v60 }
 0xcca   :  { %20150 = vmatpush3.bf16.msra.mxu1 %v22369_v38 }
 0xccb   :  { %20151 = vmatprep.subr.bf16.mxu1 %v25356_v60 }
 0xcce   :  { %20153 = vmatpush3.bf16.msra.mxu1 %v22371_v17 }
 0xccf   :  { %20154 = vmatprep.subr.bf16.mxu1 %v25356_v60 }
 0xcd2   :  { %20156 = vmatpush3.bf16.msra.mxu1 %v22373_v41 }
 0xcd3   :  { %20157 = vmatprep.subr.bf16.mxu1 %v25356_v60 }
 0xcd5   :  { %17018 = vmatmul.mubr.f32.vlgmr.msra.gmra.mrb[24].mxu1 %v23489_v14 }
 0xcd6   :  { %20159 = vmatpush3.bf16.msra.mxu1 %v22000_v19  ;;  %17052 = vmatprep.mubr.msk.f32.mxu1 %vm21880_vm1, %v25379_v28 }
 0xcd7   :  { %20160 = vmatprep.subr.bf16.mxu1 %v25356_v60 }
 0xcda   :  { %20162 = vmatpush3.bf16.msra.mxu1 %v22061_v4 }
 0xcdb   :  { %20163 = vmatprep.subr.bf16.mxu1 %v25356_v60 }
 0xcde   :  { %20165 = vmatpush3.bf16.msra.mxu1 %v22087_v37 }
 0xcdf   :  { %20166 = vmatprep.subr.bf16.mxu1 %v25356_v60 }
 0xce2   :  { %20168 = vmatpush3.bf16.msra.mxu1 %v22146_v61 }
 0xce3   :  { %20169 = vmatprep.subr.bf16.mxu1 %v25356_v60 }
 0xce6   :  { %20171 = vmatpush3.bf16.msra.mxu1 %v22175_v44 }
 0xce7   :  { %20172 = vmatprep.subr.bf16.mxu1 %v25356_v60 }
 0xcea   :  { %20174 = vmatpush3.bf16.msra.mxu1 %v22216_v24 }
 0xceb   :  { %20175 = vmatprep.subr.bf16.mxu1 %v25356_v60 }
 0xcee   :  { %20177 = vmatpush3.bf16.msra.mxu1 %v22260_v62 }
 0xcef   :  { %20178 = vmatprep.subr.bf16.mxu1 %v25356_v60 }
 0xcf2   :  { %20180 = vmatpush3.bf16.msra.mxu1 %v25398_v27 }
 0xcf3   :  { %20325 = vmatprep.subr.bf16.mxu1 %v25356_v60 }
 0xcf5   :  { %17053 = vmatmul.mubr.f32.vlgmr.msra.gmra.mrb[24].mxu1 %v23489_v14 }
 0xcf6   :  { %20327 = vmatpush3.bf16.msra.mxu1 %v22000_v19  ;;  %17297 = vmatprep.mubr.msk.f32.mxu1 %vm21880_vm1, %v25379_v28 }
 0xcf7   :  { %20328 = vmatprep.subr.bf16.mxu1 %v25356_v60 }
 0xcfa   :  { %20330 = vmatpush3.bf16.msra.mxu1 %v22061_v4 }
 0xcfb   :  { %20331 = vmatprep.subr.bf16.mxu1 %v25356_v60 }
 0xcfe   :  { %20333 = vmatpush3.bf16.msra.mxu1 %v22087_v37 }
 0xcff   :  { %20334 = vmatprep.subr.bf16.mxu1 %v25356_v60 }
 0xd02   :  { %20336 = vmatpush3.bf16.msra.mxu1 %v22146_v61 }
 0xd03   :  { %20337 = vmatprep.subr.bf16.mxu1 %v25356_v60 }
 0xd06   :  { %20339 = vmatpush3.bf16.msra.mxu1 %v22175_v44 }
 0xd07   :  { %20340 = vmatprep.subr.bf16.mxu1 %v25356_v60 }
 0xd0a   :  { %20342 = vmatpush3.bf16.msra.mxu1 %v22216_v24 }
 0xd0b   :  { %20343 = vmatprep.subr.bf16.mxu1 %v25356_v60 }
 0xd0e   :  { %20345 = vmatpush3.bf16.msra.mxu1 %v22260_v62 }
 0xd0f   :  { %20346 = vmatprep.subr.bf16.mxu1 %v25356_v60 }
 0xd12   :  { %20348 = vmatpush3.bf16.msra.mxu1 %v25398_v27 }
 0xd13   :  { %20349 = vmatprep.subr.bf16.mxu1 %v25356_v60 }
 0xdc8   :  { %v7045_v25 = vpop.f32.mrb[24].mxu1 }
 0xdc9   :  { %v7049_v23 = vadd.f32 %v22646_v49, %v7045_v25  ;;  %v17054_v10 = vpop.f32.mrb[25].mxu1 }
 0xdcb   :  { %7050 = vst [vmem:[%s25151_s8 + $0x40] sm:$0xff] %v7049_v23  ;;  %v23607_v35 = vand.u32 4294901760, %v7049_v23 }
 0xdcd   :  { %v7133_v58 = vsub.f32 %v7049_v23, %v23607_v35 }
 0xdcf   :  { %v7134_v54 = vand.u32 4294901760, %v7133_v58 }
 0xdd1   :  { %v7135_v55 = vsub.f32 %v7133_v58, %v7134_v54 }
 0xdd3   :  { %v7136_v51 = vand.u32 4294901760, %v7135_v55 }
 0xdd5   :  { %17088 = vmatmul.mubr.f32.vlgmr.msra.gmra.mrb[26].mxu0 %v7136_v51 }
 0xdd6   :  { %20207 = vmatpush3.bf16.msra.mxu0 %v25413_v8  ;;  %17122 = vmatprep.mubr.msk.f32.mxu0 %vm21880_vm1, %v25379_v28 }
 0xdd7   :  { %20208 = vmatprep.subr.bf16.mxu0 %v25356_v60 }
 0xdda   :  { %20210 = vmatpush3.bf16.msra.mxu0 %v25414_v15 }
 0xddb   :  { %20211 = vmatprep.subr.bf16.mxu0 %v25356_v60 }
 0xdde   :  { %20213 = vmatpush3.bf16.msra.mxu0 %v25415_v30 }
 0xddf   :  { %20214 = vmatprep.subr.bf16.mxu0 %v25356_v60 }
 0xde2   :  { %20216 = vmatpush3.bf16.msra.mxu0 %v25416_v34 }
 0xde3   :  { %20217 = vmatprep.subr.bf16.mxu0 %v25356_v60 }
 0xde6   :  { %20219 = vmatpush3.bf16.msra.mxu0 %v25417_v45 }
 0xde7   :  { %20220 = vmatprep.subr.bf16.mxu0 %v25356_v60 }
 0xdea   :  { %20222 = vmatpush3.bf16.msra.mxu0 %v25418_v40 }
 0xdeb   :  { %20223 = vmatprep.subr.bf16.mxu0 %v25356_v60 }
 0xdee   :  { %20225 = vmatpush3.bf16.msra.mxu0 %v25419_v39 }
 0xdef   :  { %20226 = vmatprep.subr.bf16.mxu0 %v25356_v60 }
 0xdf2   :  { %20228 = vmatpush3.bf16.msra.mxu0 %v22339_v52 }
 0xdf3   :  { %20229 = vmatprep.subr.bf16.mxu0 %v25356_v60 }
 0xdf5   :  { %17123 = vmatmul.mubr.f32.vlgmr.msra.gmra.mrb[26].mxu0 %v23607_v35 }
 0xdf6   :  { %20231 = vmatpush3.bf16.msra.mxu0 %v22378_v43  ;;  %17157 = vmatprep.mubr.msk.f32.mxu0 %vm21880_vm1, %v25379_v28 }
 0xdf7   :  { %20232 = vmatprep.subr.bf16.mxu0 %v25356_v60 }
 0xdfa   :  { %20234 = vmatpush3.bf16.msra.mxu0 %v22387_v11 }
 0xdfb   :  { %20235 = vmatprep.subr.bf16.mxu0 %v25356_v60 }
 0xdfe   :  { %20237 = vmatpush3.bf16.msra.mxu0 %v22397_v20 }
 0xdff   :  { %20238 = vmatprep.subr.bf16.mxu0 %v25356_v60 }
 0xe02   :  { %20240 = vmatpush3.bf16.msra.mxu0 %v22405_v21 }
 0xe03   :  { %20241 = vmatprep.subr.bf16.mxu0 %v25356_v60 }
 0xe06   :  { %20243 = vmatpush3.bf16.msra.mxu0 %v22413_v5 }
 0xe07   :  { %20244 = vmatprep.subr.bf16.mxu0 %v25356_v60 }
 0xe0a   :  { %20246 = vmatpush3.bf16.msra.mxu0 %v22421_v6 }
 0xe0b   :  { %20247 = vmatprep.subr.bf16.mxu0 %v25356_v60 }
 0xe0e   :  { %20249 = vmatpush3.bf16.msra.mxu0 %v22430_v42 }
 0xe0f   :  { %20250 = vmatprep.subr.bf16.mxu0 %v25356_v60 }
 0xe12   :  { %20252 = vmatpush3.bf16.msra.mxu0 %v22441_v18 }
 0xe13   :  { %20253 = vmatprep.subr.bf16.mxu0 %v25356_v60 }
 0xe15   :  { %17158 = vmatmul.mubr.f32.vlgmr.msra.gmra.mrb[26].mxu0 %v7133_v58 }
 0xe16   :  { %20255 = vmatpush3.bf16.msra.mxu0 %v22000_v19  ;;  %17192 = vmatprep.mubr.msk.f32.mxu0 %vm21880_vm1, %v25379_v28 }
 0xe17   :  { %20256 = vmatprep.subr.bf16.mxu0 %v25356_v60 }
 0xe1a   :  { %20258 = vmatpush3.bf16.msra.mxu0 %v22061_v4 }
 0xe1b   :  { %20259 = vmatprep.subr.bf16.mxu0 %v25356_v60 }
 0xe1e   :  { %20261 = vmatpush3.bf16.msra.mxu0 %v22087_v37 }
 0xe1f   :  { %20262 = vmatprep.subr.bf16.mxu0 %v25356_v60 }
 0xe22   :  { %20264 = vmatpush3.bf16.msra.mxu0 %v22146_v61 }
 0xe23   :  { %20265 = vmatprep.subr.bf16.mxu0 %v25356_v60 }
 0xe26   :  { %20267 = vmatpush3.bf16.msra.mxu0 %v22175_v44 }
 0xe27   :  { %20268 = vmatprep.subr.bf16.mxu0 %v25356_v60 }
 0xe2a   :  { %20270 = vmatpush3.bf16.msra.mxu0 %v22216_v24 }
 0xe2b   :  { %20271 = vmatprep.subr.bf16.mxu0 %v25356_v60 }
 0xe2e   :  { %20273 = vmatpush3.bf16.msra.mxu0 %v22260_v62 }
 0xe2f   :  { %20274 = vmatprep.subr.bf16.mxu0 %v25356_v60 }
 0xe32   :  { %20276 = vmatpush3.bf16.msra.mxu0 %v25398_v27 }
 0xe33   :  { %20277 = vmatprep.subr.bf16.mxu0 %v25356_v60 }
 0xe35   :  { %17193 = vmatmul.mubr.f32.vlgmr.msra.gmra.mrb[26].mxu0 %v7134_v54 }
 0xe36   :  { %20279 = vmatpush3.bf16.msra.mxu0 %v25401_v32  ;;  %17227 = vmatprep.mubr.msk.f32.mxu0 %vm21880_vm1, %v25379_v28 }
 0xe37   :  { %20280 = vmatprep.subr.bf16.mxu0 %v25356_v60 }
 0xe3a   :  { %20282 = vmatpush3.bf16.msra.mxu0 %v25404_v63 }
 0xe3b   :  { %20283 = vmatprep.subr.bf16.mxu0 %v25356_v60 }
 0xe3e   :  { %20285 = vmatpush3.bf16.msra.mxu0 %v22351_v12 }
 0xe3f   :  { %20286 = vmatprep.subr.bf16.mxu0 %v25356_v60 }
 0xe42   :  { %20288 = vmatpush3.bf16.msra.mxu0 %v22357_v26 }
 0xe43   :  { %20289 = vmatprep.subr.bf16.mxu0 %v25356_v60 }
 0xe46   :  { %20291 = vmatpush3.bf16.msra.mxu0 %v22363_v48 }
 0xe47   :  { %20292 = vmatprep.subr.bf16.mxu0 %v25356_v60 }
 0xe4a   :  { %20294 = vmatpush3.bf16.msra.mxu0 %v22369_v38 }
 0xe4b   :  { %20295 = vmatprep.subr.bf16.mxu0 %v25356_v60 }
 0xe4e   :  { %20297 = vmatpush3.bf16.msra.mxu0 %v22371_v17 }
 0xe4f   :  { %20298 = vmatprep.subr.bf16.mxu0 %v25356_v60 }
 0xe52   :  { %20300 = vmatpush3.bf16.msra.mxu0 %v22373_v41 }
 0xe53   :  { %20301 = vmatprep.subr.bf16.mxu0 %v25356_v60 }
 0xe55   :  { %17228 = vmatmul.mubr.f32.vlgmr.msra.gmra.mrb[26].mxu0 %v23607_v35 }
 0xe56   :  { %20303 = vmatpush3.bf16.msra.mxu0 %v22000_v19  ;;  %17262 = vmatprep.mubr.msk.f32.mxu0 %vm21880_vm1, %v25379_v28 }
 0xe57   :  { %20304 = vmatprep.subr.bf16.mxu0 %v25356_v60 }
 0xe5a   :  { %20306 = vmatpush3.bf16.msra.mxu0 %v22061_v4 }
 0xe5b   :  { %20307 = vmatprep.subr.bf16.mxu0 %v25356_v60 }
 0xe5e   :  { %20309 = vmatpush3.bf16.msra.mxu0 %v22087_v37 }
 0xe5f   :  { %20310 = vmatprep.subr.bf16.mxu0 %v25356_v60 }
 0xe62   :  { %20312 = vmatpush3.bf16.msra.mxu0 %v22146_v61 }
 0xe63   :  { %20313 = vmatprep.subr.bf16.mxu0 %v25356_v60 }
 0xe66   :  { %20315 = vmatpush3.bf16.msra.mxu0 %v22175_v44 }
 0xe67   :  { %20316 = vmatprep.subr.bf16.mxu0 %v25356_v60 }
 0xe6a   :  { %20318 = vmatpush3.bf16.msra.mxu0 %v22216_v24 }
 0xe6b   :  { %20319 = vmatprep.subr.bf16.mxu0 %v25356_v60 }
 0xe6e   :  { %20321 = vmatpush3.bf16.msra.mxu0 %v22260_v62 }
 0xe6f   :  { %20322 = vmatprep.subr.bf16.mxu0 %v25356_v60 }
 0xe72   :  { %20324 = vmatpush3.bf16.msra.mxu0 %v25398_v27 }
 0xe73   :  { %20469 = vmatprep.subr.bf16.mxu0 %v25356_v60 }
 0xe75   :  { %17263 = vmatmul.mubr.f32.vlgmr.msra.gmra.mrb[26].mxu0 %v23607_v35 }
 0xe76   :  { %20471 = vmatpush3.bf16.msra.mxu0 %v22000_v19  ;;  %17507 = vmatprep.mubr.msk.f32.mxu0 %vm21880_vm1, %v25379_v28 }
 0xe77   :  { %20472 = vmatprep.subr.bf16.mxu0 %v25356_v60 }
 0xe7a   :  { %20474 = vmatpush3.bf16.msra.mxu0 %v22061_v4 }
 0xe7b   :  { %20475 = vmatprep.subr.bf16.mxu0 %v25356_v60 }
 0xe7e   :  { %20477 = vmatpush3.bf16.msra.mxu0 %v22087_v37 }
 0xe7f   :  { %20478 = vmatprep.subr.bf16.mxu0 %v25356_v60 }
 0xe82   :  { %20480 = vmatpush3.bf16.msra.mxu0 %v22146_v61 }
 0xe83   :  { %20481 = vmatprep.subr.bf16.mxu0 %v25356_v60 }
 0xe86   :  { %20483 = vmatpush3.bf16.msra.mxu0 %v22175_v44 }
 0xe87   :  { %20484 = vmatprep.subr.bf16.mxu0 %v25356_v60 }
 0xe8a   :  { %20486 = vmatpush3.bf16.msra.mxu0 %v22216_v24 }
 0xe8b   :  { %20487 = vmatprep.subr.bf16.mxu0 %v25356_v60 }
 0xe8e   :  { %20489 = vmatpush3.bf16.msra.mxu0 %v22260_v62 }
 0xe8f   :  { %20490 = vmatprep.subr.bf16.mxu0 %v25356_v60 }
 0xe92   :  { %20492 = vmatpush3.bf16.msra.mxu0 %v25398_v27 }
 0xe93   :  { %20493 = vmatprep.subr.bf16.mxu0 %v25356_v60 }
 0xf48   :  { %v7688_v49 = vpop.f32.mrb[26].mxu0 }
 0xf49   :  { %v7692_v16 = vadd.f32 %v22644_v47, %v7688_v49  ;;  %v17264_v53 = vpop.f32.mrb[27].mxu0 }
 0xf4b   :  { %7693 = vst [vmem:[%s25151_s8 + $0x48] sm:$0xff] %v7692_v16  ;;  %v23725_v22 = vand.u32 4294901760, %v7692_v16 }
 0xf4d   :  { %v7776_v57 = vsub.f32 %v7692_v16, %v23725_v22 }
 0xf4f   :  { %v7777_v59 = vand.u32 4294901760, %v7776_v57 }
 0xf51   :  { %v7778_v46 = vsub.f32 %v7776_v57, %v7777_v59 }
 0xf53   :  { %v7779_v29 = vand.u32 4294901760, %v7778_v46 }
 0xf55   :  { %17298 = vmatmul.mubr.f32.vlgmr.msra.gmra.mrb[26].mxu1 %v7779_v29 }
 0xf56   :  { %20351 = vmatpush3.bf16.msra.mxu1 %v25413_v8  ;;  %17332 = vmatprep.mubr.msk.f32.mxu1 %vm21880_vm1, %v25379_v28 }
 0xf57   :  { %20352 = vmatprep.subr.bf16.mxu1 %v25356_v60 }
 0xf5a   :  { %20354 = vmatpush3.bf16.msra.mxu1 %v25414_v15 }
 0xf5b   :  { %20355 = vmatprep.subr.bf16.mxu1 %v25356_v60 }
 0xf5e   :  { %20357 = vmatpush3.bf16.msra.mxu1 %v25415_v30 }
 0xf5f   :  { %20358 = vmatprep.subr.bf16.mxu1 %v25356_v60 }
 0xf62   :  { %20360 = vmatpush3.bf16.msra.mxu1 %v25416_v34 }
 0xf63   :  { %20361 = vmatprep.subr.bf16.mxu1 %v25356_v60 }
 0xf66   :  { %20363 = vmatpush3.bf16.msra.mxu1 %v25417_v45 }
 0xf67   :  { %20364 = vmatprep.subr.bf16.mxu1 %v25356_v60 }
 0xf6a   :  { %20366 = vmatpush3.bf16.msra.mxu1 %v25418_v40 }
 0xf6b   :  { %20367 = vmatprep.subr.bf16.mxu1 %v25356_v60 }
 0xf6e   :  { %20369 = vmatpush3.bf16.msra.mxu1 %v25419_v39 }
 0xf6f   :  { %20370 = vmatprep.subr.bf16.mxu1 %v25356_v60 }
 0xf72   :  { %20372 = vmatpush3.bf16.msra.mxu1 %v22339_v52 }
 0xf73   :  { %20373 = vmatprep.subr.bf16.mxu1 %v25356_v60 }
 0xf75   :  { %17333 = vmatmul.mubr.f32.vlgmr.msra.gmra.mrb[26].mxu1 %v23725_v22 }
 0xf76   :  { %20375 = vmatpush3.bf16.msra.mxu1 %v22378_v43  ;;  %17367 = vmatprep.mubr.msk.f32.mxu1 %vm21880_vm1, %v25379_v28 }
 0xf77   :  { %20376 = vmatprep.subr.bf16.mxu1 %v25356_v60 }
 0xf7a   :  { %20378 = vmatpush3.bf16.msra.mxu1 %v22387_v11 }
 0xf7b   :  { %20379 = vmatprep.subr.bf16.mxu1 %v25356_v60 }
 0xf7e   :  { %20381 = vmatpush3.bf16.msra.mxu1 %v22397_v20 }
 0xf7f   :  { %20382 = vmatprep.subr.bf16.mxu1 %v25356_v60 }
 0xf82   :  { %20384 = vmatpush3.bf16.msra.mxu1 %v22405_v21 }
 0xf83   :  { %20385 = vmatprep.subr.bf16.mxu1 %v25356_v60 }
 0xf86   :  { %20387 = vmatpush3.bf16.msra.mxu1 %v22413_v5 }
 0xf87   :  { %20388 = vmatprep.subr.bf16.mxu1 %v25356_v60 }
 0xf8a   :  { %20390 = vmatpush3.bf16.msra.mxu1 %v22421_v6 }
 0xf8b   :  { %20391 = vmatprep.subr.bf16.mxu1 %v25356_v60 }
 0xf8e   :  { %20393 = vmatpush3.bf16.msra.mxu1 %v22430_v42 }
 0xf8f   :  { %20394 = vmatprep.subr.bf16.mxu1 %v25356_v60 }
 0xf92   :  { %20396 = vmatpush3.bf16.msra.mxu1 %v22441_v18 }
 0xf93   :  { %20397 = vmatprep.subr.bf16.mxu1 %v25356_v60 }
 0xf95   :  { %17368 = vmatmul.mubr.f32.vlgmr.msra.gmra.mrb[26].mxu1 %v7776_v57 }
 0xf96   :  { %20399 = vmatpush3.bf16.msra.mxu1 %v22000_v19  ;;  %17402 = vmatprep.mubr.msk.f32.mxu1 %vm21880_vm1, %v25379_v28 }
 0xf97   :  { %20400 = vmatprep.subr.bf16.mxu1 %v25356_v60 }
 0xf9a   :  { %20402 = vmatpush3.bf16.msra.mxu1 %v22061_v4 }
 0xf9b   :  { %20403 = vmatprep.subr.bf16.mxu1 %v25356_v60 }
 0xf9e   :  { %20405 = vmatpush3.bf16.msra.mxu1 %v22087_v37 }
 0xf9f   :  { %20406 = vmatprep.subr.bf16.mxu1 %v25356_v60 }
 0xfa2   :  { %20408 = vmatpush3.bf16.msra.mxu1 %v22146_v61 }
 0xfa3   :  { %20409 = vmatprep.subr.bf16.mxu1 %v25356_v60 }
 0xfa6   :  { %20411 = vmatpush3.bf16.msra.mxu1 %v22175_v44 }
 0xfa7   :  { %20412 = vmatprep.subr.bf16.mxu1 %v25356_v60 }
 0xfaa   :  { %20414 = vmatpush3.bf16.msra.mxu1 %v22216_v24 }
 0xfab   :  { %20415 = vmatprep.subr.bf16.mxu1 %v25356_v60 }
 0xfae   :  { %20417 = vmatpush3.bf16.msra.mxu1 %v22260_v62 }
 0xfaf   :  { %20418 = vmatprep.subr.bf16.mxu1 %v25356_v60 }
 0xfb2   :  { %20420 = vmatpush3.bf16.msra.mxu1 %v25398_v27 }
 0xfb3   :  { %20421 = vmatprep.subr.bf16.mxu1 %v25356_v60 }
 0xfb5   :  { %17403 = vmatmul.mubr.f32.vlgmr.msra.gmra.mrb[26].mxu1 %v7777_v59 }
 0xfb6   :  { %20423 = vmatpush3.bf16.msra.mxu1 %v25401_v32  ;;  %17437 = vmatprep.mubr.msk.f32.mxu1 %vm21880_vm1, %v25379_v28 }
 0xfb7   :  { %20424 = vmatprep.subr.bf16.mxu1 %v25356_v60 }
 0xfba   :  { %20426 = vmatpush3.bf16.msra.mxu1 %v25404_v63 }
 0xfbb   :  { %20427 = vmatprep.subr.bf16.mxu1 %v25356_v60 }
 0xfbe   :  { %20429 = vmatpush3.bf16.msra.mxu1 %v22351_v12 }
 0xfbf   :  { %20430 = vmatprep.subr.bf16.mxu1 %v25356_v60 }
 0xfc2   :  { %20432 = vmatpush3.bf16.msra.mxu1 %v22357_v26 }
 0xfc3   :  { %20433 = vmatprep.subr.bf16.mxu1 %v25356_v60 }
 0xfc6   :  { %20435 = vmatpush3.bf16.msra.mxu1 %v22363_v48 }
 0xfc7   :  { %20436 = vmatprep.subr.bf16.mxu1 %v25356_v60 }
 0xfca   :  { %20438 = vmatpush3.bf16.msra.mxu1 %v22369_v38 }
 0xfcb   :  { %20439 = vmatprep.subr.bf16.mxu1 %v25356_v60 }
 0xfce   :  { %20441 = vmatpush3.bf16.msra.mxu1 %v22371_v17 }
 0xfcf   :  { %20442 = vmatprep.subr.bf16.mxu1 %v25356_v60 }
 0xfd2   :  { %20444 = vmatpush3.bf16.msra.mxu1 %v22373_v41 }
 0xfd3   :  { %20445 = vmatprep.subr.bf16.mxu1 %v25356_v60 }
 0xfd5   :  { %17438 = vmatmul.mubr.f32.vlgmr.msra.gmra.mrb[26].mxu1 %v23725_v22 }
 0xfd6   :  { %20447 = vmatpush3.bf16.msra.mxu1 %v22000_v19  ;;  %17472 = vmatprep.mubr.msk.f32.mxu1 %vm21880_vm1, %v25379_v28 }
 0xfd7   :  { %20448 = vmatprep.subr.bf16.mxu1 %v25356_v60 }
 0xfda   :  { %20450 = vmatpush3.bf16.msra.mxu1 %v22061_v4 }
 0xfdb   :  { %20451 = vmatprep.subr.bf16.mxu1 %v25356_v60 }
 0xfde   :  { %20453 = vmatpush3.bf16.msra.mxu1 %v22087_v37 }
 0xfdf   :  { %20454 = vmatprep.subr.bf16.mxu1 %v25356_v60 }
 0xfe2   :  { %20456 = vmatpush3.bf16.msra.mxu1 %v22146_v61 }
 0xfe3   :  { %20457 = vmatprep.subr.bf16.mxu1 %v25356_v60 }
 0xfe6   :  { %20459 = vmatpush3.bf16.msra.mxu1 %v22175_v44 }
 0xfe7   :  { %20460 = vmatprep.subr.bf16.mxu1 %v25356_v60 }
 0xfea   :  { %20462 = vmatpush3.bf16.msra.mxu1 %v22216_v24 }
 0xfeb   :  { %20463 = vmatprep.subr.bf16.mxu1 %v25356_v60 }
 0xfee   :  { %20465 = vmatpush3.bf16.msra.mxu1 %v22260_v62 }
 0xfef   :  { %20466 = vmatprep.subr.bf16.mxu1 %v25356_v60 }
 0xff2   :  { %20468 = vmatpush3.bf16.msra.mxu1 %v25398_v27 }
 0xff3   :  { %20613 = vmatprep.subr.bf16.mxu1 %v25356_v60 }
 0xff5   :  { %17473 = vmatmul.mubr.f32.vlgmr.msra.gmra.mrb[26].mxu1 %v23725_v22 }
 0xff6   :  { %20615 = vmatpush3.bf16.msra.mxu1 %v22000_v19  ;;  %17717 = vmatprep.mubr.msk.f32.mxu1 %vm21880_vm1, %v25379_v28 }
 0xff7   :  { %20616 = vmatprep.subr.bf16.mxu1 %v25356_v60 }
 0xffa   :  { %20618 = vmatpush3.bf16.msra.mxu1 %v22061_v4 }
 0xffb   :  { %20619 = vmatprep.subr.bf16.mxu1 %v25356_v60 }
 0xffe   :  { %20621 = vmatpush3.bf16.msra.mxu1 %v22087_v37 }
 0xfff   :  { %20622 = vmatprep.subr.bf16.mxu1 %v25356_v60 }
0x1002   :  { %20624 = vmatpush3.bf16.msra.mxu1 %v22146_v61 }
0x1003   :  { %20625 = vmatprep.subr.bf16.mxu1 %v25356_v60 }
0x1006   :  { %20627 = vmatpush3.bf16.msra.mxu1 %v22175_v44 }
0x1007   :  { %20628 = vmatprep.subr.bf16.mxu1 %v25356_v60 }
0x100a   :  { %20630 = vmatpush3.bf16.msra.mxu1 %v22216_v24 }
0x100b   :  { %20631 = vmatprep.subr.bf16.mxu1 %v25356_v60 }
0x100e   :  { %20633 = vmatpush3.bf16.msra.mxu1 %v22260_v62 }
0x100f   :  { %20634 = vmatprep.subr.bf16.mxu1 %v25356_v60 }
0x1012   :  { %20636 = vmatpush3.bf16.msra.mxu1 %v25398_v27 }
0x1013   :  { %20637 = vmatprep.subr.bf16.mxu1 %v25356_v60 }
0x10c8   :  { %v8331_v47 = vpop.f32.mrb[26].mxu1 }
0x10c9   :  { %v8335_v36 = vadd.f32 %v22650_v56, %v8331_v47  ;;  %v17474_v1 = vpop.f32.mrb[27].mxu1 }
0x10cb   :  { %8336 = vst [vmem:[%s25151_s8 + $0x50] sm:$0xff] %v8335_v36  ;;  %v23843_v14 = vand.u32 4294901760, %v8335_v36 }
0x10cd   :  { %v8419_v13 = vsub.f32 %v8335_v36, %v23843_v14 }
0x10cf   :  { %v8420_v33 = vand.u32 4294901760, %v8419_v13 }
0x10d1   :  { %v8421_v7 = vsub.f32 %v8419_v13, %v8420_v33 }
0x10d3   :  { %v8422_v3 = vand.u32 4294901760, %v8421_v7  ;;  %v24327_v7 = vld [vmem:[#allocation6] sm:$0xff] }
0x10d5   :  { %17508 = vmatmul.mubr.f32.vlgmr.msra.gmra.mrb[28].mxu0 %v8422_v3  ;;  %v24329_v3 = vld [vmem:[#allocation6 + $0x8] sm:$0xff] }
0x10d6   :  { %20495 = vmatpush3.bf16.msra.mxu0 %v25413_v8  ;;  %17542 = vmatprep.mubr.msk.f32.mxu0 %vm21880_vm1, %v25379_v28 }
0x10d7   :  { %20496 = vmatprep.subr.bf16.mxu0 %v25356_v60 }
0x10da   :  { %20498 = vmatpush3.bf16.msra.mxu0 %v25414_v15 }
0x10db   :  { %20499 = vmatprep.subr.bf16.mxu0 %v25356_v60 }
0x10de   :  { %20501 = vmatpush3.bf16.msra.mxu0 %v25415_v30 }
0x10df   :  { %20502 = vmatprep.subr.bf16.mxu0 %v25356_v60 }
0x10e2   :  { %20504 = vmatpush3.bf16.msra.mxu0 %v25416_v34 }
0x10e3   :  { %20505 = vmatprep.subr.bf16.mxu0 %v25356_v60 }
0x10e6   :  { %20507 = vmatpush3.bf16.msra.mxu0 %v25417_v45 }
0x10e7   :  { %20508 = vmatprep.subr.bf16.mxu0 %v25356_v60 }
0x10ea   :  { %20510 = vmatpush3.bf16.msra.mxu0 %v25418_v40 }
0x10eb   :  { %20511 = vmatprep.subr.bf16.mxu0 %v25356_v60 }
0x10ee   :  { %20513 = vmatpush3.bf16.msra.mxu0 %v25419_v39 }
0x10ef   :  { %20514 = vmatprep.subr.bf16.mxu0 %v25356_v60 }
0x10f2   :  { %20516 = vmatpush3.bf16.msra.mxu0 %v22339_v52 }
0x10f3   :  { %20517 = vmatprep.subr.bf16.mxu0 %v25356_v60 }
0x10f5   :  { %17543 = vmatmul.mubr.f32.vlgmr.msra.gmra.mrb[28].mxu0 %v23843_v14 }
0x10f6   :  { %20519 = vmatpush3.bf16.msra.mxu0 %v22378_v43  ;;  %17577 = vmatprep.mubr.msk.f32.mxu0 %vm21880_vm1, %v25379_v28 }
0x10f7   :  { %20520 = vmatprep.subr.bf16.mxu0 %v25356_v60 }
0x10fa   :  { %20522 = vmatpush3.bf16.msra.mxu0 %v22387_v11 }
0x10fb   :  { %20523 = vmatprep.subr.bf16.mxu0 %v25356_v60 }
0x10fe   :  { %20525 = vmatpush3.bf16.msra.mxu0 %v22397_v20 }
0x10ff   :  { %20526 = vmatprep.subr.bf16.mxu0 %v25356_v60 }
0x1102   :  { %20528 = vmatpush3.bf16.msra.mxu0 %v22405_v21 }
0x1103   :  { %20529 = vmatprep.subr.bf16.mxu0 %v25356_v60 }
0x1106   :  { %20531 = vmatpush3.bf16.msra.mxu0 %v22413_v5 }
0x1107   :  { %20532 = vmatprep.subr.bf16.mxu0 %v25356_v60 }
0x110a   :  { %20534 = vmatpush3.bf16.msra.mxu0 %v22421_v6 }
0x110b   :  { %20535 = vmatprep.subr.bf16.mxu0 %v25356_v60 }
0x110e   :  { %20537 = vmatpush3.bf16.msra.mxu0 %v22430_v42 }
0x110f   :  { %20538 = vmatprep.subr.bf16.mxu0 %v25356_v60 }
0x1112   :  { %20540 = vmatpush3.bf16.msra.mxu0 %v22441_v18 }
0x1113   :  { %20541 = vmatprep.subr.bf16.mxu0 %v25356_v60 }
0x1115   :  { %17578 = vmatmul.mubr.f32.vlgmr.msra.gmra.mrb[28].mxu0 %v8419_v13 }
0x1116   :  { %20543 = vmatpush3.bf16.msra.mxu0 %v22000_v19  ;;  %17612 = vmatprep.mubr.msk.f32.mxu0 %vm21880_vm1, %v25379_v28 }
0x1117   :  { %20544 = vmatprep.subr.bf16.mxu0 %v25356_v60 }
0x111a   :  { %20546 = vmatpush3.bf16.msra.mxu0 %v22061_v4 }
0x111b   :  { %20547 = vmatprep.subr.bf16.mxu0 %v25356_v60 }
0x111e   :  { %20549 = vmatpush3.bf16.msra.mxu0 %v22087_v37 }
0x111f   :  { %20550 = vmatprep.subr.bf16.mxu0 %v25356_v60 }
0x1122   :  { %20552 = vmatpush3.bf16.msra.mxu0 %v22146_v61 }
0x1123   :  { %20553 = vmatprep.subr.bf16.mxu0 %v25356_v60 }
0x1126   :  { %20555 = vmatpush3.bf16.msra.mxu0 %v22175_v44 }
0x1127   :  { %20556 = vmatprep.subr.bf16.mxu0 %v25356_v60 }
0x112a   :  { %20558 = vmatpush3.bf16.msra.mxu0 %v22216_v24 }
0x112b   :  { %20559 = vmatprep.subr.bf16.mxu0 %v25356_v60 }
0x112e   :  { %20561 = vmatpush3.bf16.msra.mxu0 %v22260_v62 }
0x112f   :  { %20562 = vmatprep.subr.bf16.mxu0 %v25356_v60 }
0x1132   :  { %20564 = vmatpush3.bf16.msra.mxu0 %v25398_v27 }
0x1133   :  { %20565 = vmatprep.subr.bf16.mxu0 %v25356_v60 }
0x1135   :  { %17613 = vmatmul.mubr.f32.vlgmr.msra.gmra.mrb[28].mxu0 %v8420_v33 }
0x1136   :  { %20567 = vmatpush3.bf16.msra.mxu0 %v25401_v32  ;;  %17647 = vmatprep.mubr.msk.f32.mxu0 %vm21880_vm1, %v25379_v28 }
0x1137   :  { %20568 = vmatprep.subr.bf16.mxu0 %v25356_v60 }
0x113a   :  { %20570 = vmatpush3.bf16.msra.mxu0 %v25404_v63 }
0x113b   :  { %20571 = vmatprep.subr.bf16.mxu0 %v25356_v60 }
0x113e   :  { %20573 = vmatpush3.bf16.msra.mxu0 %v22351_v12 }
0x113f   :  { %20574 = vmatprep.subr.bf16.mxu0 %v25356_v60 }
0x1142   :  { %20576 = vmatpush3.bf16.msra.mxu0 %v22357_v26 }
0x1143   :  { %20577 = vmatprep.subr.bf16.mxu0 %v25356_v60 }
0x1146   :  { %20579 = vmatpush3.bf16.msra.mxu0 %v22363_v48 }
0x1147   :  { %20580 = vmatprep.subr.bf16.mxu0 %v25356_v60 }
0x114a   :  { %20582 = vmatpush3.bf16.msra.mxu0 %v22369_v38 }
0x114b   :  { %20583 = vmatprep.subr.bf16.mxu0 %v25356_v60 }
0x114e   :  { %20585 = vmatpush3.bf16.msra.mxu0 %v22371_v17 }
0x114f   :  { %20586 = vmatprep.subr.bf16.mxu0 %v25356_v60 }
0x1152   :  { %20588 = vmatpush3.bf16.msra.mxu0 %v22373_v41 }
0x1153   :  { %20589 = vmatprep.subr.bf16.mxu0 %v25356_v60 }
0x1155   :  { %17648 = vmatmul.mubr.f32.vlgmr.msra.gmra.mrb[28].mxu0 %v23843_v14 }
0x1156   :  { %20591 = vmatpush3.bf16.msra.mxu0 %v22000_v19  ;;  %17682 = vmatprep.mubr.msk.f32.mxu0 %vm21880_vm1, %v25379_v28 }
0x1157   :  { %20592 = vmatprep.subr.bf16.mxu0 %v25356_v60 }
0x115a   :  { %20594 = vmatpush3.bf16.msra.mxu0 %v22061_v4 }
0x115b   :  { %20595 = vmatprep.subr.bf16.mxu0 %v25356_v60 }
0x115e   :  { %20597 = vmatpush3.bf16.msra.mxu0 %v22087_v37 }
0x115f   :  { %20598 = vmatprep.subr.bf16.mxu0 %v25356_v60 }
0x1162   :  { %20600 = vmatpush3.bf16.msra.mxu0 %v22146_v61 }
0x1163   :  { %20601 = vmatprep.subr.bf16.mxu0 %v25356_v60 }
0x1166   :  { %20603 = vmatpush3.bf16.msra.mxu0 %v22175_v44 }
0x1167   :  { %20604 = vmatprep.subr.bf16.mxu0 %v25356_v60 }
0x116a   :  { %20606 = vmatpush3.bf16.msra.mxu0 %v22216_v24 }
0x116b   :  { %20607 = vmatprep.subr.bf16.mxu0 %v25356_v60 }
0x116e   :  { %20609 = vmatpush3.bf16.msra.mxu0 %v22260_v62 }
0x116f   :  { %20610 = vmatprep.subr.bf16.mxu0 %v25356_v60 }
0x1172   :  { %20612 = vmatpush3.bf16.msra.mxu0 %v25398_v27 }
0x1173   :  { %20757 = vmatprep.subr.bf16.mxu0 %v25356_v60 }
0x1175   :  { %17683 = vmatmul.mubr.f32.vlgmr.msra.gmra.mrb[28].mxu0 %v23843_v14 }
0x1176   :  { %20759 = vmatpush3.bf16.msra.mxu0 %v22000_v19  ;;  %17927 = vmatprep.mubr.msk.f32.mxu0 %vm21880_vm1, %v25379_v28 }
0x1177   :  { %20760 = vmatprep.subr.bf16.mxu0 %v25356_v60 }
0x117a   :  { %20762 = vmatpush3.bf16.msra.mxu0 %v22061_v4 }
0x117b   :  { %20763 = vmatprep.subr.bf16.mxu0 %v25356_v60 }
0x117e   :  { %20765 = vmatpush3.bf16.msra.mxu0 %v22087_v37 }
0x117f   :  { %20766 = vmatprep.subr.bf16.mxu0 %v25356_v60 }
0x1182   :  { %20768 = vmatpush3.bf16.msra.mxu0 %v22146_v61 }
0x1183   :  { %20769 = vmatprep.subr.bf16.mxu0 %v25356_v60 }
0x1186   :  { %20771 = vmatpush3.bf16.msra.mxu0 %v22175_v44 }
0x1187   :  { %20772 = vmatprep.subr.bf16.mxu0 %v25356_v60 }
0x118a   :  { %20774 = vmatpush3.bf16.msra.mxu0 %v22216_v24 }
0x118b   :  { %20775 = vmatprep.subr.bf16.mxu0 %v25356_v60 }
0x118e   :  { %20777 = vmatpush3.bf16.msra.mxu0 %v22260_v62 }
0x118f   :  { %20778 = vmatprep.subr.bf16.mxu0 %v25356_v60 }
0x1192   :  { %20780 = vmatpush3.bf16.msra.mxu0 %v25398_v27 }
0x1193   :  { %20781 = vmatprep.subr.bf16.mxu0 %v25356_v60 }
0x1248   :  { %v8974_v56 = vpop.f32.mrb[28].mxu0 }
0x1249   :  { %v8978_v25 = vadd.f32 %v22648_v2, %v8974_v56  ;;  %v17684_v23 = vpop.f32.mrb[29].mxu0 }
0x124a   :  { %v25228_v23 = vand.u32 4294901760, %v24329_v3 }
0x124b   :  { %8979 = vst [vmem:[%s25151_s8 + $0x58] sm:$0xff] %v8978_v25  ;;  %v23961_v10 = vand.u32 4294901760, %v8978_v25 }
0x124d   :  { %25420 = vst [vmem:[#allocation11_spill] sm:$0xff] %v23961_v10  ;;  %v23964_v35 = vsub.f32 %v8978_v25, %v23961_v10  ;;  %v25229_v25 = vand.u32 4294901760, %v24327_v7 }
0x124f   :  { %25421 = vst [vmem:[#allocation28_spill] sm:$0xff] %v23964_v35  ;;  %v23967_v58 = vand.u32 4294901760, %v23964_v35 }
0x1251   :  { %25422 = vst [vmem:[#allocation12_spill] sm:$0xff] %v23967_v58  ;;  %v9064_v54 = vsub.f32 %v23964_v35, %v23967_v58 }
0x1253   :  { %v23971_v55 = vand.u32 4294901760, %v9064_v54 }
0x1255   :  { %17718 = vmatmul.mubr.f32.vlgmr.msra.gmra.mrb[28].mxu1 %v23971_v55 }
0x1256   :  { %20639 = vmatpush3.bf16.msra.mxu1 %v25413_v8  ;;  %17752 = vmatprep.mubr.msk.f32.mxu1 %vm21880_vm1, %v25379_v28 }
0x1257   :  { %20640 = vmatprep.subr.bf16.mxu1 %v25356_v60 }
0x125a   :  { %20642 = vmatpush3.bf16.msra.mxu1 %v25414_v15 }
0x125b   :  { %20643 = vmatprep.subr.bf16.mxu1 %v25356_v60 }
0x125e   :  { %20645 = vmatpush3.bf16.msra.mxu1 %v25415_v30 }
0x125f   :  { %20646 = vmatprep.subr.bf16.mxu1 %v25356_v60 }
0x1262   :  { %20648 = vmatpush3.bf16.msra.mxu1 %v25416_v34 }
0x1263   :  { %20649 = vmatprep.subr.bf16.mxu1 %v25356_v60 }
0x1266   :  { %20651 = vmatpush3.bf16.msra.mxu1 %v25417_v45 }
0x1267   :  { %20652 = vmatprep.subr.bf16.mxu1 %v25356_v60 }
0x126a   :  { %20654 = vmatpush3.bf16.msra.mxu1 %v25418_v40 }
0x126b   :  { %20655 = vmatprep.subr.bf16.mxu1 %v25356_v60 }
0x126e   :  { %20657 = vmatpush3.bf16.msra.mxu1 %v25419_v39 }
0x126f   :  { %20658 = vmatprep.subr.bf16.mxu1 %v25356_v60 }
0x1272   :  { %20660 = vmatpush3.bf16.msra.mxu1 %v22339_v52 }
0x1273   :  { %20661 = vmatprep.subr.bf16.mxu1 %v25356_v60 }
0x1275   :  { %17753 = vmatmul.mubr.f32.vlgmr.msra.gmra.mrb[28].mxu1 %v23961_v10 }
0x1276   :  { %20663 = vmatpush3.bf16.msra.mxu1 %v22378_v43  ;;  %17787 = vmatprep.mubr.msk.f32.mxu1 %vm21880_vm1, %v25379_v28 }
0x1277   :  { %20664 = vmatprep.subr.bf16.mxu1 %v25356_v60 }
0x127a   :  { %20666 = vmatpush3.bf16.msra.mxu1 %v22387_v11 }
0x127b   :  { %20667 = vmatprep.subr.bf16.mxu1 %v25356_v60 }
0x127e   :  { %20669 = vmatpush3.bf16.msra.mxu1 %v22397_v20 }
0x127f   :  { %20670 = vmatprep.subr.bf16.mxu1 %v25356_v60 }
0x1282   :  { %20672 = vmatpush3.bf16.msra.mxu1 %v22405_v21 }
0x1283   :  { %20673 = vmatprep.subr.bf16.mxu1 %v25356_v60 }
0x1286   :  { %20675 = vmatpush3.bf16.msra.mxu1 %v22413_v5 }
0x1287   :  { %20676 = vmatprep.subr.bf16.mxu1 %v25356_v60 }
0x128a   :  { %20678 = vmatpush3.bf16.msra.mxu1 %v22421_v6 }
0x128b   :  { %20679 = vmatprep.subr.bf16.mxu1 %v25356_v60 }
0x128e   :  { %20681 = vmatpush3.bf16.msra.mxu1 %v22430_v42 }
0x128f   :  { %20682 = vmatprep.subr.bf16.mxu1 %v25356_v60 }
0x1292   :  { %20684 = vmatpush3.bf16.msra.mxu1 %v22441_v18 }
0x1293   :  { %20685 = vmatprep.subr.bf16.mxu1 %v25356_v60 }
0x1295   :  { %17788 = vmatmul.mubr.f32.vlgmr.msra.gmra.mrb[28].mxu1 %v23964_v35  ;;  %v24401_v35 = vld [vmem:[#allocation6 + $0x58] sm:$0xff] }
0x1296   :  { %20687 = vmatpush3.bf16.msra.mxu1 %v22000_v19  ;;  %17822 = vmatprep.mubr.msk.f32.mxu1 %vm21880_vm1, %v25379_v28  ;;  %25442 = vst [vmem:[#allocation33_spill] sm:$0xff] %v24401_v35 }
0x1297   :  { %20688 = vmatprep.subr.bf16.mxu1 %v25356_v60 }
0x129a   :  { %20690 = vmatpush3.bf16.msra.mxu1 %v22061_v4 }
0x129b   :  { %20691 = vmatprep.subr.bf16.mxu1 %v25356_v60 }
0x129e   :  { %20693 = vmatpush3.bf16.msra.mxu1 %v22087_v37 }
0x129f   :  { %20694 = vmatprep.subr.bf16.mxu1 %v25356_v60 }
0x12a2   :  { %20696 = vmatpush3.bf16.msra.mxu1 %v22146_v61 }
0x12a3   :  { %20697 = vmatprep.subr.bf16.mxu1 %v25356_v60 }
0x12a6   :  { %20699 = vmatpush3.bf16.msra.mxu1 %v22175_v44 }
0x12a7   :  { %20700 = vmatprep.subr.bf16.mxu1 %v25356_v60 }
0x12aa   :  { %20702 = vmatpush3.bf16.msra.mxu1 %v22216_v24 }
0x12ab   :  { %20703 = vmatprep.subr.bf16.mxu1 %v25356_v60 }
0x12ae   :  { %20705 = vmatpush3.bf16.msra.mxu1 %v22260_v62 }
0x12af   :  { %20706 = vmatprep.subr.bf16.mxu1 %v25356_v60 }
0x12b2   :  { %20708 = vmatpush3.bf16.msra.mxu1 %v25398_v27 }
0x12b3   :  { %20709 = vmatprep.subr.bf16.mxu1 %v25356_v60 }
0x12b5   :  { %17823 = vmatmul.mubr.f32.vlgmr.msra.gmra.mrb[28].mxu1 %v23967_v58  ;;  %v24385_v58 = vld [vmem:[#allocation6 + $0x40] sm:$0xff] }
0x12b6   :  { %20711 = vmatpush3.bf16.msra.mxu1 %v25401_v32  ;;  %17857 = vmatprep.mubr.msk.f32.mxu1 %vm21880_vm1, %v25379_v28  ;;  %25438 = vst [vmem:[#allocation20_spill] sm:$0xff] %v24385_v58 }
0x12b7   :  { %20712 = vmatprep.subr.bf16.mxu1 %v25356_v60 }
0x12ba   :  { %20714 = vmatpush3.bf16.msra.mxu1 %v25404_v63 }
0x12bb   :  { %20715 = vmatprep.subr.bf16.mxu1 %v25356_v60 }
0x12be   :  { %20717 = vmatpush3.bf16.msra.mxu1 %v22351_v12 }
0x12bf   :  { %20718 = vmatprep.subr.bf16.mxu1 %v25356_v60 }
0x12c2   :  { %20720 = vmatpush3.bf16.msra.mxu1 %v22357_v26 }
0x12c3   :  { %20721 = vmatprep.subr.bf16.mxu1 %v25356_v60 }
0x12c6   :  { %20723 = vmatpush3.bf16.msra.mxu1 %v22363_v48 }
0x12c7   :  { %20724 = vmatprep.subr.bf16.mxu1 %v25356_v60 }
0x12ca   :  { %20726 = vmatpush3.bf16.msra.mxu1 %v22369_v38 }
0x12cb   :  { %20727 = vmatprep.subr.bf16.mxu1 %v25356_v60 }
0x12ce   :  { %20729 = vmatpush3.bf16.msra.mxu1 %v22371_v17 }
0x12cf   :  { %20730 = vmatprep.subr.bf16.mxu1 %v25356_v60 }
0x12d2   :  { %20732 = vmatpush3.bf16.msra.mxu1 %v22373_v41 }
0x12d3   :  { %20733 = vmatprep.subr.bf16.mxu1 %v25356_v60 }
0x12d5   :  { %17858 = vmatmul.mubr.f32.vlgmr.msra.gmra.mrb[28].mxu1 %v23961_v10 }
0x12d6   :  { %20735 = vmatpush3.bf16.msra.mxu1 %v22000_v19  ;;  %17892 = vmatprep.mubr.msk.f32.mxu1 %vm21880_vm1, %v25379_v28 }
0x12d7   :  { %20736 = vmatprep.subr.bf16.mxu1 %v25356_v60 }
0x12da   :  { %20738 = vmatpush3.bf16.msra.mxu1 %v22061_v4 }
0x12db   :  { %20739 = vmatprep.subr.bf16.mxu1 %v25356_v60 }
0x12de   :  { %20741 = vmatpush3.bf16.msra.mxu1 %v22087_v37 }
0x12df   :  { %20742 = vmatprep.subr.bf16.mxu1 %v25356_v60 }
0x12e2   :  { %20744 = vmatpush3.bf16.msra.mxu1 %v22146_v61 }
0x12e3   :  { %20745 = vmatprep.subr.bf16.mxu1 %v25356_v60 }
0x12e6   :  { %20747 = vmatpush3.bf16.msra.mxu1 %v22175_v44 }
0x12e7   :  { %20748 = vmatprep.subr.bf16.mxu1 %v25356_v60 }
0x12ea   :  { %20750 = vmatpush3.bf16.msra.mxu1 %v22216_v24 }
0x12eb   :  { %20751 = vmatprep.subr.bf16.mxu1 %v25356_v60 }
0x12ee   :  { %20753 = vmatpush3.bf16.msra.mxu1 %v22260_v62 }
0x12ef   :  { %20754 = vmatprep.subr.bf16.mxu1 %v25356_v60 }
0x12f2   :  { %20756 = vmatpush3.bf16.msra.mxu1 %v25398_v27 }
0x12f3   :  { %20901 = vmatprep.subr.bf16.mxu1 %v25356_v60 }
0x12f5   :  { %17893 = vmatmul.mubr.f32.vlgmr.msra.gmra.mrb[28].mxu1 %v23961_v10 }
0x12f6   :  { %20903 = vmatpush3.bf16.msra.mxu1 %v22000_v19  ;;  %18137 = vmatprep.mubr.msk.f32.mxu1 %vm21880_vm1, %v25379_v28 }
0x12f7   :  { %20904 = vmatprep.subr.bf16.mxu1 %v25356_v60 }
0x12fa   :  { %20906 = vmatpush3.bf16.msra.mxu1 %v22061_v4 }
0x12fb   :  { %20907 = vmatprep.subr.bf16.mxu1 %v25356_v60 }
0x12fe   :  { %20909 = vmatpush3.bf16.msra.mxu1 %v22087_v37 }
0x12ff   :  { %20910 = vmatprep.subr.bf16.mxu1 %v25356_v60 }
0x1302   :  { %20912 = vmatpush3.bf16.msra.mxu1 %v22146_v61 }
0x1303   :  { %20913 = vmatprep.subr.bf16.mxu1 %v25356_v60 }
0x1306   :  { %20915 = vmatpush3.bf16.msra.mxu1 %v22175_v44 }
0x1307   :  { %20916 = vmatprep.subr.bf16.mxu1 %v25356_v60 }
0x130a   :  { %20918 = vmatpush3.bf16.msra.mxu1 %v22216_v24 }
0x130b   :  { %20919 = vmatprep.subr.bf16.mxu1 %v25356_v60 }
0x130e   :  { %20921 = vmatpush3.bf16.msra.mxu1 %v22260_v62 }
0x130f   :  { %20922 = vmatprep.subr.bf16.mxu1 %v25356_v60 }
0x1312   :  { %20924 = vmatpush3.bf16.msra.mxu1 %v25398_v27 }
0x1313   :  { %20925 = vmatprep.subr.bf16.mxu1 %v25356_v60 }
0x13c8   :  { %v9617_v2 = vpop.f32.mrb[28].mxu1 }
0x13c9   :  { %v9621_v51 = vadd.f32 %v22654_v31, %v9617_v2  ;;  %v17894_v49 = vpop.f32.mrb[29].mxu1  ;;  %v24339_v2 = vld [vmem:[#allocation6 + $0x10] sm:$0xff] }
0x13ca   :  { %v24349_v49 = vpack.c.bf16 %v25228_v23, %v25229_v25 }
0x13cb   :  { %9622 = vst [vmem:[%s25151_s8 + $0x60] sm:$0xff] %v9621_v51  ;;  %v24091_v16 = vand.u32 4294901760, %v9621_v51 }
0x13cc   :  { %25431 = vst [vmem:[#allocation22_spill] sm:$0xff] %v24349_v49 }
0x13cd   :  { %25423 = vst [vmem:[#allocation13_spill] sm:$0xff] %v24091_v16  ;;  %v24094_v53 = vsub.f32 %v9621_v51, %v24091_v16  ;;  %v24341_v51 = vld [vmem:[#allocation6 + $0x18] sm:$0xff] }
0x13cf   :  { %25424 = vst [vmem:[#allocation30_spill] sm:$0xff] %v24094_v53  ;;  %v24097_v22 = vand.u32 4294901760, %v24094_v53 }
0x13d1   :  { %25425 = vst [vmem:[#allocation14_spill] sm:$0xff] %v24097_v22  ;;  %v9707_v57 = vsub.f32 %v24094_v53, %v24097_v22 }
0x13d3   :  { %v24101_v59 = vand.u32 4294901760, %v9707_v57  ;;  %v25234_v57 = vand.u32 4294901760, %v24339_v2 }
0x13d5   :  { %17928 = vmatmul.mubr.f32.vlgmr.msra.gmra.mrb[30].mxu0 %v24101_v59 }
0x13d6   :  { %20783 = vmatpush3.bf16.msra.mxu0 %v25413_v8  ;;  %17962 = vmatprep.mubr.msk.f32.mxu0 %vm21880_vm1, %v25379_v28 }
0x13d7   :  { %20784 = vmatprep.subr.bf16.mxu0 %v25356_v60 }
0x13da   :  { %20786 = vmatpush3.bf16.msra.mxu0 %v25414_v15 }
0x13db   :  { %20787 = vmatprep.subr.bf16.mxu0 %v25356_v60 }
0x13de   :  { %20789 = vmatpush3.bf16.msra.mxu0 %v25415_v30 }
0x13df   :  { %20790 = vmatprep.subr.bf16.mxu0 %v25356_v60 }
0x13e2   :  { %20792 = vmatpush3.bf16.msra.mxu0 %v25416_v34 }
0x13e3   :  { %20793 = vmatprep.subr.bf16.mxu0 %v25356_v60 }
0x13e6   :  { %20795 = vmatpush3.bf16.msra.mxu0 %v25417_v45 }
0x13e7   :  { %20796 = vmatprep.subr.bf16.mxu0 %v25356_v60 }
0x13ea   :  { %20798 = vmatpush3.bf16.msra.mxu0 %v25418_v40 }
0x13eb   :  { %20799 = vmatprep.subr.bf16.mxu0 %v25356_v60 }
0x13ee   :  { %20801 = vmatpush3.bf16.msra.mxu0 %v25419_v39 }
0x13ef   :  { %20802 = vmatprep.subr.bf16.mxu0 %v25356_v60 }
0x13f2   :  { %20804 = vmatpush3.bf16.msra.mxu0 %v22339_v52 }
0x13f3   :  { %20805 = vmatprep.subr.bf16.mxu0 %v25356_v60 }
0x13f5   :  { %17963 = vmatmul.mubr.f32.vlgmr.msra.gmra.mrb[30].mxu0 %v24091_v16 }
0x13f6   :  { %20807 = vmatpush3.bf16.msra.mxu0 %v22378_v43  ;;  %17997 = vmatprep.mubr.msk.f32.mxu0 %vm21880_vm1, %v25379_v28 }
0x13f7   :  { %20808 = vmatprep.subr.bf16.mxu0 %v25356_v60 }
0x13fa   :  { %20810 = vmatpush3.bf16.msra.mxu0 %v22387_v11 }
0x13fb   :  { %20811 = vmatprep.subr.bf16.mxu0 %v25356_v60 }
0x13fe   :  { %20813 = vmatpush3.bf16.msra.mxu0 %v22397_v20 }
0x13ff   :  { %20814 = vmatprep.subr.bf16.mxu0 %v25356_v60 }
0x1402   :  { %20816 = vmatpush3.bf16.msra.mxu0 %v22405_v21 }
0x1403   :  { %20817 = vmatprep.subr.bf16.mxu0 %v25356_v60 }
0x1406   :  { %20819 = vmatpush3.bf16.msra.mxu0 %v22413_v5 }
0x1407   :  { %20820 = vmatprep.subr.bf16.mxu0 %v25356_v60 }
0x140a   :  { %20822 = vmatpush3.bf16.msra.mxu0 %v22421_v6 }
0x140b   :  { %20823 = vmatprep.subr.bf16.mxu0 %v25356_v60 }
0x140e   :  { %20825 = vmatpush3.bf16.msra.mxu0 %v22430_v42 }
0x140f   :  { %20826 = vmatprep.subr.bf16.mxu0 %v25356_v60 }
0x1412   :  { %20828 = vmatpush3.bf16.msra.mxu0 %v22441_v18 }
0x1413   :  { %20829 = vmatprep.subr.bf16.mxu0 %v25356_v60 }
0x1415   :  { %17998 = vmatmul.mubr.f32.vlgmr.msra.gmra.mrb[30].mxu0 %v24094_v53  ;;  %v24399_v53 = vld [vmem:[#allocation6 + $0x50] sm:$0xff] }
0x1416   :  { %20831 = vmatpush3.bf16.msra.mxu0 %v22000_v19  ;;  %18032 = vmatprep.mubr.msk.f32.mxu0 %vm21880_vm1, %v25379_v28  ;;  %25441 = vst [vmem:[#allocation29_spill] sm:$0xff] %v24399_v53 }
0x1417   :  { %20832 = vmatprep.subr.bf16.mxu0 %v25356_v60 }
0x141a   :  { %20834 = vmatpush3.bf16.msra.mxu0 %v22061_v4 }
0x141b   :  { %20835 = vmatprep.subr.bf16.mxu0 %v25356_v60 }
0x141e   :  { %20837 = vmatpush3.bf16.msra.mxu0 %v22087_v37 }
0x141f   :  { %20838 = vmatprep.subr.bf16.mxu0 %v25356_v60 }
0x1422   :  { %20840 = vmatpush3.bf16.msra.mxu0 %v22146_v61 }
0x1423   :  { %20841 = vmatprep.subr.bf16.mxu0 %v25356_v60 }
0x1426   :  { %20843 = vmatpush3.bf16.msra.mxu0 %v22175_v44 }
0x1427   :  { %20844 = vmatprep.subr.bf16.mxu0 %v25356_v60 }
0x142a   :  { %20846 = vmatpush3.bf16.msra.mxu0 %v22216_v24 }
0x142b   :  { %20847 = vmatprep.subr.bf16.mxu0 %v25356_v60 }
0x142e   :  { %20849 = vmatpush3.bf16.msra.mxu0 %v22260_v62 }
0x142f   :  { %20850 = vmatprep.subr.bf16.mxu0 %v25356_v60 }
0x1432   :  { %20852 = vmatpush3.bf16.msra.mxu0 %v25398_v27 }
0x1433   :  { %20853 = vmatprep.subr.bf16.mxu0 %v25356_v60 }
0x1435   :  { %18033 = vmatmul.mubr.f32.vlgmr.msra.gmra.mrb[30].mxu0 %v24097_v22  ;;  %v24372_v22 = vld [vmem:[#allocation6 + $0x38] sm:$0xff] }
0x1436   :  { %20855 = vmatpush3.bf16.msra.mxu0 %v25401_v32  ;;  %18067 = vmatprep.mubr.msk.f32.mxu0 %vm21880_vm1, %v25379_v28  ;;  %25436 = vst [vmem:[#allocation15_spill] sm:$0xff] %v24372_v22 }
0x1437   :  { %20856 = vmatprep.subr.bf16.mxu0 %v25356_v60 }
0x143a   :  { %20858 = vmatpush3.bf16.msra.mxu0 %v25404_v63 }
0x143b   :  { %20859 = vmatprep.subr.bf16.mxu0 %v25356_v60 }
0x143e   :  { %20861 = vmatpush3.bf16.msra.mxu0 %v22351_v12 }
0x143f   :  { %20862 = vmatprep.subr.bf16.mxu0 %v25356_v60 }
0x1442   :  { %20864 = vmatpush3.bf16.msra.mxu0 %v22357_v26 }
0x1443   :  { %20865 = vmatprep.subr.bf16.mxu0 %v25356_v60 }
0x1446   :  { %20867 = vmatpush3.bf16.msra.mxu0 %v22363_v48 }
0x1447   :  { %20868 = vmatprep.subr.bf16.mxu0 %v25356_v60 }
0x144a   :  { %20870 = vmatpush3.bf16.msra.mxu0 %v22369_v38 }
0x144b   :  { %20871 = vmatprep.subr.bf16.mxu0 %v25356_v60 }
0x144e   :  { %20873 = vmatpush3.bf16.msra.mxu0 %v22371_v17 }
0x144f   :  { %20874 = vmatprep.subr.bf16.mxu0 %v25356_v60 }
0x1452   :  { %20876 = vmatpush3.bf16.msra.mxu0 %v22373_v41 }
0x1453   :  { %20877 = vmatprep.subr.bf16.mxu0 %v25356_v60 }
0x1455   :  { %18068 = vmatmul.mubr.f32.vlgmr.msra.gmra.mrb[30].mxu0 %v24091_v16 }
0x1456   :  { %20879 = vmatpush3.bf16.msra.mxu0 %v22000_v19  ;;  %18102 = vmatprep.mubr.msk.f32.mxu0 %vm21880_vm1, %v25379_v28 }
0x1457   :  { %20880 = vmatprep.subr.bf16.mxu0 %v25356_v60 }
0x145a   :  { %20882 = vmatpush3.bf16.msra.mxu0 %v22061_v4 }
0x145b   :  { %20883 = vmatprep.subr.bf16.mxu0 %v25356_v60 }
0x145e   :  { %20885 = vmatpush3.bf16.msra.mxu0 %v22087_v37 }
0x145f   :  { %20886 = vmatprep.subr.bf16.mxu0 %v25356_v60 }
0x1462   :  { %20888 = vmatpush3.bf16.msra.mxu0 %v22146_v61 }
0x1463   :  { %20889 = vmatprep.subr.bf16.mxu0 %v25356_v60 }
0x1466   :  { %20891 = vmatpush3.bf16.msra.mxu0 %v22175_v44 }
0x1467   :  { %20892 = vmatprep.subr.bf16.mxu0 %v25356_v60 }
0x146a   :  { %20894 = vmatpush3.bf16.msra.mxu0 %v22216_v24 }
0x146b   :  { %20895 = vmatprep.subr.bf16.mxu0 %v25356_v60 }
0x146e   :  { %20897 = vmatpush3.bf16.msra.mxu0 %v22260_v62 }
0x146f   :  { %20898 = vmatprep.subr.bf16.mxu0 %v25356_v60 }
0x1472   :  { %20900 = vmatpush3.bf16.msra.mxu0 %v25398_v27 }
0x1473   :  { %21045 = vmatprep.subr.bf16.mxu0 %v25356_v60 }
0x1475   :  { %18103 = vmatmul.mubr.f32.vlgmr.msra.gmra.mrb[30].mxu0 %v24091_v16 }
0x1476   :  { %21047 = vmatpush3.bf16.msra.mxu0 %v22000_v19  ;;  %18347 = vmatprep.mubr.msk.f32.mxu0 %vm21880_vm1, %v25379_v28 }
0x1477   :  { %21048 = vmatprep.subr.bf16.mxu0 %v25356_v60 }
0x147a   :  { %21050 = vmatpush3.bf16.msra.mxu0 %v22061_v4 }
0x147b   :  { %21051 = vmatprep.subr.bf16.mxu0 %v25356_v60 }
0x147e   :  { %21053 = vmatpush3.bf16.msra.mxu0 %v22087_v37 }
0x147f   :  { %21054 = vmatprep.subr.bf16.mxu0 %v25356_v60 }
0x1482   :  { %21056 = vmatpush3.bf16.msra.mxu0 %v22146_v61 }
0x1483   :  { %21057 = vmatprep.subr.bf16.mxu0 %v25356_v60 }
0x1486   :  { %21059 = vmatpush3.bf16.msra.mxu0 %v22175_v44 }
0x1487   :  { %21060 = vmatprep.subr.bf16.mxu0 %v25356_v60 }
0x148a   :  { %21062 = vmatpush3.bf16.msra.mxu0 %v22216_v24 }
0x148b   :  { %21063 = vmatprep.subr.bf16.mxu0 %v25356_v60 }
0x148e   :  { %21065 = vmatpush3.bf16.msra.mxu0 %v22260_v62 }
0x148f   :  { %21066 = vmatprep.subr.bf16.mxu0 %v25356_v60 }
0x1492   :  { %21068 = vmatpush3.bf16.msra.mxu0 %v25398_v27 }
0x1493   :  { %21069 = vmatprep.subr.bf16.mxu0 %v25356_v60 }
0x1548   :  { %v10260_v31 = vpop.f32.mrb[30].mxu0 }
0x1549   :  { %v10264_v46 = vadd.f32 %v22652_v0, %v10260_v31  ;;  %v18104_v29 = vpop.f32.mrb[31].mxu0  ;;  %v11552_v0 = vld [vmem:[%s25151_s8] sm:$0xff]  ;;  %v25233_v31 = vand.u32 4294901760, %v24341_v51 }
0x154a   :  { %v24323_v33 = vand.u32 4294901760, %v11552_v0  ;;  %v24356_v29 = vld [vmem:[#allocation6 + $0x20] sm:$0xff] }
0x154b   :  { %10265 = vst [vmem:[%s25151_s8 + $0x68] sm:$0xff] %v10264_v46  ;;  %v24221_v47 = vand.u32 4294901760, %v10264_v46  ;;  %25432 = vst [vmem:[#allocation24_spill] sm:$0xff] %v24356_v29  ;;  %v25238_v23 = vand.u32 4294901760, %v24356_v29 }
0x154c   :  { %25429 = vst [vmem:[#allocation19_spill] sm:$0xff] %v24323_v33  ;;  %v24332_v56 = vsub.f32 %v11552_v0, %v24323_v33  ;;  %v24366_v0 = vpack.c.bf16 %v25233_v31, %v25234_v57 }
0x154d   :  { %25426 = vst [vmem:[#allocation16_spill] sm:$0xff] %v24221_v47  ;;  %v24224_v36 = vsub.f32 %v10264_v46, %v24221_v47 }
0x154e   :  { %25430 = vst [vmem:[#allocation21_spill] sm:$0xff] %v24332_v56  ;;  %v25231_v54 = vand.u32 4294901760, %v24332_v56  ;;  %25434 = vst [vmem:[#allocation27_spill] sm:$0xff] %v24366_v0 }
0x154f   :  { %25427 = vst [vmem:[#allocation31_spill] sm:$0xff] %v24224_v36  ;;  %v24227_v1 = vand.u32 4294901760, %v24224_v36 }
0x1550   :  { %v11675_v46 = vsub.f32 %v24332_v56, %v25231_v54  ;;  %v24370_v54 = vld [vmem:[#allocation6 + $0x30] sm:$0xff]  ;;  %v24419_v56 = vld [vmem:[#allocation6 + $0x60] sm:$0xff] }
0x1551   :  { %25428 = vst [vmem:[#allocation18_spill] sm:$0xff] %v24227_v1  ;;  %v10350_v14 = vsub.f32 %v24224_v36, %v24227_v1  ;;  %25435 = vst [vmem:[#allocation10_spill] sm:$0xff] %v24370_v54  ;;  %v25244_v57 = vand.u32 4294901760, %v24370_v54  ;;  %v25280_v10 = vand.u32 4294901760, %v24419_v56 }
0x1552   :  { %25444 = vst [vmem:[#allocation35_spill] sm:$0xff] %v24419_v56 }
0x1553   :  { %v24231_v13 = vand.u32 4294901760, %v10350_v14  ;;  %v24358_v14 = vld [vmem:[#allocation6 + $0x28] sm:$0xff] }
0x1554   :  { %25433 = vst [vmem:[#allocation25_spill] sm:$0xff] %v24358_v14  ;;  %v25237_v25 = vand.u32 4294901760, %v24358_v14 }
0x1555   :  { %18138 = vmatmul.mubr.f32.vlgmr.msra.gmra.mrb[30].mxu1 %v24231_v13 }
0x1556   :  { %20927 = vmatpush3.bf16.msra.mxu1 %v25413_v8  ;;  %18172 = vmatprep.mubr.msk.f32.mxu1 %vm21880_vm1, %v25379_v28  ;;  %v24381_v31 = vpack.c.bf16 %v25237_v25, %v25238_v23  ;;  %v25254_v25 = vand.u32 4294901760, %v24385_v58  ;;  %v25292_v58 = vand.u32 4294901760, %v24437_v50 }
0x1557   :  { %20928 = vmatprep.subr.bf16.mxu1 %v25356_v60 }
0x1558   :  { %25437 = vst [vmem:[#allocation17_spill] sm:$0xff] %v24381_v31 }
0x155a   :  { %20930 = vmatpush3.bf16.msra.mxu1 %v25414_v15 }
0x155b   :  { %20931 = vmatprep.subr.bf16.mxu1 %v25356_v60 }
0x155e   :  { %20933 = vmatpush3.bf16.msra.mxu1 %v25415_v30 }
0x155f   :  { %20934 = vmatprep.subr.bf16.mxu1 %v25356_v60 }
0x1562   :  { %20936 = vmatpush3.bf16.msra.mxu1 %v25416_v34 }
0x1563   :  { %20937 = vmatprep.subr.bf16.mxu1 %v25356_v60 }
0x1566   :  { %20939 = vmatpush3.bf16.msra.mxu1 %v25417_v45 }
0x1567   :  { %20940 = vmatprep.subr.bf16.mxu1 %v25356_v60 }
0x156a   :  { %20942 = vmatpush3.bf16.msra.mxu1 %v25418_v40 }
0x156b   :  { %20943 = vmatprep.subr.bf16.mxu1 %v25356_v60 }
0x156e   :  { %20945 = vmatpush3.bf16.msra.mxu1 %v25419_v39 }
0x156f   :  { %20946 = vmatprep.subr.bf16.mxu1 %v25356_v60 }
0x1572   :  { %20948 = vmatpush3.bf16.msra.mxu1 %v22339_v52 }
0x1573   :  { %20949 = vmatprep.subr.bf16.mxu1 %v25356_v60 }
0x1575   :  { %18173 = vmatmul.mubr.f32.vlgmr.msra.gmra.mrb[30].mxu1 %v24221_v47 }
0x1576   :  { %20951 = vmatpush3.bf16.msra.mxu1 %v22378_v43  ;;  %18207 = vmatprep.mubr.msk.f32.mxu1 %vm21880_vm1, %v25379_v28 }
0x1577   :  { %20952 = vmatprep.subr.bf16.mxu1 %v25356_v60 }
0x157a   :  { %20954 = vmatpush3.bf16.msra.mxu1 %v22387_v11 }
0x157b   :  { %20955 = vmatprep.subr.bf16.mxu1 %v25356_v60 }
0x157e   :  { %20957 = vmatpush3.bf16.msra.mxu1 %v22397_v20 }
0x157f   :  { %20958 = vmatprep.subr.bf16.mxu1 %v25356_v60 }
0x1582   :  { %20960 = vmatpush3.bf16.msra.mxu1 %v22405_v21 }
0x1583   :  { %20961 = vmatprep.subr.bf16.mxu1 %v25356_v60 }
0x1586   :  { %20963 = vmatpush3.bf16.msra.mxu1 %v22413_v5 }
0x1587   :  { %20964 = vmatprep.subr.bf16.mxu1 %v25356_v60 }
0x158a   :  { %20966 = vmatpush3.bf16.msra.mxu1 %v22421_v6 }
0x158b   :  { %20967 = vmatprep.subr.bf16.mxu1 %v25356_v60 }
0x158e   :  { %20969 = vmatpush3.bf16.msra.mxu1 %v22430_v42 }
0x158f   :  { %20970 = vmatprep.subr.bf16.mxu1 %v25356_v60 }
0x1592   :  { %20972 = vmatpush3.bf16.msra.mxu1 %v22441_v18 }
0x1593   :  { %20973 = vmatprep.subr.bf16.mxu1 %v25356_v60 }
0x1595   :  { %18208 = vmatmul.mubr.f32.vlgmr.msra.gmra.mrb[30].mxu1 %v24224_v36  ;;  %v24387_v36 = vld [vmem:[#allocation6 + $0x48] sm:$0xff] }
0x1596   :  { %20975 = vmatpush3.bf16.msra.mxu1 %v22000_v19  ;;  %18242 = vmatprep.mubr.msk.f32.mxu1 %vm21880_vm1, %v25379_v28  ;;  %25439 = vst [vmem:[#allocation23_spill] sm:$0xff] %v24387_v36  ;;  %v25253_v23 = vand.u32 4294901760, %v24387_v36  ;;  %v24439_v36 = vld [vmem:[#allocation6 + $0x78] sm:$0xff] }
0x1597   :  { %20976 = vmatprep.subr.bf16.mxu1 %v25356_v60  ;;  %25450 = vst [vmem:[#allocation41_spill] sm:$0xff] %v24439_v36 }
0x159a   :  { %20978 = vmatpush3.bf16.msra.mxu1 %v22061_v4 }
0x159b   :  { %20979 = vmatprep.subr.bf16.mxu1 %v25356_v60 }
0x159e   :  { %20981 = vmatpush3.bf16.msra.mxu1 %v22087_v37 }
0x159f   :  { %20982 = vmatprep.subr.bf16.mxu1 %v25356_v60 }
0x15a2   :  { %20984 = vmatpush3.bf16.msra.mxu1 %v22146_v61 }
0x15a3   :  { %20985 = vmatprep.subr.bf16.mxu1 %v25356_v60 }
0x15a6   :  { %20987 = vmatpush3.bf16.msra.mxu1 %v22175_v44 }
0x15a7   :  { %20988 = vmatprep.subr.bf16.mxu1 %v25356_v60 }
0x15aa   :  { %20990 = vmatpush3.bf16.msra.mxu1 %v22216_v24 }
0x15ab   :  { %20991 = vmatprep.subr.bf16.mxu1 %v25356_v60 }
0x15ae   :  { %20993 = vmatpush3.bf16.msra.mxu1 %v22260_v62 }
0x15af   :  { %20994 = vmatprep.subr.bf16.mxu1 %v25356_v60 }
0x15b2   :  { %20996 = vmatpush3.bf16.msra.mxu1 %v25398_v27 }
0x15b3   :  { %20997 = vmatprep.subr.bf16.mxu1 %v25356_v60 }
0x15b5   :  { %18243 = vmatmul.mubr.f32.vlgmr.msra.gmra.mrb[30].mxu1 %v24227_v1  ;;  %v11676_v1 = vand.u32 4294901760, %v11675_v46  ;;  %v25243_v46 = vand.u32 4294901760, %v24372_v22  ;;  %v25291_v22 = vand.u32 4294901760, %v24439_v36 }
0x15b6   :  { %20999 = vmatpush3.bf16.msra.mxu1 %v25401_v32  ;;  %18277 = vmatprep.mubr.msk.f32.mxu1 %vm21880_vm1, %v25379_v28 }
0x15b7   :  { %21000 = vmatprep.subr.bf16.mxu1 %v25356_v60 }
0x15ba   :  { %21002 = vmatpush3.bf16.msra.mxu1 %v25404_v63 }
0x15bb   :  { %21003 = vmatprep.subr.bf16.mxu1 %v25356_v60 }
0x15be   :  { %21005 = vmatpush3.bf16.msra.mxu1 %v22351_v12 }
0x15bf   :  { %21006 = vmatprep.subr.bf16.mxu1 %v25356_v60 }
0x15c2   :  { %21008 = vmatpush3.bf16.msra.mxu1 %v22357_v26 }
0x15c3   :  { %21009 = vmatprep.subr.bf16.mxu1 %v25356_v60 }
0x15c6   :  { %21011 = vmatpush3.bf16.msra.mxu1 %v22363_v48 }
0x15c7   :  { %21012 = vmatprep.subr.bf16.mxu1 %v25356_v60 }
0x15ca   :  { %21014 = vmatpush3.bf16.msra.mxu1 %v22369_v38 }
0x15cb   :  { %21015 = vmatprep.subr.bf16.mxu1 %v25356_v60 }
0x15ce   :  { %21017 = vmatpush3.bf16.msra.mxu1 %v22371_v17 }
0x15cf   :  { %21018 = vmatprep.subr.bf16.mxu1 %v25356_v60 }
0x15d2   :  { %21020 = vmatpush3.bf16.msra.mxu1 %v22373_v41 }
0x15d3   :  { %21021 = vmatprep.subr.bf16.mxu1 %v25356_v60 }
0x15d5   :  { %18278 = vmatmul.mubr.f32.vlgmr.msra.gmra.mrb[30].mxu1 %v24221_v47 }
0x15d6   :  { %21023 = vmatpush3.bf16.msra.mxu1 %v22000_v19  ;;  %18312 = vmatprep.mubr.msk.f32.mxu1 %vm21880_vm1, %v25379_v28 }
0x15d7   :  { %21024 = vmatprep.subr.bf16.mxu1 %v25356_v60 }
0x15da   :  { %21026 = vmatpush3.bf16.msra.mxu1 %v22061_v4 }
0x15db   :  { %21027 = vmatprep.subr.bf16.mxu1 %v25356_v60 }
0x15de   :  { %21029 = vmatpush3.bf16.msra.mxu1 %v22087_v37 }
0x15df   :  { %21030 = vmatprep.subr.bf16.mxu1 %v25356_v60 }
0x15e2   :  { %21032 = vmatpush3.bf16.msra.mxu1 %v22146_v61 }
0x15e3   :  { %21033 = vmatprep.subr.bf16.mxu1 %v25356_v60 }
0x15e6   :  { %21035 = vmatpush3.bf16.msra.mxu1 %v22175_v44 }
0x15e7   :  { %21036 = vmatprep.subr.bf16.mxu1 %v25356_v60 }
0x15ea   :  { %21038 = vmatpush3.bf16.msra.mxu1 %v22216_v24 }
0x15eb   :  { %21039 = vmatprep.subr.bf16.mxu1 %v25356_v60 }
0x15ee   :  { %21041 = vmatpush3.bf16.msra.mxu1 %v22260_v62 }
0x15ef   :  { %21042 = vmatprep.subr.bf16.mxu1 %v25356_v60 }
0x15f2   :  { %21044 = vmatpush3.bf16.msra.mxu1 %v25398_v27 }
0x15f3   :  { %21190 = vmatprep.subr.bf16.mxu1 %v24349_v49 }
0x15f5   :  { %18313 = vmatmul.mubr.f32.vlgmr.msra.gmra.mrb[30].mxu1 %v24221_v47  ;;  %v24421_v47 = vld [vmem:[#allocation6 + $0x68] sm:$0xff] }
0x15f6   :  { %21192 = vmatpush3.bf16.msra.mxu1 %v24349_v49  ;;  %18557 = vmatprep.mubr.f32.mxu1 %v11676_v1  ;;  %v24395_v1 = vpack.c.bf16 %v25243_v46, %v25244_v57  ;;  %v25268_v46 = vand.u32 4294901760, %v24399_v53  ;;  %v25267_v57 = vand.u32 4294901760, %v24401_v35  ;;  %v11553_v49 = vld [vmem:[%s25151_s8 + $0x8] sm:$0xff]  ;;  %25445 = vst [vmem:[#allocation36_spill] sm:$0xff] %v24421_v47  ;;  %v25279_v33 = vand.u32 4294901760, %v24421_v47  ;;  %v11556_v53 = vld [vmem:[%s25151_s8 + $0x20] sm:$0xff] }
0x15f7   :  { %21194 = vmatprep.subr.bf16.mxu1 %v24366_v0 }
0x15f8   :  { %25440 = vst [vmem:[#allocation26_spill] sm:$0xff] %v24395_v1  ;;  %v24433_v16 = vpack.c.bf16 %v25267_v57, %v25268_v46  ;;  %v24459_v35 = vpack.c.bf16 %v25279_v33, %v25280_v10  ;;  %v11559_v10 = vld [vmem:[%s25151_s8 + $0x38] sm:$0xff]  ;;  %v11560_v33 = vld [vmem:[%s25151_s8 + $0x40] sm:$0xff] }
0x15f9   :  { %v24511_v36 = vand.u32 4294901760, %v11559_v10  ;;  %v24517_v14 = vand.u32 4294901760, %v11560_v33 }
0x15fa   :  { %21196 = vmatpush3.bf16.msra.mxu1 %v24366_v0  ;;  %v24409_v0 = vpack.c.bf16 %v25253_v23, %v25254_v25  ;;  %v24424_v23 = vand.u32 4294901760, %v11553_v49  ;;  %25448 = vst [vmem:[#allocation39_spill] sm:$0xff] %v24433_v16  ;;  %25453 = vst [vmem:[#allocation44_spill] sm:$0xff] %v24459_v35 }
0x15fb   :  { %21198 = vmatprep.subr.bf16.mxu1 %v24381_v31 }
0x15fc   :  { %25443 = vst [vmem:[#allocation34_spill] sm:$0xff] %v24409_v0  ;;  %25446 = vst [vmem:[#allocation37_spill] sm:$0xff] %v24424_v23  ;;  %v24449_v57 = vsub.f32 %v11553_v49, %v24424_v23  ;;  %v11557_v49 = vld [vmem:[%s25151_s8 + $0x28] sm:$0xff] }
0x15fd   :  { %v24486_v47 = vand.u32 4294901760, %v11557_v49 }
0x15fe   :  { %21200 = vmatpush3.bf16.msra.mxu1 %v24381_v31  ;;  %v11554_v31 = vld [vmem:[%s25151_s8 + $0x10] sm:$0xff]  ;;  %25451 = vst [vmem:[#allocation42_spill] sm:$0xff] %v24449_v57 }
0x15ff   :  { %21202 = vmatprep.subr.bf16.mxu1 %v24395_v1  ;;  %v24426_v25 = vand.u32 4294901760, %v11554_v31  ;;  %25458 = vst [vmem:[#allocation49_spill] sm:$0xff] %v24486_v47 }
0x1601   :  { %25447 = vst [vmem:[#allocation38_spill] sm:$0xff] %v24426_v25  ;;  %v24452_v46 = vsub.f32 %v11554_v31, %v24426_v25  ;;  %v11558_v31 = vld [vmem:[%s25151_s8 + $0x30] sm:$0xff]  ;;  %v24481_v25 = vpack.c.bf16 %v25291_v22, %v25292_v58 }
0x1602   :  { %21204 = vmatpush3.bf16.msra.mxu1 %v24395_v1  ;;  %v11555_v1 = vld [vmem:[%s25151_s8 + $0x18] sm:$0xff] }
0x1603   :  { %21206 = vmatprep.subr.bf16.mxu1 %v24409_v0  ;;  %25452 = vst [vmem:[#allocation43_spill] sm:$0xff] %v24452_v46  ;;  %v24463_v54 = vand.u32 4294901760, %v11555_v1  ;;  %25456 = vst [vmem:[#allocation47_spill] sm:$0xff] %v24481_v25  ;;  %v25462_v58 = vand.u32 4294901760, %v24452_v46 }
0x1605   :  { %25454 = vst [vmem:[#allocation45_spill] sm:$0xff] %v24463_v54  ;;  %v24484_v23 = vsub.f32 %v11555_v1, %v24463_v54  ;;  %v25461_v1 = vand.u32 4294901760, %v24449_v57  ;;  %v24509_v54 = vsub.f32 %v11557_v49, %v24486_v47 }
0x1606   :  { %21208 = vmatpush3.bf16.msra.mxu1 %v24409_v0  ;;  %v24465_v0 = vand.u32 4294901760, %v11556_v53 }
0x1607   :  { %21210 = vmatprep.subr.bf16.mxu1 %v24433_v16  ;;  %25457 = vst [vmem:[#allocation48_spill] sm:$0xff] %v24484_v23  ;;  %v11685_v22 = vsub.f32 %v24449_v57, %v25461_v1  ;;  %v11562_v1 = vld [vmem:[%s25151_s8 + $0x50] sm:$0xff]  ;;  %v24531_v57 = vsub.f32 %v11559_v10, %v24511_v36 }
0x1608   :  { %25455 = vst [vmem:[#allocation46_spill] sm:$0xff] %v24465_v0  ;;  %v24489_v56 = vsub.f32 %v11556_v53, %v24465_v0  ;;  %v11695_v53 = vsub.f32 %v24452_v46, %v25462_v58  ;;  %v11561_v58 = vld [vmem:[%s25151_s8 + $0x48] sm:$0xff]  ;;  %v25463_v46 = vand.u32 4294901760, %v24484_v23 }
0x1609   :  { %v11686_v49 = vand.u32 4294901760, %v11685_v22  ;;  %v24540_v22 = vsub.f32 %v11560_v33, %v24517_v14 }
0x160a   :  { %21212 = vmatpush3.bf16.msra.mxu1 %v24433_v16  ;;  %25459 = vst [vmem:[#allocation50_spill] sm:$0xff] %v24489_v56  ;;  %v24491_v16 = vand.u32 4294901760, %v11558_v31  ;;  %v11696_v0 = vand.u32 4294901760, %v11695_v53  ;;  %v11705_v50 = vsub.f32 %v24484_v23, %v25463_v46  ;;  %v25464_v47 = vand.u32 4294901760, %v24489_v56 }
0x160b   :  { %21214 = vmatprep.subr.bf16.mxu1 %v24459_v35  ;;  %v24542_v53 = vand.u32 4294901760, %v11562_v1 }
0x160c   :  { %25460 = vst [vmem:[#allocation51_spill] sm:$0xff] %v24491_v16  ;;  %v11715_v29 = vsub.f32 %v24489_v56, %v25464_v47  ;;  %v11706_v46 = vand.u32 4294901760, %v11705_v50  ;;  %v25334_v56 = vand.u32 4294901760, %v24540_v22 }
0x160e   :  { %21216 = vmatpush3.bf16.msra.mxu1 %v24459_v35  ;;  %v24515_v35 = vsub.f32 %v11558_v31, %v24491_v16  ;;  %v25322_v31 = vand.u32 4294901760, %v24509_v54  ;;  %v24533_v16 = vand.u32 4294901760, %v11561_v58  ;;  %v11716_v47 = vand.u32 4294901760, %v11715_v29 }
0x160f   :  { %21218 = vmatprep.subr.bf16.mxu1 %v24481_v25  ;;  %v11755_v29 = vsub.f32 %v24540_v22, %v25334_v56  ;;  %v25517_v56 = vld [vmem:[#allocation30_spill] sm:$0xff] }
0x1610   :  { %v25323_v41 = vand.u32 4294901760, %v24515_v35  ;;  %v11725_v10 = vsub.f32 %v24509_v54, %v25322_v31  ;;  %v24549_v23 = vsub.f32 %v11561_v58, %v24533_v16 }
0x1612   :  { %21220 = vmatpush3.bf16.msra.mxu1 %v24481_v25  ;;  %v25324_v25 = vand.u32 4294901760, %v24531_v57  ;;  %v11735_v33 = vsub.f32 %v24515_v35, %v25323_v41  ;;  %v11726_v50 = vand.u32 4294901760, %v11725_v10  ;;  %v25331_v58 = vand.u32 4294901760, %v24549_v23 }
0x1613   :  { %v11756_v10 = vand.u32 4294901760, %v11755_v29 }
0x1614   :  { %v11736_v31 = vand.u32 4294901760, %v11735_v33 }
0x1615   :  { %18558 = vmatmul.mubr.f32.vlgmr.msra.gmra.mrb[32].mxu1 %v11686_v49  ;;  %v24556_v49 = vsub.f32 %v11562_v1, %v24542_v53 }
0x1616   :  { %18560 = vmatprep.mubr.f32.mxu1 %v11696_v0  ;;  %v11745_v0 = vsub.f32 %v24531_v57, %v25324_v25 }
0x1617   :  { %v25330_v41 = vand.u32 4294901760, %v24556_v49 }
0x1618   :  { %v11746_v1 = vand.u32 4294901760, %v11745_v0 }
0x1619   :  { %18561 = vmatmul.mubr.f32.gmra.mrb[34].mxu1 %v11706_v46  ;;  %v11765_v46 = vsub.f32 %v24549_v23, %v25331_v58  ;;  %v25514_v58 = vld [vmem:[#allocation34_spill] sm:$0xff] }
0x161a   :  { %18563 = vmatprep.mubr.f32.mxu1 %v11716_v47  ;;  %v11775_v47 = vsub.f32 %v24556_v49, %v25330_v41  ;;  %v25511_v41 = vld [vmem:[#allocation50_spill] sm:$0xff] }
0x161b   :  { %v11766_v33 = vand.u32 4294901760, %v11765_v46 }
0x161c   :  { %v11776_v25 = vand.u32 4294901760, %v11775_v47 }
0x161d   :  { %18564 = vmatmul.mubr.f32.gmra.mrb[36].mxu1 %v11726_v50 }
0x161e   :  { %18566 = vmatprep.mubr.f32.mxu1 %v11736_v31 }
0x1621   :  { %18567 = vmatmul.mubr.f32.gmra.mrb[38].mxu1 %v11746_v1 }
0x1622   :  { %18569 = vmatprep.mubr.f32.mxu1 %v11756_v10 }
0x1625   :  { %18570 = vmatmul.mubr.f32.gmra.mrb[40].mxu1 %v11766_v33 }
0x1626   :  { %18572 = vmatprep.mubr.f32.mxu1 %v11776_v25 }
0x1629   :  { %18573 = vmatmul.mubr.f32.gmra.mrb[42].mxu1 %v23971_v55 }
0x162a   :  { %18575 = vmatprep.mubr.f32.mxu1 %v24101_v59 }
0x162d   :  { %18576 = vmatmul.mubr.f32.gmra.mrb[44].mxu1 %v24231_v13 }
0x16c8   :  { %v10903_v31 = vpop.f32.mrb[30].mxu1 }
0x16c9   :  { %v10907_v50 = vadd.f32 %v22658_v9, %v10903_v31  ;;  %v18314_v0 = vpop.f32.mrb[31].mxu1  ;;  %v25465_v9 = vand.u32 4294901760, %v24327_v7 }
0x16cb   :  { %10908 = vst [vmem:[%s25151_s8 + $0x70] sm:$0xff] %v10907_v50  ;;  %v24579_v29 = vand.u32 4294901760, %v10907_v50 }
0x16cd   :  { %v24582_v1 = vsub.f32 %v10907_v50, %v24579_v29 }
0x16cf   :  { %v24585_v25 = vand.u32 4294901760, %v24582_v1 }
0x16d1   :  { %v10993_v55 = vsub.f32 %v24582_v1, %v24585_v25 }
0x16d3   :  { %v10994_v59 = vand.u32 4294901760, %v10993_v55  ;;  %v25478_v55 = vld [vmem:[#allocation20_spill] sm:$0xff] }
0x16d5   :  { %18348 = vmatmul.mubr.f32.vlgmr.msra.gmra.mrb[32].mxu0 %v10994_v59  ;;  %18578 = vmatprep.mubr.f32.mxu1 %v10994_v59  ;;  %v25479_v59 = vand.u32 4294901760, %v25478_v55 }
0x16d6   :  { %21071 = vmatpush3.bf16.msra.mxu0 %v25413_v8  ;;  %18382 = vmatprep.mubr.msk.f32.mxu0 %vm21880_vm1, %v25379_v28  ;;  %v24611_v8 = vsub.f32 %v24327_v7, %v25465_v9 }
0x16d7   :  { %21072 = vmatprep.subr.bf16.mxu0 %v25356_v60  ;;  %v24758_v9 = vsub.f32 %v25478_v55, %v25479_v59 }
0x16da   :  { %21074 = vmatpush3.bf16.msra.mxu0 %v25414_v15  ;;  %v25466_v15 = vand.u32 4294901760, %v24329_v3 }
0x16db   :  { %21075 = vmatprep.subr.bf16.mxu0 %v25356_v60 }
0x16de   :  { %21077 = vmatpush3.bf16.msra.mxu0 %v25415_v30  ;;  %v24616_v30 = vsub.f32 %v24329_v3, %v25466_v15  ;;  %v25480_v15 = vld [vmem:[#allocation23_spill] sm:$0xff] }
0x16df   :  { %21078 = vmatprep.subr.bf16.mxu0 %v25356_v60 }
0x16e0   :  { %v11842_v13 = vand.u32 4294901760, %v24616_v30 }
0x16e2   :  { %21080 = vmatpush3.bf16.msra.mxu0 %v25416_v34  ;;  %v25467_v34 = vand.u32 4294901760, %v24339_v2 }
0x16e3   :  { %21081 = vmatprep.subr.bf16.mxu0 %v25356_v60 }
0x16e6   :  { %21083 = vmatpush3.bf16.msra.mxu0 %v25417_v45  ;;  %v24621_v45 = vsub.f32 %v24339_v2, %v25467_v34  ;;  %v25481_v34 = vand.u32 4294901760, %v25480_v15 }
0x16e7   :  { %21084 = vmatprep.subr.bf16.mxu0 %v25356_v60 }
0x16e8   :  { %v11849_v7 = vand.u32 4294901760, %v24621_v45 }
0x16ea   :  { %21086 = vmatpush3.bf16.msra.mxu0 %v25418_v40 }
0x16eb   :  { %21087 = vmatprep.subr.bf16.mxu0 %v25356_v60 }
0x16ee   :  { %21089 = vmatpush3.bf16.msra.mxu0 %v25419_v39  ;;  %v11835_v39 = vand.u32 4294901760, %v24611_v8 }
0x16ef   :  { %21090 = vmatprep.subr.bf16.mxu0 %v25356_v60 }
0x16f0   :  { %v11836_v2 = vsub.f32 %v24611_v8, %v11835_v39 }
0x16f2   :  { %21092 = vmatpush3.bf16.msra.mxu0 %v22339_v52  ;;  %v25468_v52 = vand.u32 4294901760, %v24341_v51  ;;  %v11837_v10 = vand.u32 4294901760, %v11836_v2 }
0x16f3   :  { %21093 = vmatprep.subr.bf16.mxu0 %v25356_v60 }
0x16f4   :  { %v24626_v40 = vsub.f32 %v24341_v51, %v25468_v52  ;;  %v11850_v51 = vsub.f32 %v24621_v45, %v11849_v7  ;;  %v24763_v52 = vsub.f32 %v25480_v15, %v25481_v34 }
0x16f5   :  { %18383 = vmatmul.mubr.f32.vlgmr.msra.gmra.mrb[32].mxu0 %v24579_v29 }
0x16f6   :  { %21095 = vmatpush3.bf16.msra.mxu0 %v22378_v43  ;;  %18417 = vmatprep.mubr.msk.f32.mxu0 %vm21880_vm1, %v25379_v28  ;;  %v11856_v3 = vand.u32 4294901760, %v24626_v40  ;;  %v11843_v43 = vsub.f32 %v24616_v30, %v11842_v13  ;;  %v11851_v33 = vand.u32 4294901760, %v11850_v51  ;;  %v25336_v51 = vand.u32 4294901760, %v24758_v9 }
0x16f7   :  { %21096 = vmatprep.subr.bf16.mxu0 %v25356_v60 }
0x16f8   :  { %v11857_v46 = vsub.f32 %v24626_v40, %v11856_v3  ;;  %v11844_v47 = vand.u32 4294901760, %v11843_v43 }
0x16fa   :  { %21098 = vmatpush3.bf16.msra.mxu0 %v22387_v11  ;;  %v11858_v31 = vand.u32 4294901760, %v11857_v46  ;;  %v21221_v50 = vpack.c.bf16 %v11844_v47, %v11837_v10  ;;  %v25469_v11 = vld [vmem:[#allocation32_spill] sm:$0xff]  ;;  %v25335_v46 = vand.u32 4294901760, %v24763_v52  ;;  %v11892_v47 = vsub.f32 %v24758_v9, %v25336_v51  ;;  %v25519_v51 = vld [vmem:[#allocation31_spill] sm:$0xff] }
0x16fb   :  { %21099 = vmatprep.subr.bf16.mxu0 %v25356_v60 }
0x16fc   :  { %v21225_v0 = vpack.c.bf16 %v11858_v31, %v11851_v33  ;;  %21222 = vmatprep.subr.bf16.mxu1 %v21221_v50  ;;  %v25482_v33 = vld [vmem:[#allocation29_spill] sm:$0xff] }
0x16fd   :  { %21224 = vmatpush3.bf16.msra.mxu1 %v21221_v50  ;;  %v25483_v31 = vand.u32 4294901760, %v25482_v33 }
0x16fe   :  { %21101 = vmatpush3.bf16.msra.mxu0 %v22397_v20  ;;  %21226 = vmatprep.subr.bf16.mxu1 %v21225_v0 }
0x16ff   :  { %21102 = vmatprep.subr.bf16.mxu0 %v25356_v60  ;;  %v24773_v50 = vsub.f32 %v25482_v33, %v25483_v31 }
0x1701   :  { %21228 = vmatpush3.bf16.msra.mxu1 %v21225_v0  ;;  %v25484_v0 = vld [vmem:[#allocation33_spill] sm:$0xff] }
0x1702   :  { %21104 = vmatpush3.bf16.msra.mxu0 %v22405_v21 }
0x1703   :  { %21105 = vmatprep.subr.bf16.mxu0 %v25356_v60 }
0x1706   :  { %21107 = vmatpush3.bf16.msra.mxu0 %v22413_v5 }
0x1707   :  { %21108 = vmatprep.subr.bf16.mxu0 %v25356_v60 }
0x170a   :  { %21110 = vmatpush3.bf16.msra.mxu0 %v22421_v6 }
0x170b   :  { %21111 = vmatprep.subr.bf16.mxu0 %v25356_v60 }
0x170e   :  { %21113 = vmatpush3.bf16.msra.mxu0 %v22430_v42 }
0x170f   :  { %21114 = vmatprep.subr.bf16.mxu0 %v25356_v60 }
0x1712   :  { %21116 = vmatpush3.bf16.msra.mxu0 %v22441_v18 }
0x1713   :  { %21117 = vmatprep.subr.bf16.mxu0 %v25356_v60 }
0x1715   :  { %18418 = vmatmul.mubr.f32.vlgmr.msra.gmra.mrb[32].mxu0 %v24582_v1 }
0x1716   :  { %21119 = vmatpush3.bf16.msra.mxu0 %v22000_v19  ;;  %18452 = vmatprep.mubr.msk.f32.mxu0 %vm21880_vm1, %v25379_v28 }
0x1717   :  { %21120 = vmatprep.subr.bf16.mxu0 %v25356_v60 }
0x171a   :  { %21122 = vmatpush3.bf16.msra.mxu0 %v22061_v4 }
0x171b   :  { %21123 = vmatprep.subr.bf16.mxu0 %v25356_v60 }
0x171e   :  { %21125 = vmatpush3.bf16.msra.mxu0 %v22087_v37 }
0x171f   :  { %21126 = vmatprep.subr.bf16.mxu0 %v25356_v60 }
0x1722   :  { %21128 = vmatpush3.bf16.msra.mxu0 %v22146_v61 }
0x1723   :  { %21129 = vmatprep.subr.bf16.mxu0 %v25356_v60 }
0x1726   :  { %21131 = vmatpush3.bf16.msra.mxu0 %v22175_v44 }
0x1727   :  { %21132 = vmatprep.subr.bf16.mxu0 %v25356_v60 }
0x172a   :  { %21134 = vmatpush3.bf16.msra.mxu0 %v22216_v24 }
0x172b   :  { %21135 = vmatprep.subr.bf16.mxu0 %v25356_v60 }
0x172e   :  { %21137 = vmatpush3.bf16.msra.mxu0 %v22260_v62 }
0x172f   :  { %21138 = vmatprep.subr.bf16.mxu0 %v25356_v60 }
0x1732   :  { %21140 = vmatpush3.bf16.msra.mxu0 %v25398_v27 }
0x1733   :  { %21141 = vmatprep.subr.bf16.mxu0 %v25356_v60 }
0x1735   :  { %18453 = vmatmul.mubr.f32.vlgmr.msra.gmra.mrb[32].mxu0 %v24585_v25 }
0x1736   :  { %21143 = vmatpush3.bf16.msra.mxu0 %v25401_v32  ;;  %18487 = vmatprep.mubr.msk.f32.mxu0 %vm21880_vm1, %v25379_v28 }
0x1737   :  { %21144 = vmatprep.subr.bf16.mxu0 %v25356_v60 }
0x173a   :  { %21146 = vmatpush3.bf16.msra.mxu0 %v25404_v63 }
0x173b   :  { %21147 = vmatprep.subr.bf16.mxu0 %v25356_v60 }
0x173e   :  { %21149 = vmatpush3.bf16.msra.mxu0 %v22351_v12 }
0x173f   :  { %21150 = vmatprep.subr.bf16.mxu0 %v25356_v60 }
0x1742   :  { %21152 = vmatpush3.bf16.msra.mxu0 %v22357_v26  ;;  %v25474_v26 = vld [vmem:[#allocation10_spill] sm:$0xff] }
0x1743   :  { %21153 = vmatprep.subr.bf16.mxu0 %v25356_v60 }
0x1746   :  { %21155 = vmatpush3.bf16.msra.mxu0 %v22363_v48  ;;  %v25475_v48 = vand.u32 4294901760, %v25474_v26 }
0x1747   :  { %21156 = vmatprep.subr.bf16.mxu0 %v25356_v60 }
0x174a   :  { %21158 = vmatpush3.bf16.msra.mxu0 %v22369_v38 }
0x174b   :  { %21159 = vmatprep.subr.bf16.mxu0 %v25356_v60 }
0x174e   :  { %21161 = vmatpush3.bf16.msra.mxu0 %v22371_v17  ;;  %v24740_v17 = vsub.f32 %v25474_v26, %v25475_v48 }
0x174f   :  { %21162 = vmatprep.subr.bf16.mxu0 %v25356_v60 }
0x1750   :  { %v25338_v42 = vand.u32 4294901760, %v24740_v17 }
0x1752   :  { %21164 = vmatpush3.bf16.msra.mxu0 %v25469_v11  ;;  %v11878_v32 = vsub.f32 %v24740_v17, %v25338_v42  ;;  %v25485_v11 = vand.u32 4294901760, %v25484_v0  ;;  %v21317_v42 = vpack.c.bf16 %v11842_v13, %v11835_v39 }
0x1753   :  { %21165 = vmatprep.subr.bf16.mxu0 %v25356_v60 }
0x1754   :  { %v11879_v2 = vand.u32 4294901760, %v11878_v32 }
0x1755   :  { %18488 = vmatmul.mubr.f32.vlgmr.msra.gmra.mrb[32].mxu0 %v24579_v29 }
0x1756   :  { %21167 = vmatpush3.bf16.msra.mxu0 %v22000_v19  ;;  %18522 = vmatprep.mubr.msk.f32.mxu0 %vm21880_vm1, %v25379_v28  ;;  %v25470_v19 = vld [vmem:[#allocation24_spill] sm:$0xff]  ;;  %v25476_v28 = vld [vmem:[#allocation15_spill] sm:$0xff] }
0x1757   :  { %21168 = vmatprep.subr.bf16.mxu0 %v25356_v60  ;;  %v25477_v20 = vand.u32 4294901760, %v25476_v28 }
0x1759   :  { %v24745_v21 = vsub.f32 %v25476_v28, %v25477_v20  ;;  %v25486_v28 = vld [vmem:[#allocation35_spill] sm:$0xff] }
0x175a   :  { %21170 = vmatpush3.bf16.msra.mxu0 %v22061_v4  ;;  %v25471_v4 = vand.u32 4294901760, %v25470_v19  ;;  %v25487_v20 = vand.u32 4294901760, %v25486_v28 }
0x175b   :  { %21171 = vmatprep.subr.bf16.mxu0 %v25356_v60  ;;  %v25337_v18 = vand.u32 4294901760, %v24745_v21  ;;  %v25527_v13 = vand.u32 4294901760, %v24745_v21 }
0x175d   :  { %v11885_v63 = vsub.f32 %v24745_v21, %v25337_v18  ;;  %v25520_v18 = vld [vmem:[#allocation47_spill] sm:$0xff] }
0x175e   :  { %21173 = vmatpush3.bf16.msra.mxu0 %v22087_v37  ;;  %v24722_v37 = vsub.f32 %v25470_v19, %v25471_v4  ;;  %v24778_v19 = vsub.f32 %v25484_v0, %v25485_v11  ;;  %v11899_v4 = vsub.f32 %v24763_v52, %v25335_v46  ;;  %v25492_v0 = vld [vmem:[#allocation41_spill] sm:$0xff]  ;;  %v25518_v46 = vld [vmem:[#allocation44_spill] sm:$0xff] }
0x175f   :  { %21174 = vmatprep.subr.bf16.mxu0 %v25356_v60  ;;  %v11886_v43 = vand.u32 4294901760, %v11885_v63  ;;  %v25493_v11 = vand.u32 4294901760, %v25492_v0 }
0x1761   :  { %v21233_v10 = vpack.c.bf16 %v11886_v43, %v11879_v2 }
0x1762   :  { %21176 = vmatpush3.bf16.msra.mxu0 %v22146_v61  ;;  %v25472_v61 = vld [vmem:[#allocation25_spill] sm:$0xff] }
0x1763   :  { %21177 = vmatprep.subr.bf16.mxu0 %v25356_v60 }
0x1766   :  { %21179 = vmatpush3.bf16.msra.mxu0 %v22175_v44  ;;  %v25473_v44 = vand.u32 4294901760, %v25472_v61 }
0x1767   :  { %21180 = vmatprep.subr.bf16.mxu0 %v25356_v60 }
0x1768   :  { %v24727_v38 = vsub.f32 %v25472_v61, %v25473_v44  ;;  %v11893_v61 = vand.u32 4294901760, %v11892_v47  ;;  %v25333_v44 = vand.u32 4294901760, %v24773_v50  ;;  %v25490_v47 = vld [vmem:[#allocation40_spill] sm:$0xff] }
0x1769   :  { %v25491_v33 = vand.u32 4294901760, %v25490_v47 }
0x176a   :  { %21182 = vmatpush3.bf16.msra.mxu0 %v22216_v24  ;;  %v11863_v24 = vand.u32 4294901760, %v24722_v37  ;;  %v11906_v26 = vsub.f32 %v24773_v50, %v25333_v44  ;;  %v25516_v44 = vld [vmem:[#allocation28_spill] sm:$0xff] }
0x176b   :  { %21183 = vmatprep.subr.bf16.mxu0 %v25356_v60  ;;  %v24812_v31 = vsub.f32 %v25490_v47, %v25491_v33  ;;  %v21273_v47 = vpack.c.bf16 %v24778_v19, %v24773_v50 }
0x176c   :  { %v11907_v55 = vand.u32 4294901760, %v11906_v26 }
0x176d   :  { %v25326_v26 = vand.u32 4294901760, %v24812_v31 }
0x176e   :  { %21185 = vmatpush3.bf16.msra.mxu0 %v22260_v62  ;;  %v11870_v62 = vand.u32 4294901760, %v24727_v38 }
0x176f   :  { %21186 = vmatprep.subr.bf16.mxu0 %v25356_v60  ;;  %v11864_v60 = vsub.f32 %v24722_v37, %v11863_v24 }
0x1770   :  { %v11871_v12 = vsub.f32 %v24727_v38, %v11870_v62 }
0x1771   :  { %v11865_v5 = vand.u32 4294901760, %v11864_v60  ;;  %v25332_v60 = vand.u32 4294901760, %v24778_v19 }
0x1772   :  { %21188 = vmatpush3.bf16.msra.mxu0 %v25398_v27  ;;  %v11872_v6 = vand.u32 4294901760, %v11871_v12  ;;  %v11900_v12 = vand.u32 4294901760, %v11899_v4  ;;  %v24817_v4 = vsub.f32 %v25492_v0, %v25493_v11 }
0x1773   :  { %v11913_v48 = vsub.f32 %v24778_v19, %v25332_v60  ;;  %v25515_v60 = vld [vmem:[#allocation39_spill] sm:$0xff] }
0x1774   :  { %v21229_v27 = vpack.c.bf16 %v11872_v6, %v11865_v5  ;;  %v24794_v5 = vsub.f32 %v25486_v28, %v25487_v20  ;;  %v25488_v6 = vld [vmem:[#allocation36_spill] sm:$0xff]  ;;  %v21237_v63 = vpack.c.bf16 %v11900_v12, %v11893_v61  ;;  %v11934_v20 = vsub.f32 %v24812_v31, %v25326_v26  ;;  %v25499_v26 = vld [vmem:[#allocation46_spill] sm:$0xff] }
0x1775   :  { %18523 = vmatmul.mubr.f32.vlgmr.msra.gmra.mrb[32].mxu0 %v24579_v29  ;;  %v11914_v59 = vand.u32 4294901760, %v11913_v48  ;;  %v25325_v48 = vand.u32 4294901760, %v24817_v4  ;;  %v21281_v0 = vpack.c.bf16 %v24817_v4, %v24812_v31 }
0x1776   :  { %21230 = vmatprep.subr.bf16.mxu1 %v21229_v27  ;;  %v25329_v15 = vand.u32 4294901760, %v24794_v5 }
0x1777   :  { %21232 = vmatpush3.bf16.msra.mxu1 %v21229_v27  ;;  %v25489_v27 = vand.u32 4294901760, %v25488_v6  ;;  %v21241_v2 = vpack.c.bf16 %v11914_v59, %v11907_v55  ;;  %v21253_v59 = vpack.c.bf16 %v24616_v30, %v24611_v8  ;;  %v21325_v30 = vpack.c.bf16 %v11870_v62, %v11863_v24 }
0x1778   :  { %21234 = vmatprep.subr.bf16.mxu1 %v21233_v10  ;;  %v11920_v43 = vsub.f32 %v24794_v5, %v25329_v15  ;;  %v25510_v15 = vld [vmem:[#allocation48_spill] sm:$0xff]  ;;  %v25532_v62 = vand.u32 4294901760, %v24531_v57 }
0x1779   :  { %v24799_v32 = vsub.f32 %v25488_v6, %v25489_v27  ;;  %v11941_v6 = vsub.f32 %v24817_v4, %v25325_v48  ;;  %v11935_v27 = vand.u32 4294901760, %v11934_v20  ;;  %v25495_v48 = vld [vmem:[#allocation19_spill] sm:$0xff]  ;;  %v25524_v39 = vand.u32 4294901760, %v25510_v15 }
0x177a   :  { %v11921_v61 = vand.u32 4294901760, %v11920_v43  ;;  %v21265_v43 = vpack.c.bf16 %v24745_v21, %v24740_v17 }
0x177b   :  { %21236 = vmatpush3.bf16.msra.mxu1 %v21233_v10  ;;  %v25328_v34 = vand.u32 4294901760, %v24799_v32  ;;  %v21277_v33 = vpack.c.bf16 %v24799_v32, %v24794_v5 }
0x177c   :  { %21238 = vmatprep.subr.bf16.mxu1 %v21237_v63 }
0x177d   :  { %v11927_v10 = vsub.f32 %v24799_v32, %v25328_v34  ;;  %v25508_v34 = vld [vmem:[#allocation43_spill] sm:$0xff] }
0x177e   :  { %v25523_v8 = vand.u32 4294901760, %v25508_v34 }
0x177f   :  { %21240 = vmatpush3.bf16.msra.mxu1 %v21237_v63  ;;  %v11928_v12 = vand.u32 4294901760, %v11927_v10  ;;  %v11942_v63 = vand.u32 4294901760, %v11941_v6  ;;  %v21269_v10 = vpack.c.bf16 %v24763_v52, %v24758_v9 }
0x1780   :  { %21242 = vmatprep.subr.bf16.mxu1 %v21241_v2 }
0x1781   :  { %v21245_v28 = vpack.c.bf16 %v11928_v12, %v11921_v61  ;;  %v21249_v55 = vpack.c.bf16 %v11942_v63, %v11935_v27  ;;  %v25494_v61 = vld [vmem:[#allocation9_spill] sm:$0xff] }
0x1783   :  { %21244 = vmatpush3.bf16.msra.mxu1 %v21241_v2  ;;  %v21261_v2 = vpack.c.bf16 %v24727_v38, %v24722_v37  ;;  %v25529_v37 = vand.u32 4294901760, %v24515_v35  ;;  %v25530_v38 = vand.u32 4294901760, %v24758_v9  ;;  %v25537_v9 = vand.u32 4294901760, %v24556_v49 }
0x1784   :  { %21246 = vmatprep.subr.bf16.mxu1 %v21245_v28 }
0x1787   :  { %21248 = vmatpush3.bf16.msra.mxu1 %v21245_v28 }
0x1788   :  { %21250 = vmatprep.subr.bf16.mxu1 %v21249_v55 }
0x178b   :  { %21252 = vmatpush3.bf16.msra.mxu1 %v21249_v55 }
0x178c   :  { %21254 = vmatprep.subr.bf16.mxu1 %v21253_v59 }
0x1848   :  { %v11546_v11 = vpop.f32.mrb[32].mxu0 }
0x1849   :  { %v11550_v12 = vadd.f32 %v25494_v61, %v11546_v11  ;;  %v18524_v28 = vpop.f32.mrb[33].mxu0  ;;  %v21257_v11 = vpack.c.bf16 %v24626_v40, %v24621_v45  ;;  %v25496_v61 = vld [vmem:[#allocation37_spill] sm:$0xff]  ;;  %v25525_v45 = vand.u32 4294901760, %v25511_v41  ;;  %v25526_v40 = vand.u32 4294901760, %v24740_v17 }
0x184a   :  { %v25497_v28 = vld [vmem:[#allocation38_spill] sm:$0xff]  ;;  %v25533_v17 = vand.u32 4294901760, %v24540_v22 }
0x184b   :  { %11551 = vst [vmem:[%s25151_s8 + $0x78] sm:$0xff] %v11550_v12  ;;  %v24845_v20 = vand.u32 4294901760, %v11550_v12 }
0x184d   :  { %v24848_v6 = vsub.f32 %v11550_v12, %v24845_v20  ;;  %v25498_v12 = vld [vmem:[#allocation45_spill] sm:$0xff] }
0x184f   :  { %v25327_v27 = vand.u32 4294901760, %v24848_v6 }
0x1851   :  { %v11825_v63 = vsub.f32 %v24848_v6, %v25327_v27  ;;  %v25500_v27 = vld [vmem:[#allocation49_spill] sm:$0xff] }
0x1853   :  { %v11826_v55 = vand.u32 4294901760, %v11825_v63  ;;  %v25501_v63 = vld [vmem:[#allocation51_spill] sm:$0xff] }
0x1855   :  { %18579 = vmatmul.mubr.f32.gmra.mrb[46].mxu1 %v11826_v55  ;;  %v25503_v55 = vld [vmem:[#allocation13_spill] sm:$0xff] }
0x1856   :  { %18613 = vmatprep.mubr.f32.mxu1 %v25495_v48 }
0x1859   :  { %18614 = vmatmul.mubr.f32.vlgmr.msra.gmra.mrb[32].mxu1 %v25496_v61 }
0x185a   :  { %18616 = vmatprep.mubr.f32.mxu1 %v25497_v28  ;;  %21256 = vmatpush3.bf16.msra.mxu1 %v21253_v59  ;;  %v25502_v59 = vld [vmem:[#allocation11_spill] sm:$0xff] }
0x185b   :  { %21258 = vmatprep.subr.bf16.mxu1 %v21257_v11 }
0x185d   :  { %18617 = vmatmul.mubr.f32.gmra.mrb[34].mxu1 %v25498_v12 }
0x185e   :  { %18619 = vmatprep.mubr.f32.mxu1 %v25499_v26  ;;  %21260 = vmatpush3.bf16.msra.mxu1 %v21257_v11  ;;  %v25506_v11 = vld [vmem:[#allocation22_spill] sm:$0xff] }
0x185f   :  { %21262 = vmatprep.subr.bf16.mxu1 %v21261_v2 }
0x1861   :  { %18620 = vmatmul.mubr.f32.gmra.mrb[36].mxu1 %v25500_v27 }
0x1862   :  { %18622 = vmatprep.mubr.f32.mxu1 %v25501_v63  ;;  %21264 = vmatpush3.bf16.msra.mxu1 %v21261_v2  ;;  %v25504_v2 = vld [vmem:[#allocation16_spill] sm:$0xff] }
0x1863   :  { %21266 = vmatprep.subr.bf16.mxu1 %v21265_v43 }
0x1865   :  { %18623 = vmatmul.mubr.f32.gmra.mrb[38].mxu1 %v24511_v36 }
0x1866   :  { %18625 = vmatprep.mubr.f32.mxu1 %v24517_v14  ;;  %21268 = vmatpush3.bf16.msra.mxu1 %v21265_v43  ;;  %v25505_v43 = vld [vmem:[#allocation21_spill] sm:$0xff] }
0x1867   :  { %21270 = vmatprep.subr.bf16.mxu1 %v21269_v10 }
0x1869   :  { %18626 = vmatmul.mubr.f32.gmra.mrb[40].mxu1 %v24533_v16 }
0x186a   :  { %18628 = vmatprep.mubr.f32.mxu1 %v24542_v53  ;;  %21272 = vmatpush3.bf16.msra.mxu1 %v21269_v10  ;;  %v25507_v10 = vld [vmem:[#allocation42_spill] sm:$0xff] }
0x186b   :  { %21274 = vmatprep.subr.bf16.mxu1 %v21273_v47 }
0x186d   :  { %18629 = vmatmul.mubr.f32.gmra.mrb[42].mxu1 %v25502_v59 }
0x186e   :  { %18631 = vmatprep.mubr.f32.mxu1 %v25503_v55  ;;  %21276 = vmatpush3.bf16.msra.mxu1 %v21273_v47  ;;  %v25509_v47 = vld [vmem:[#allocation27_spill] sm:$0xff] }
0x186f   :  { %21278 = vmatprep.subr.bf16.mxu1 %v21277_v33 }
0x1871   :  { %18632 = vmatmul.mubr.f32.gmra.mrb[44].mxu1 %v25504_v2 }
0x1872   :  { %18634 = vmatprep.mubr.f32.mxu1 %v24579_v29  ;;  %21280 = vmatpush3.bf16.msra.mxu1 %v21277_v33  ;;  %v25512_v33 = vld [vmem:[#allocation17_spill] sm:$0xff] }
0x1873   :  { %21282 = vmatprep.subr.bf16.mxu1 %v21281_v0 }
0x1875   :  { %18635 = vmatmul.mubr.f32.gmra.mrb[46].mxu1 %v24845_v20 }
0x1876   :  { %21284 = vmatpush3.bf16.msra.mxu1 %v21281_v0  ;;  %18669 = vmatprep.mubr.f32.mxu1 %v25505_v43  ;;  %v25513_v0 = vld [vmem:[#allocation26_spill] sm:$0xff] }
0x1877   :  { %21286 = vmatprep.subr.bf16.mxu1 %v25506_v11 }
0x1879   :  { %18670 = vmatmul.mubr.f32.vlgmr.msra.gmra.mrb[32].mxu1 %v25507_v10 }
0x187a   :  { %18672 = vmatprep.mubr.f32.mxu1 %v25508_v34  ;;  %21288 = vmatpush3.bf16.msra.mxu1 %v25506_v11 }
0x187b   :  { %21290 = vmatprep.subr.bf16.mxu1 %v25509_v47 }
0x187d   :  { %18673 = vmatmul.mubr.f32.gmra.mrb[34].mxu1 %v25510_v15  ;;  %v25541_v15 = vld [vmem:[#allocation14_spill] sm:$0xff] }
0x187e   :  { %18675 = vmatprep.mubr.f32.mxu1 %v25511_v41  ;;  %21292 = vmatpush3.bf16.msra.mxu1 %v25509_v47  ;;  %v25531_v41 = vand.u32 4294901760, %v24763_v52 }
0x187f   :  { %21294 = vmatprep.subr.bf16.mxu1 %v25512_v33 }
0x1880   :  { %v21333_v24 = vpack.c.bf16 %v25531_v41, %v25530_v38 }
0x1881   :  { %18676 = vmatmul.mubr.f32.gmra.mrb[36].mxu1 %v24509_v54 }
0x1882   :  { %18678 = vmatprep.mubr.f32.mxu1 %v24515_v35  ;;  %21296 = vmatpush3.bf16.msra.mxu1 %v25512_v33  ;;  %v25535_v35 = vand.u32 4294901760, %v24778_v19 }
0x1883   :  { %21298 = vmatprep.subr.bf16.mxu1 %v25513_v0 }
0x1885   :  { %18679 = vmatmul.mubr.f32.gmra.mrb[38].mxu1 %v24531_v57  ;;  %v25538_v57 = vand.u32 4294901760, %v24794_v5  ;;  %v25545_v5 = vand.u32 4294901760, %v24848_v6 }
0x1886   :  { %18681 = vmatprep.mubr.f32.mxu1 %v24540_v22  ;;  %21300 = vmatpush3.bf16.msra.mxu1 %v25513_v0  ;;  %v25539_v22 = vand.u32 4294901760, %v24799_v32 }
0x1887   :  { %21302 = vmatprep.subr.bf16.mxu1 %v25514_v58 }
0x1888   :  { %v21341_v52 = vpack.c.bf16 %v25539_v22, %v25538_v57 }
0x1889   :  { %18682 = vmatmul.mubr.f32.gmra.mrb[40].mxu1 %v24549_v23 }
0x188a   :  { %18684 = vmatprep.mubr.f32.mxu1 %v24556_v49  ;;  %21304 = vmatpush3.bf16.msra.mxu1 %v25514_v58  ;;  %v25544_v49 = vld [vmem:[#allocation18_spill] sm:$0xff] }
0x188b   :  { %21306 = vmatprep.subr.bf16.mxu1 %v25515_v60 }
0x188d   :  { %18685 = vmatmul.mubr.f32.gmra.mrb[42].mxu1 %v25516_v44  ;;  %v25540_v44 = vld [vmem:[#allocation12_spill] sm:$0xff] }
0x188e   :  { %18687 = vmatprep.mubr.f32.mxu1 %v25517_v56  ;;  %21308 = vmatpush3.bf16.msra.mxu1 %v25515_v60  ;;  %v25521_v56 = vand.u32 4294901760, %v25505_v43 }
0x188f   :  { %21310 = vmatprep.subr.bf16.mxu1 %v25518_v46 }
0x1891   :  { %18688 = vmatmul.mubr.f32.gmra.mrb[44].mxu1 %v25519_v51  ;;  %v25522_v51 = vand.u32 4294901760, %v25507_v10 }
0x1892   :  { %18690 = vmatprep.mubr.f32.mxu1 %v24582_v1  ;;  %21312 = vmatpush3.bf16.msra.mxu1 %v25518_v46  ;;  %v21321_v1 = vpack.c.bf16 %v11856_v3, %v11849_v7  ;;  %v21329_v7 = vpack.c.bf16 %v25527_v13, %v25526_v40  ;;  %v25528_v3 = vand.u32 4294901760, %v24509_v54  ;;  %v25534_v54 = vand.u32 4294901760, %v24773_v50 }
0x1893   :  { %21314 = vmatprep.subr.bf16.mxu1 %v25520_v18  ;;  %v25542_v50 = vand.u32 4294901760, %v24812_v31 }
0x1894   :  { %v21337_v21 = vpack.c.bf16 %v25535_v35, %v25534_v54 }
0x1895   :  { %18691 = vmatmul.mubr.f32.gmra.mrb[46].mxu1 %v24848_v6 }
0x1896   :  { %21316 = vmatpush3.bf16.msra.mxu1 %v25520_v18  ;;  %18725 = vmatprep.mubr.f32.mxu1 %v25521_v56 }
0x1897   :  { %21318 = vmatprep.subr.bf16.mxu1 %v21317_v42 }
0x1899   :  { %18726 = vmatmul.mubr.f32.vlgmr.msra.gmra.mrb[32].mxu1 %v25522_v51 }
0x189a   :  { %18728 = vmatprep.mubr.f32.mxu1 %v25523_v8  ;;  %21320 = vmatpush3.bf16.msra.mxu1 %v21317_v42  ;;  %v25536_v42 = vand.u32 4294901760, %v24549_v23  ;;  %v25543_v23 = vand.u32 4294901760, %v24817_v4 }
0x189b   :  { %21322 = vmatprep.subr.bf16.mxu1 %v21321_v1 }
0x189c   :  { %v21345_v19 = vpack.c.bf16 %v25543_v23, %v25542_v50 }
0x189d   :  { %18729 = vmatmul.mubr.f32.gmra.mrb[34].mxu1 %v25524_v39 }
0x189e   :  { %18731 = vmatprep.mubr.f32.mxu1 %v25525_v45  ;;  %21324 = vmatpush3.bf16.msra.mxu1 %v21321_v1 }
0x189f   :  { %21326 = vmatprep.subr.bf16.mxu1 %v21325_v30 }
0x18a1   :  { %18732 = vmatmul.mubr.f32.gmra.mrb[36].mxu1 %v25528_v3 }
0x18a2   :  { %18734 = vmatprep.mubr.f32.mxu1 %v25529_v37  ;;  %21328 = vmatpush3.bf16.msra.mxu1 %v21325_v30 }
0x18a3   :  { %21330 = vmatprep.subr.bf16.mxu1 %v21329_v7 }
0x18a5   :  { %18735 = vmatmul.mubr.f32.gmra.mrb[38].mxu1 %v25532_v62 }
0x18a6   :  { %18737 = vmatprep.mubr.f32.mxu1 %v25533_v17  ;;  %21332 = vmatpush3.bf16.msra.mxu1 %v21329_v7 }
0x18a7   :  { %21334 = vmatprep.subr.bf16.mxu1 %v21333_v24 }
0x18a9   :  { %18738 = vmatmul.mubr.f32.gmra.mrb[40].mxu1 %v25536_v42 }
0x18aa   :  { %18740 = vmatprep.mubr.f32.mxu1 %v25537_v9  ;;  %21336 = vmatpush3.bf16.msra.mxu1 %v21333_v24 }
0x18ab   :  { %21338 = vmatprep.subr.bf16.mxu1 %v21337_v21 }
0x18ad   :  { %18741 = vmatmul.mubr.f32.gmra.mrb[42].mxu1 %v25540_v44 }
0x18ae   :  { %18743 = vmatprep.mubr.f32.mxu1 %v25541_v15  ;;  %21340 = vmatpush3.bf16.msra.mxu1 %v21337_v21 }
0x18af   :  { %21342 = vmatprep.subr.bf16.mxu1 %v21341_v52 }
0x18b1   :  { %18744 = vmatmul.mubr.f32.gmra.mrb[44].mxu1 %v25544_v49 }
0x18b2   :  { %18746 = vmatprep.mubr.f32.mxu1 %v24585_v25  ;;  %21344 = vmatpush3.bf16.msra.mxu1 %v21341_v52 }
0x18b3   :  { %21346 = vmatprep.subr.bf16.mxu1 %v21345_v19 }
0x18b5   :  { %18747 = vmatmul.mubr.f32.gmra.mrb[46].mxu1 %v25545_v5 }
0x18b6   :  { %21348 = vmatpush3.bf16.msra.mxu1 %v21345_v19  ;;  %18781 = vmatprep.mubr.f32.mxu1 %v25495_v48 }
0x18b7   :  { %21350 = vmatprep.subr.bf16.mxu1 %v25506_v11 }
0x18b9   :  { %18782 = vmatmul.mubr.f32.vlgmr.msra.gmra.mrb[32].mxu1 %v25496_v61 }
0x18ba   :  { %18784 = vmatprep.mubr.f32.mxu1 %v25497_v28  ;;  %21352 = vmatpush3.bf16.msra.mxu1 %v25506_v11 }
0x18bb   :  { %21354 = vmatprep.subr.bf16.mxu1 %v25509_v47 }
0x18bd   :  { %18785 = vmatmul.mubr.f32.gmra.mrb[34].mxu1 %v25498_v12 }
0x18be   :  { %18787 = vmatprep.mubr.f32.mxu1 %v25499_v26  ;;  %21356 = vmatpush3.bf16.msra.mxu1 %v25509_v47 }
0x18bf   :  { %21358 = vmatprep.subr.bf16.mxu1 %v25512_v33 }
0x18c1   :  { %18788 = vmatmul.mubr.f32.gmra.mrb[36].mxu1 %v25500_v27 }
0x18c2   :  { %18790 = vmatprep.mubr.f32.mxu1 %v25501_v63  ;;  %21360 = vmatpush3.bf16.msra.mxu1 %v25512_v33 }
0x18c3   :  { %21362 = vmatprep.subr.bf16.mxu1 %v25513_v0 }
0x18c5   :  { %18791 = vmatmul.mubr.f32.gmra.mrb[38].mxu1 %v24511_v36 }
0x18c6   :  { %18793 = vmatprep.mubr.f32.mxu1 %v24517_v14  ;;  %21364 = vmatpush3.bf16.msra.mxu1 %v25513_v0 }
0x18c7   :  { %21366 = vmatprep.subr.bf16.mxu1 %v25514_v58 }
0x18c9   :  { %18794 = vmatmul.mubr.f32.gmra.mrb[40].mxu1 %v24533_v16 }
0x18ca   :  { %18796 = vmatprep.mubr.f32.mxu1 %v24542_v53  ;;  %21368 = vmatpush3.bf16.msra.mxu1 %v25514_v58 }
0x18cb   :  { %21370 = vmatprep.subr.bf16.mxu1 %v25515_v60 }
0x18cd   :  { %18797 = vmatmul.mubr.f32.gmra.mrb[42].mxu1 %v25502_v59 }
0x18ce   :  { %18799 = vmatprep.mubr.f32.mxu1 %v25503_v55  ;;  %21372 = vmatpush3.bf16.msra.mxu1 %v25515_v60 }
0x18cf   :  { %21374 = vmatprep.subr.bf16.mxu1 %v25518_v46 }
0x18d1   :  { %18800 = vmatmul.mubr.f32.gmra.mrb[44].mxu1 %v25504_v2 }
0x18d2   :  { %18802 = vmatprep.mubr.f32.mxu1 %v24579_v29  ;;  %21376 = vmatpush3.bf16.msra.mxu1 %v25518_v46 }
0x18d3   :  { %21378 = vmatprep.subr.bf16.mxu1 %v25520_v18 }
0x18d5   :  { %18803 = vmatmul.mubr.f32.gmra.mrb[46].mxu1 %v24845_v20 }
0x18d6   :  { %21380 = vmatpush3.bf16.msra.mxu1 %v25520_v18  ;;  %18837 = vmatprep.mubr.f32.mxu1 %v25495_v48 }
0x18d9   :  { %18838 = vmatmul.mubr.f32.vlgmr.msra.gmra.mrb[32].mxu1 %v25496_v61 }
0x18da   :  { %18840 = vmatprep.mubr.f32.mxu1 %v25497_v28 }
0x18dd   :  { %18841 = vmatmul.mubr.f32.gmra.mrb[34].mxu1 %v25498_v12 }
0x18de   :  { %18843 = vmatprep.mubr.f32.mxu1 %v25499_v26 }
0x18e1   :  { %18844 = vmatmul.mubr.f32.gmra.mrb[36].mxu1 %v25500_v27 }
0x18e2   :  { %18846 = vmatprep.mubr.f32.mxu1 %v25501_v63 }
0x18e5   :  { %18847 = vmatmul.mubr.f32.gmra.mrb[38].mxu1 %v24511_v36  ;;  %v13064_v36 = vld [vmem:[%s25149_s6] ss:$0 sm:$0xff] }
0x18e6   :  { %18849 = vmatprep.mubr.f32.mxu1 %v24517_v14 }
0x18e9   :  { %18850 = vmatmul.mubr.f32.gmra.mrb[40].mxu1 %v24533_v16 }
0x18ea   :  { %18852 = vmatprep.mubr.f32.mxu1 %v24542_v53 }
0x18ed   :  { %18853 = vmatmul.mubr.f32.gmra.mrb[42].mxu1 %v25502_v59 }
0x18ee   :  { %18855 = vmatprep.mubr.f32.mxu1 %v25503_v55 }
0x18f1   :  { %18856 = vmatmul.mubr.f32.gmra.mrb[44].mxu1 %v25504_v2 }
0x18f2   :  { %18858 = vmatprep.mubr.f32.mxu1 %v24579_v29 }
0x18f5   :  { %18859 = vmatmul.mubr.f32.gmra.mrb[46].mxu1 %v24845_v20 }
0x19ac   :  { %v18839_v58 = vpop.f32.mrb[32].mxu1 }
0x19ad   :  { %v21414_v14 = vadd.f32 %v18839_v58, %v13064_v36  ;;  %v12783_v25 = vpop.f32.mrb[33].mxu1 }
0x19ae   :  { %v21415_v53 = vadd.f32 %v13064_v36, %v12783_v25 }
0x19af   :  { %12879 = vmax.xlane.f32.xlu0 %v21414_v14 }
0x19b0   :  { %v18842_v16 = vpop.f32.mrb[34].mxu1 }
0x19b1   :  { %v21416_v18 = vadd.f32 %v18842_v16, %v13064_v36  ;;  %v12795_v46 = vpop.f32.mrb[35].mxu1 }
0x19b2   :  { %v21417_v32 = vadd.f32 %v13064_v36, %v12795_v46 }
0x19b3   :  { %12883 = vmax.xlane.f32.xlu1 %v21416_v18  ;;  %12877 = vmax.xlane.f32.xlu0 %v21415_v53 }
0x19b4   :  { %v18845_v60 = vpop.f32.mrb[36].mxu1 }
0x19b5   :  { %v12807_v34 = vpop.f32.mrb[37].mxu1  ;;  %v21418_v4 = vadd.f32 %v18845_v60, %v13064_v36 }
0x19b6   :  { %v21419_v29 = vadd.f32 %v13064_v36, %v12807_v34 }
0x19b7   :  { %12881 = vmax.xlane.f32.xlu1 %v21417_v32 }
0x19b8   :  { %v18848_v31 = vpop.f32.mrb[38].mxu1  ;;  %12885 = vmax.xlane.f32.xlu0 %v21419_v29 }
0x19b9   :  { %v12819_v26 = vpop.f32.mrb[39].mxu1  ;;  %v21420_v6 = vadd.f32 %v18848_v31, %v13064_v36 }
0x19ba   :  { %v21421_v48 = vadd.f32 %v13064_v36, %v12819_v26 }
0x19bb   :  { %12887 = vmax.xlane.f32.xlu1 %v21418_v4 }
0x19bc   :  { %v18851_v20 = vpop.f32.mrb[40].mxu1  ;;  %12889 = vmax.xlane.f32.xlu0 %v21421_v48 }
0x19bd   :  { %v12831_v27 = vpop.f32.mrb[41].mxu1  ;;  %v21422_v12 = vadd.f32 %v18851_v20, %v13064_v36 }
0x19be   :  { %v21423_v61 = vadd.f32 %v13064_v36, %v12831_v27 }
0x19bf   :  { %12891 = vmax.xlane.f32.xlu1 %v21420_v6 }
0x19c0   :  { %v18854_v28 = vpop.f32.mrb[42].mxu1  ;;  %12893 = vmax.xlane.f32.xlu0 %v21423_v61 }
0x19c1   :  { %v12843_v63 = vpop.f32.mrb[43].mxu1  ;;  %v21424_v2 = vadd.f32 %v18854_v28, %v13064_v36 }
0x19c2   :  { %v21425_v59 = vadd.f32 %v13064_v36, %v12843_v63 }
0x19c3   :  { %12895 = vmax.xlane.f32.xlu1 %v21422_v12 }
0x19c4   :  { %v18857_v55 = vpop.f32.mrb[44].mxu1  ;;  %12897 = vmax.xlane.f32.xlu0 %v21425_v59 }
0x19c5   :  { %v12855_v43 = vpop.f32.mrb[45].mxu1  ;;  %v25018_v47 = vadd.f32 %v18857_v55, %v13064_v36 }
0x19c6   :  { %v25015_v11 = vadd.f32 %v13064_v36, %v12855_v43 }
0x19c7   :  { %12899 = vmax.xlane.f32.xlu1 %v21424_v2 }
0x19c8   :  { %v18860_v10 = vpop.f32.mrb[46].mxu1  ;;  %12901 = vmax.xlane.f32.xlu0 %v25015_v11 }
0x19c9   :  { %v12867_v33 = vpop.f32.mrb[47].mxu1  ;;  %v25024_v56 = vadd.f32 %v18860_v10, %v13064_v36 }
0x19ca   :  { %v25020_v0 = vadd.f32 %v13064_v36, %v12867_v33 }
0x19cb   :  { %12903 = vmax.xlane.f32.xlu1 %v25018_v47 }
0x19cc   :  { %12905 = vmax.xlane.f32.xlu0 %v25020_v0 }
0x19cf   :  { %12907 = vmax.xlane.f32.xlu1 %v25024_v56 }
0x1a3c   :  { %v12880_v1 = vpop.xlane.xlu0 %12879 }
0x1a3d   :  { %v25027_v51 = vsub.f32 %v21414_v14, %v12880_v1 }
0x1a3f   :  { %v12927_v8 = vmul.f32 1.442695, %v25027_v51 }
0x1a40   :  { %v12884_v30 = vpop.xlane.xlu1 %12883  ;;  %v12878_v39 = vpop.xlane.xlu0 %12877 }
0x1a41   :  { %21740 = vpow2.f32 %v12927_v8  ;;  %v25030_v45 = vsub.f32 %v21416_v18, %v12884_v30  ;;  %v25032_v40 = vsub.f32 %v21415_v53, %v12878_v39 }
0x1a43   :  { %v12931_v13 = vmul.f32 1.442695, %v25030_v45  ;;  %v12925_v7 = vmul.f32 1.442695, %v25032_v40 }
0x1a44   :  { %v12882_v3 = vpop.xlane.xlu1 %12881 }
0x1a45   :  { %21742 = vpow2.f32 %v12931_v13  ;;  %v25036_v37 = vsub.f32 %v21417_v32, %v12882_v3  ;;  %v12886_v38 = vpop.xlane.xlu0 %12885 }
0x1a46   :  { %21744 = vpow2.f32 %v12925_v7  ;;  %v25038_v41 = vsub.f32 %v21419_v29, %v12886_v38 }
0x1a47   :  { %v12929_v24 = vmul.f32 1.442695, %v25036_v37 }
0x1a48   :  { %v12888_v62 = vpop.xlane.xlu1 %12887  ;;  %v12933_v35 = vmul.f32 1.442695, %v25038_v41 }
0x1a49   :  { %21746 = vpow2.f32 %v12929_v24  ;;  %v25041_v17 = vsub.f32 %v21418_v4, %v12888_v62  ;;  %v12890_v54 = vpop.xlane.xlu0 %12889 }
0x1a4a   :  { %v25044_v21 = vsub.f32 %v21421_v48, %v12890_v54 }
0x1a4b   :  { %v21741_v42 = vpop.eup %21740  ;;  %v12935_v9 = vmul.f32 1.442695, %v25041_v17 }
0x1a4c   :  { %12959 = vadd.xlane.f32.xlu1 %v21741_v42  ;;  %v12892_v57 = vpop.xlane.xlu1 %12891  ;;  %v12937_v44 = vmul.f32 1.442695, %v25044_v21 }
0x1a4d   :  { %21748 = vpow2.f32 %v12935_v9  ;;  %v25047_v22 = vsub.f32 %v21420_v6, %v12892_v57  ;;  %v12894_v52 = vpop.xlane.xlu0 %12893 }
0x1a4e   :  { %21750 = vpow2.f32 %v12933_v35  ;;  %v25050_v15 = vsub.f32 %v21423_v61, %v12894_v52 }
0x1a4f   :  { %v21743_v50 = vpop.eup %21742  ;;  %v12939_v23 = vmul.f32 1.442695, %v25047_v22 }
0x1a50   :  { %v21745_v19 = vpop.eup %21744  ;;  %12963 = vadd.xlane.f32.xlu1 %v21743_v50  ;;  %v12896_v49 = vpop.xlane.xlu1 %12895  ;;  %v12941_v58 = vmul.f32 1.442695, %v25050_v15 }
0x1a51   :  { %21752 = vpow2.f32 %v12939_v23  ;;  %v25053_v5 = vsub.f32 %v21422_v12, %v12896_v49  ;;  %12957 = vadd.xlane.f32.xlu0 %v21745_v19  ;;  %v12898_v36 = vpop.xlane.xlu0 %12897 }
0x1a52   :  { %21754 = vpow2.f32 %v12937_v44  ;;  %v25056_v14 = vsub.f32 %v21425_v59, %v12898_v36 }
0x1a53   :  { %v21747_v25 = vpop.eup %21746  ;;  %v12943_v16 = vmul.f32 1.442695, %v25053_v5 }
0x1a54   :  { %v12900_v53 = vpop.xlane.xlu1 %12899  ;;  %v12945_v60 = vmul.f32 1.442695, %v25056_v14 }
0x1a55   :  { %21756 = vpow2.f32 %v12943_v16  ;;  %v25059_v18 = vsub.f32 %v21424_v2, %v12900_v53  ;;  %12961 = vadd.xlane.f32.xlu0 %v21747_v25  ;;  %v12902_v46 = vpop.xlane.xlu0 %12901 }
0x1a56   :  { %21758 = vpow2.f32 %v12941_v58  ;;  %v25063_v32 = vsub.f32 %v25015_v11, %v12902_v46 }
0x1a57   :  { %v21749_v34 = vpop.eup %21748  ;;  %v12947_v29 = vmul.f32 1.442695, %v25059_v18 }
0x1a58   :  { %v21751_v31 = vpop.eup %21750  ;;  %12967 = vadd.xlane.f32.xlu1 %v21749_v34  ;;  %v12904_v4 = vpop.xlane.xlu1 %12903  ;;  %v12949_v20 = vmul.f32 1.442695, %v25063_v32 }
0x1a59   :  { %21760 = vpow2.f32 %v12947_v29  ;;  %v25067_v26 = vsub.f32 %v25018_v47, %v12904_v4  ;;  %12965 = vadd.xlane.f32.xlu0 %v21751_v31  ;;  %v12906_v48 = vpop.xlane.xlu0 %12905 }
0x1a5a   :  { %21762 = vpow2.f32 %v12945_v60  ;;  %v25071_v6 = vsub.f32 %v25020_v0, %v12906_v48 }
0x1a5b   :  { %v21753_v27 = vpop.eup %21752  ;;  %v12951_v61 = vmul.f32 1.442695, %v25067_v26 }
0x1a5c   :  { %v21755_v28 = vpop.eup %21754  ;;  %12971 = vadd.xlane.f32.xlu1 %v21753_v27  ;;  %v12908_v12 = vpop.xlane.xlu1 %12907  ;;  %v12953_v59 = vmul.f32 1.442695, %v25071_v6 }
0x1a5d   :  { %21764 = vpow2.f32 %v12951_v61  ;;  %v25075_v63 = vsub.f32 %v25024_v56, %v12908_v12  ;;  %12969 = vadd.xlane.f32.xlu0 %v21755_v28 }
0x1a5e   :  { %21766 = vpow2.f32 %v12949_v20 }
0x1a5f   :  { %v21757_v55 = vpop.eup %21756  ;;  %v12955_v2 = vmul.f32 1.442695, %v25075_v63 }
0x1a60   :  { %v21759_v43 = vpop.eup %21758  ;;  %12975 = vadd.xlane.f32.xlu1 %v21757_v55 }
0x1a61   :  { %21768 = vpow2.f32 %v12955_v2  ;;  %12973 = vadd.xlane.f32.xlu0 %v21759_v43 }
0x1a62   :  { %21770 = vpow2.f32 %v12953_v59 }
0x1a63   :  { %v21761_v11 = vpop.eup %21760 }
0x1a64   :  { %v21763_v10 = vpop.eup %21762  ;;  %12979 = vadd.xlane.f32.xlu1 %v21761_v11 }
0x1a65   :  { %12977 = vadd.xlane.f32.xlu0 %v21763_v10 }
0x1a67   :  { %v21765_v47 = vpop.eup %21764 }
0x1a68   :  { %v21767_v33 = vpop.eup %21766  ;;  %12983 = vadd.xlane.f32.xlu1 %v21765_v47 }
0x1a69   :  { %12981 = vadd.xlane.f32.xlu0 %v21767_v33 }
0x1a6b   :  { %v21769_v0 = vpop.eup %21768 }
0x1a6c   :  { %v21771_v56 = vpop.eup %21770  ;;  %12987 = vadd.xlane.f32.xlu1 %v21769_v0 }
0x1a6d   :  { %12985 = vadd.xlane.f32.xlu0 %v21771_v56 }
0x1ad9   :  { %v12960_v1 = vpop.xlane.xlu1 %12959 }
0x1ada   :  { %21772 = vlog2.f32 %v12960_v1 }
0x1add   :  { %v12964_v8 = vpop.xlane.xlu1 %12963 }
0x1ade   :  { %21774 = vlog2.f32 %v12964_v8  ;;  %v12958_v30 = vpop.xlane.xlu0 %12957 }
0x1adf   :  { %21776 = vlog2.f32 %v12958_v30 }
0x1ae2   :  { %v12962_v39 = vpop.xlane.xlu0 %12961 }
0x1ae3   :  { %21778 = vlog2.f32 %v12962_v39 }
0x1ae4   :  { %v21773_v13 = vpop.eup %21772 }
0x1ae5   :  { %v12992_v7 = vmul.f32 0.6931472, %v21773_v13  ;;  %v12968_v3 = vpop.xlane.xlu1 %12967 }
0x1ae6   :  { %21780 = vlog2.f32 %v12968_v3  ;;  %v12966_v38 = vpop.xlane.xlu0 %12965 }
0x1ae7   :  { %v13022_v24 = vsub.f32 %v25027_v51, %v12992_v7  ;;  %21782 = vlog2.f32 %v12966_v38 }
0x1ae8   :  { %v21775_v62 = vpop.eup %21774 }
0x1ae9   :  { %v21777_v54 = vpop.eup %21776  ;;  %13038 = vst [vmem:[%s25150_s7 + $0x8] sm:$0xff] %v13022_v24  ;;  %v12996_v35 = vmul.f32 0.6931472, %v21775_v62  ;;  %v12972_v42 = vpop.xlane.xlu1 %12971 }
0x1aea   :  { %v12990_v9 = vmul.f32 0.6931472, %v21777_v54  ;;  %21784 = vlog2.f32 %v12972_v42  ;;  %v12970_v57 = vpop.xlane.xlu0 %12969 }
0x1aeb   :  { %v13024_v52 = vsub.f32 %v25030_v45, %v12996_v35  ;;  %21786 = vlog2.f32 %v12970_v57 }
0x1aec   :  { %v13021_v44 = vsub.f32 %v25032_v40, %v12990_v9 }
0x1aed   :  { %v21779_v50 = vpop.eup %21778  ;;  %13040 = vst [vmem:[%s25150_s7 + $0x18] sm:$0xff] %v13024_v52  ;;  %v12976_v51 = vpop.xlane.xlu1 %12975 }
0x1aee   :  { %13037 = vst [vmem:[%s25150_s7] sm:$0xff] %v13021_v44  ;;  %v12994_v23 = vmul.f32 0.6931472, %v21779_v50  ;;  %21788 = vlog2.f32 %v12976_v51  ;;  %v12974_v19 = vpop.xlane.xlu0 %12973 }
0x1aef   :  { %21790 = vlog2.f32 %v12974_v19 }
0x1af0   :  { %v21781_v49 = vpop.eup %21780  ;;  %v13023_v45 = vsub.f32 %v25036_v37, %v12994_v23 }
0x1af1   :  { %v21783_v36 = vpop.eup %21782  ;;  %v13000_v58 = vmul.f32 0.6931472, %v21781_v49  ;;  %v12980_v40 = vpop.xlane.xlu1 %12979 }
0x1af2   :  { %13039 = vst [vmem:[%s25150_s7 + $0x10] sm:$0xff] %v13023_v45  ;;  %v12998_v25 = vmul.f32 0.6931472, %v21783_v36  ;;  %21792 = vlog2.f32 %v12980_v40  ;;  %v12978_v16 = vpop.xlane.xlu0 %12977 }
0x1af3   :  { %v13026_v53 = vsub.f32 %v25041_v17, %v13000_v58  ;;  %21794 = vlog2.f32 %v12978_v16 }
0x1af4   :  { %v21785_v46 = vpop.eup %21784  ;;  %v13025_v60 = vsub.f32 %v25038_v41, %v12998_v25 }
0x1af5   :  { %v21787_v34 = vpop.eup %21786  ;;  %13042 = vst [vmem:[%s25150_s7 + $0x28] sm:$0xff] %v13026_v53  ;;  %v13004_v37 = vmul.f32 0.6931472, %v21785_v46  ;;  %v12984_v29 = vpop.xlane.xlu1 %12983 }
0x1af6   :  { %13041 = vst [vmem:[%s25150_s7 + $0x20] sm:$0xff] %v13025_v60  ;;  %v13002_v31 = vmul.f32 0.6931472, %v21787_v34  ;;  %21796 = vlog2.f32 %v12984_v29  ;;  %v12982_v4 = vpop.xlane.xlu0 %12981 }
0x1af7   :  { %v13028_v17 = vsub.f32 %v25047_v22, %v13004_v37  ;;  %21798 = vlog2.f32 %v12982_v4 }
0x1af8   :  { %v21789_v48 = vpop.eup %21788  ;;  %v13027_v41 = vsub.f32 %v25044_v21, %v13002_v31 }
0x1af9   :  { %v21791_v20 = vpop.eup %21790  ;;  %13044 = vst [vmem:[%s25150_s7 + $0x38] sm:$0xff] %v13028_v17  ;;  %v13008_v27 = vmul.f32 0.6931472, %v21789_v48  ;;  %v12988_v61 = vpop.xlane.xlu1 %12987 }
0x1afa   :  { %13043 = vst [vmem:[%s25150_s7 + $0x30] sm:$0xff] %v13027_v41  ;;  %v13006_v28 = vmul.f32 0.6931472, %v21791_v20  ;;  %21800 = vlog2.f32 %v12988_v61  ;;  %v12986_v12 = vpop.xlane.xlu0 %12985 }
0x1afb   :  { %v13030_v22 = vsub.f32 %v25053_v5, %v13008_v27  ;;  %21802 = vlog2.f32 %v12986_v12 }
0x1afc   :  { %v21793_v59 = vpop.eup %21792  ;;  %v13029_v21 = vsub.f32 %v25050_v15, %v13006_v28 }
0x1afd   :  { %v21795_v55 = vpop.eup %21794  ;;  %13046 = vst [vmem:[%s25150_s7 + $0x48] sm:$0xff] %v13030_v22  ;;  %v13012_v2 = vmul.f32 0.6931472, %v21793_v59 }
0x1afe   :  { %13045 = vst [vmem:[%s25150_s7 + $0x40] sm:$0xff] %v13029_v21  ;;  %v13010_v43 = vmul.f32 0.6931472, %v21795_v55 }
0x1aff   :  { %v13032_v11 = vsub.f32 %v25059_v18, %v13012_v2 }
0x1b00   :  { %v21797_v10 = vpop.eup %21796  ;;  %v13031_v5 = vsub.f32 %v25056_v14, %v13010_v43 }
0x1b01   :  { %v21799_v47 = vpop.eup %21798  ;;  %13048 = vst [vmem:[%s25150_s7 + $0x58] sm:$0xff] %v13032_v11  ;;  %v13016_v15 = vmul.f32 0.6931472, %v21797_v10 }
0x1b02   :  { %13047 = vst [vmem:[%s25150_s7 + $0x50] sm:$0xff] %v13031_v5  ;;  %v13014_v33 = vmul.f32 0.6931472, %v21799_v47 }
0x1b03   :  { %v13034_v0 = vsub.f32 %v25067_v26, %v13016_v15 }
0x1b04   :  { %v21801_v56 = vpop.eup %21800  ;;  %v13033_v1 = vsub.f32 %v25063_v32, %v13014_v33 }
0x1b05   :  { %v21803_v18 = vpop.eup %21802  ;;  %13050 = vst [vmem:[%s25150_s7 + $0x68] sm:$0xff] %v13034_v0  ;;  %v13020_v14 = vmul.f32 0.6931472, %v21801_v56 }
0x1b06   :  { %13049 = vst [vmem:[%s25150_s7 + $0x60] sm:$0xff] %v13033_v1  ;;  %v13018_v8 = vmul.f32 0.6931472, %v21803_v18 }
0x1b07   :  { %v13036_v30 = vsub.f32 %v25075_v63, %v13020_v14 }
0x1b08   :  { %v13035_v39 = vsub.f32 %v25071_v6, %v13018_v8 }
0x1b09   :  { %13052 = vst [vmem:[%s25150_s7 + $0x78] sm:$0xff] %v13036_v30 }
0x1b0a   :  { %13051 = vst [vmem:[%s25150_s7 + $0x70] sm:$0xff] %v13035_v39 }
0x1b0b   :  { %13061 = vsyncpa [#allocation3], 1 }
0x1b0c   :  { %13062 = vsyncpa [#allocation5], 1 }

</bundles_post_ra>
